<compile_context>
chip_gen: v7x
topology: tpu7x:2x2x1
jax: 0.10.0
libtpu: 0.0.40
codegen_flags: <defaults>
</compile_context>

<pallas_src>
from functools import partial

import jax
import jax.numpy as jnp
from jax import lax
from jax.experimental import pallas as pl
from jax.experimental.pallas import tpu as pltpu


# --------------------------------------------------------------------------
# Fused kernel: one grid step = TH output rows of one batch image (NHWC)
# --------------------------------------------------------------------------
def _fused_kernel(*refs, stride, n_row_tiles, th, wo, width, cin, hidden,
                  cout, expand, use_res, compute_dtype):
    it = iter(refs)
    x_mid_ref = next(it)                      # (1, TH*s, W, Cin)  compute_dtype
    x_top_ref = next(it)                      # (1, 1, W, Cin)     row above tile
    x_bot_ref = next(it) if stride == 1 else None   # (1, 1, W, Cin) row below
    if expand:
        w1_ref = next(it)                     # (Cin, hidden)   scale-folded
        b1_ref = next(it)                     # (1, hidden)     f32
    wdw_ref = next(it)                        # (9, hidden)     scale-folded f32
    b2_ref = next(it)                         # (1, hidden)     f32
    w3_ref = next(it)                         # (hidden, Cout)  scale-folded
    b3_ref = next(it)                         # (1, Cout)       f32
    o_ref = next(it)                          # (1, TH, Wo, Cout)
    hbuf = next(it)                           # VMEM (rows_in + halo, W+2, hidden)

    f32 = jnp.float32
    prec = lax.Precision.HIGHEST
    t = pl.program_id(1)
    rows_in = th * stride

    def expand_rows(x2d):
        """(M, Cin) -> (M, hidden) f32 : 1x1 expand + BN + ReLU6 (if any)."""
        if expand:
            h = jnp.dot(x2d, w1_ref[...], preferred_element_type=f32,
                        precision=prec)
            return jnp.clip(h + b1_ref[...], 0.0, 6.0)
        return x2d.astype(f32)

    # ---- 1x1 expand of the tile's own rows, straight into the scratch ------
    x_mid = x_mid_ref[0]                                   # (rows_in, W, Cin)
    h_mid = expand_rows(x_mid.reshape(rows_in * width, cin))
    hbuf[1:rows_in + 1, 1:width + 1, :] = (
        h_mid.reshape(rows_in, width, hidden).astype(hbuf.dtype))

    # ---- halo rows: expand first, then zero when outside the image ---------
    # (the depthwise conv zero-pads the *hidden* activation, not the input)
    def write_halo(row_ref, valid, dst_row):
        h = expand_rows(row_ref[0].reshape(width, cin))    # (W, hidden) f32
        h = h * valid.astype(f32)
        hbuf[dst_row:dst_row + 1, 1:width + 1, :] = (
            h.reshape(1, width, hidden).astype(hbuf.dtype))

    write_halo(x_top_ref, t > 0, 0)
    if stride == 1:
        write_halo(x_bot_ref, t < n_row_tiles - 1, rows_in + 1)
    # stride 2: the bottom halo row is never read by the taps.

    # ---- zero column halo ---------------------------------------------------
    n_rows = rows_in + (2 if stride == 1 else 1)
    zcol = jnp.zeros((n_rows, 1, hidden), hbuf.dtype)
    hbuf[:, 0:1, :] = zcol
    hbuf[:, width + 1:width + 2, :] = zcol

    # ---- 3x3 depthwise conv + BN + ReLU6 (f32 accumulation) ----------------
    wdw = wdw_ref[...]                        # hoisted: one load per grid step
    acc = jnp.zeros((th, wo, hidden), f32)
    for di in range(3):
        for dj in range(3):
            if stride == 1:
                patch = hbuf[di:di + th, dj:dj + wo, :]
            else:
                patch = hbuf[di:di + 2 * th - 1, dj:dj + 2 * wo - 1, :]
                patch = patch[::2, ::2, :]
            acc = acc + patch.astype(f32) * wdw[di * 3 + dj].reshape(1, 1, hidden)
    acc = jnp.clip(acc + b2_ref[...].reshape(1, 1, hidden), 0.0, 6.0)

    # ---- 1x1 project + BN (+ fused residual) -------------------------------
    y2 = acc.reshape(th * wo, hidden).astype(compute_dtype)
    out = jnp.dot(y2, w3_ref[...], preferred_element_type=f32, precision=prec)
    out = out + b3_ref[...]
    if use_res:
        out = out + x_mid.reshape(th * wo, cin).astype(f32)
    o_ref[...] = out.reshape(1, th, wo, cout).astype(o_ref.dtype)


# --------------------------------------------------------------------------
# Wrappers
# --------------------------------------------------------------------------
def _pick_row_tile(ho, target, n_batch):
    def largest_divisor_le(limit):
        for d in range(min(limit, ho), 0, -1):
            if ho % d == 0:
                return d
        return 1
    th = largest_divisor_le(target)
    # Keep >= 2 grid steps when possible so v7x's two TensorCores both get work.
    if n_batch * (ho // th) < 2 and ho > 1:
        th = largest_divisor_le(max(ho // 2, 1))
    return th


def _vmem_bytes(shape, dtype):
    """Rough layout-padded VMEM footprint of one buffer."""
    shape = list(shape)
    shape[-1] = -(-shape[-1] // 128) * 128
    if len(shape) >= 2:
        shape[-2] = -(-shape[-2] // 8) * 8
    n = 1
    for s in shape:
        n *= s
    return n * jnp.dtype(dtype).itemsize


def inverted_residual_forward_nhwc(x_nhwc, params, *, stride, expand_ratio,
                                   compute_dtype=jnp.bfloat16, row_tile=32):
    N, H, W, Cin = x_nhwc.shape
    assert stride in (1, 2)
    if stride == 2:
        # TODO(synk): odd H/W with stride=2 needs a ragged last row/col tile.
        assert H % 2 == 0 and W % 2 == 0
    hidden = params["wdw"].shape[-1]
    Cout = params["w3"].shape[1]
    expand = expand_ratio != 1
    use_res = (stride == 1) and (Cin == Cout)

    Ho = (H + 2 - 3) // stride + 1
    Wo = (W + 2 - 3) // stride + 1
    th = _pick_row_tile(Ho, row_tile, N)
    n_t = Ho // th
    rows_in = th * stride
    halo_rows = 2 if stride == 1 else 1

    f32 = jnp.float32
    # Fold BN scale into conv weights host-side; in-kernel epilogue is "+bias".
    wdw = (params["wdw"] * params["s2"][None, None, :]).astype(f32).reshape(9, hidden)
    b2 = params["b2"].reshape(1, hidden).astype(f32)
    w3 = (params["w3"] * params["s3"][None, :]).astype(compute_dtype)
    b3 = params["b3"].reshape(1, Cout).astype(f32)

    x_k = x_nhwc.astype(compute_dtype)        # one boundary cast (no-op for f32)

    def whole(shape):
        return pl.BlockSpec(shape, lambda n, t, _r=len(shape): (0,) * _r)

    in_specs = [
        pl.BlockSpec((1, rows_in, W, Cin), lambda n, t: (n, t, 0, 0)),
        pl.BlockSpec((1, 1, W, Cin),
                     lambda n, t: (n, jnp.maximum(t * rows_in - 1, 0), 0, 0)),
    ]
    args = [x_k, x_k]
    if stride == 1:
        in_specs.append(
            pl.BlockSpec((1, 1, W, Cin),
                         lambda n, t: (n, jnp.minimum((t + 1) * rows_in, H - 1),
                                       0, 0)))
        args.append(x_k)
    if expand:
        w1 = (params["w1"] * params["s1"][None, :]).astype(compute_dtype)
        b1 = params["b1"].reshape(1, hidden).astype(f32)
        in_specs += [whole((Cin, hidden)), whole((1, hidden))]
        args += [w1, b1]
    in_specs += [whole((9, hidden)), whole((1, hidden)),
                 whole((hidden, Cout)), whole((1, Cout))]
    args += [wdw, b2, w3, b3]

    hbuf_shape = (rows_in + halo_rows, W + 2, hidden)

    # VMEM budget: scratch + double-buffered I/O blocks + weights, with headroom.
    needed = _vmem_bytes(hbuf_shape, compute_dtype)
    needed += 2 * (_vmem_bytes((1, rows_in, W, Cin), compute_dtype)
                   + halo_rows * _vmem_bytes((1, 1, W, Cin), compute_dtype)
                   + _vmem_bytes((1, th, Wo, Cout), x_nhwc.dtype))
    needed += 2 * sum(_vmem_bytes(a.shape, a.dtype)
                      for a in args[-(6 if expand else 4):])
    vmem_limit = int(min(60 * 2**20, max(2 * needed, 16 * 2**20)))

    kernel = partial(_fused_kernel, stride=stride, n_row_tiles=n_t, th=th,
                     wo=Wo, width=W, cin=Cin, hidden=hidden, cout=Cout,
                     expand=expand, use_res=use_res, compute_dtype=compute_dtype)

    return pl.pallas_call(
        kernel,
        out_shape=jax.ShapeDtypeStruct((N, Ho, Wo, Cout), x_nhwc.dtype),
        grid=(N, n_t),
        in_specs=in_specs,
        out_specs=pl.BlockSpec((1, th, Wo, Cout), lambda n, t: (n, t, 0, 0)),
        scratch_shapes=[pltpu.VMEM(hbuf_shape, compute_dtype)],
        compiler_params=pltpu.CompilerParams(
            dimension_semantics=("parallel", "parallel"),
            vmem_limit_bytes=vmem_limit),
    )(*args)


def inverted_residual_forward(x_nchw, params, *, stride, expand_ratio,
                              compute_dtype=jnp.bfloat16, row_tile=32):
    """PyTorch-layout entry point (NCHW in / NCHW out)."""
    x = jnp.transpose(x_nchw, (0, 2, 3, 1))          # -> NHWC
    y = inverted_residual_forward_nhwc(
        x, params, stride=stride, expand_ratio=expand_ratio,
        compute_dtype=compute_dtype, row_tile=row_tile)
    return jnp.transpose(y, (0, 3, 1, 2))            # -> NCHW


# --------------------------------------------------------------------------
# Deterministic parameters (BN folded to scale/bias, eps=1e-5) + reference
# --------------------------------------------------------------------------
def make_params(key, in_channels, out_channels, expand_ratio, dtype=jnp.float32):
    hidden = int(round(in_channels * expand_ratio))
    ks = jax.random.split(key, 12)
    eps = 1e-5

    def bn_fold(kg, kb, km, kv, c):
        gamma = 1.0 + 0.1 * jax.random.normal(kg, (c,), dtype)
        beta = 0.1 * jax.random.normal(kb, (c,), dtype)
        mean = 0.1 * jax.random.normal(km, (c,), dtype)
        var = jnp.abs(jax.random.normal(kv, (c,), dtype)) + 0.5
        scale = gamma / jnp.sqrt(var + eps)
        bias = beta - mean * scale
        return scale, bias

    w1 = 0.2 * jax.random.normal(ks[0], (in_channels, hidden), dtype)
    s1, b1 = bn_fold(ks[1], ks[2], ks[3], ks[4], hidden)
    wdw = 0.2 * jax.random.normal(ks[5], (3, 3, hidden), dtype)
    s2, b2 = bn_fold(ks[6], ks[7], ks[8], ks[9], hidden)
    w3 = 0.2 * jax.random.normal(ks[10], (hidden, out_channels), dtype)
    s3, b3 = bn_fold(*jax.random.split(ks[11], 4), out_channels)

    return dict(w1=w1, s1=s1, b1=b1, wdw=wdw, s2=s2, b2=b2,
                w3=w3, s3=s3, b3=b3)


def reference_forward(x_nchw, params, *, stride, expand_ratio):
    """Pure-JAX replication of the PyTorch forward (inference semantics)."""
    Cin = x_nchw.shape[1]
    hidden = params["wdw"].shape[-1]
    use_res = (stride == 1) and (Cin == params["w3"].shape[1])
    dn = ("NCHW", "OIHW", "NCHW")
    prec = lax.Precision.HIGHEST

    y = x_nchw
    if expand_ratio != 1:
        w1 = jnp.transpose(params["w1"], (1, 0))[:, :, None, None]
        y = lax.conv_general_dilated(y, w1, (1, 1), "VALID",
                                     dimension_numbers=dn, precision=prec)
        y = y * params["s1"][None, :, None, None] + params["b1"][None, :, None, None]
        y = jnp.clip(y, 0.0, 6.0)
    wdw = jnp.transpose(params["wdw"], (2, 0, 1))[:, None, :, :]
    y = lax.conv_general_dilated(y, wdw, (stride, stride), ((1, 1), (1, 1)),
                                 dimension_numbers=dn,
                                 feature_group_count=hidden, precision=prec)
    y = y * params["s2"][None, :, None, None] + params["b2"][None, :, None, None]
    y = jnp.clip(y, 0.0, 6.0)
    w3 = jnp.transpose(params["w3"], (1, 0))[:, :, None, None]
    y = lax.conv_general_dilated(y, w3, (1, 1), "VALID",
                                 dimension_numbers=dn, precision=prec)
    y = y * params["s3"][None, :, None, None] + params["b3"][None, :, None, None]
    if use_res:
        y = y + x_nchw
    return y


if __name__ == "__main__":
    key = jax.random.PRNGKey(0)
    kx, kp1, kp2, kp3, kp4 = jax.random.split(key, 5)

    N, C, H, W = 2, 8, 16, 16
    x = jax.random.normal(kx, (N, C, H, W), jnp.float32)

    def check_f32(name, params, stride, expand_ratio, atol=1e-3):
        ref = reference_forward(x, params, stride=stride,
                                expand_ratio=expand_ratio)
        out = inverted_residual_forward(x, params, stride=stride,
                                        expand_ratio=expand_ratio,
                                        compute_dtype=jnp.float32)
        out = jax.block_until_ready(out)
        assert out.shape == ref.shape, (name, out.shape, ref.shape)
        err = float(jnp.max(jnp.abs(out - ref)))
        assert err < atol, f"{name}: f32 path max abs err = {err}"
        return ref

    # Case 1: residual path (Cin == Cout = 8, stride 1, expand 6, hidden 48).
    p1 = make_params(kp1, C, C, 6)
    ref1 = check_f32("case1", p1, 1, 6)

    # bf16 default path on case 1 (relative-error check).
    out_bf = inverted_residual_forward(x, p1, stride=1, expand_ratio=6)
    out_bf = jax.block_until_ready(out_bf)
    rel = float(jnp.linalg.norm(out_bf - ref1) / jnp.linalg.norm(ref1))
    assert rel < 3e-2, f"bf16 path rel L2 err = {rel}"

    # Case 2: no residual (Cin=8 != Cout=16), stride 1.
    p2 = make_params(kp2, C, 16, 6)
    check_f32("case2", p2, 1, 6)

    # Case 3: stride 2 downsampling path (previously unexercised).
    p3 = make_params(kp3, C, 16, 6)
    check_f32("case3", p3, 2, 6)

    # Case 4: expand_ratio == 1 (no expand conv), residual.
    p4 = make_params(kp4, C, C, 1)
    check_f32("case4", p4, 1, 1)

    print("KERNEL_OK")
</pallas_src>

<mosaic_0001>
module attributes {stable_mosaic.version = 11 : i64} {
  func.func @_fused_kernel(%arg0: i32, %arg1: i32, %arg2: memref<1x16x16x8xf32, #tpu.memory_space<vmem>>, %arg3: memref<1x1x16x8xf32, #tpu.memory_space<vmem>>, %arg4: memref<1x1x16x8xf32, #tpu.memory_space<vmem>>, %arg5: memref<8x48xf32, #tpu.memory_space<vmem>>, %arg6: memref<1x48xf32, #tpu.memory_space<vmem>>, %arg7: memref<9x48xf32, #tpu.memory_space<vmem>>, %arg8: memref<1x48xf32, #tpu.memory_space<vmem>>, %arg9: memref<48x8xf32, #tpu.memory_space<vmem>>, %arg10: memref<1x8xf32, #tpu.memory_space<vmem>>, %arg11: memref<1x16x16x8xf32, #tpu.memory_space<vmem>>, %arg12: memref<18x18x48xf32, #tpu.memory_space<vmem>>) attributes {dimension_semantics = [#tpu.dimension_semantics<parallel>, #tpu.dimension_semantics<parallel>], iteration_bounds = array<i64: 2, 1>, scalar_prefetch = 0 : i64, scratch_operands = 1 : i64, tpu.core_type = #tpu.core_type<tc>, window_params = [{transform_indices = @transform_0, window_bounds = array<i64: 1, 16, 16, 8>}, {transform_indices = @transform_1, window_bounds = array<i64: 1, 1, 16, 8>}, {transform_indices = @transform_2, window_bounds = array<i64: 1, 1, 16, 8>}, {pipeline_mode = #tpu.pipeline_mode<synchronous>, transform_indices = @transform_3, window_bounds = array<i64: 8, 48>}, {pipeline_mode = #tpu.pipeline_mode<synchronous>, transform_indices = @transform_4, window_bounds = array<i64: 1, 48>}, {pipeline_mode = #tpu.pipeline_mode<synchronous>, transform_indices = @transform_5, window_bounds = array<i64: 9, 48>}, {pipeline_mode = #tpu.pipeline_mode<synchronous>, transform_indices = @transform_6, window_bounds = array<i64: 1, 48>}, {pipeline_mode = #tpu.pipeline_mode<synchronous>, transform_indices = @transform_7, window_bounds = array<i64: 48, 8>}, {pipeline_mode = #tpu.pipeline_mode<synchronous>, transform_indices = @transform_8, window_bounds = array<i64: 1, 8>}, {transform_indices = @transform_9, window_bounds = array<i64: 1, 16, 16, 8>}]} {
    %c0 = arith.constant 0 : index
    %c0_0 = arith.constant 0 : index
    %c0_1 = arith.constant 0 : index
    %c0_2 = arith.constant 0 : index
    %0 = vector.load %arg2[%c0, %c0_0, %c0_1, %c0_2] : memref<1x16x16x8xf32, #tpu.memory_space<vmem>>, vector<1x16x16x8xf32>
    %1 = vector.shape_cast %0 : vector<1x16x16x8xf32> to vector<16x16x8xf32>
    %2 = vector.shape_cast %1 : vector<16x16x8xf32> to vector<256x8xf32>
    %c0_3 = arith.constant 0 : index
    %c0_4 = arith.constant 0 : index
    %3 = vector.load %arg5[%c0_3, %c0_4] : memref<8x48xf32, #tpu.memory_space<vmem>>, vector<8x48xf32>
    %cst = arith.constant dense<0.000000e+00> : vector<256x48xf32>
    %4 = tpu.matmul %2, %3, %cst {dimension_numbers = #tpu.dot_dimension_numbers<[1], [0], [0], [1], [0, 0, 1, 1], [], []>, precision = #tpu.contract_precision<fp32>} : vector<256x8xf32>, vector<8x48xf32>, vector<256x48xf32> -> vector<256x48xf32>
    %c0_5 = arith.constant 0 : index
    %c0_6 = arith.constant 0 : index
    %5 = vector.load %arg6[%c0_5, %c0_6] : memref<1x48xf32, #tpu.memory_space<vmem>>, vector<1x48xf32>
    %6 = vector.broadcast %5 : vector<1x48xf32> to vector<256x48xf32>
    %7 = arith.addf %4, %6 : vector<256x48xf32>
    %cst_7 = arith.constant 0.000000e+00 : f32
    %cst_8 = arith.constant 6.000000e+00 : f32
    %8 = vector.broadcast %cst_7 : f32 to vector<256x48xf32>
    %9 = arith.maximumf %8, %7 : vector<256x48xf32>
    %10 = vector.broadcast %cst_8 : f32 to vector<256x48xf32>
    %11 = arith.minimumf %10, %9 : vector<256x48xf32>
    %12 = vector.shape_cast %11 : vector<256x48xf32> to vector<16x16x48xf32>
    %c1 = arith.constant 1 : index
    %c1_9 = arith.constant 1 : index
    %c0_10 = arith.constant 0 : index
    %13 = vector.load %arg12[%c1, %c1_9, %c0_10] : memref<18x18x48xf32, #tpu.memory_space<vmem>>, vector<16x16x48xf32>
    tpu.vector_store %arg12[%c1, %c1_9, %c0_10], %12 {strides = array<i32>} : memref<18x18x48xf32, #tpu.memory_space<vmem>>, vector<16x16x48xf32>,
    %c0_i32 = arith.constant 0 : i32
    %14 = arith.cmpi sgt, %arg1, %c0_i32 : i32
    %c0_11 = arith.constant 0 : index
    %c0_12 = arith.constant 0 : index
    %c0_13 = arith.constant 0 : index
    %c0_14 = arith.constant 0 : index
    %15 = vector.load %arg3[%c0_11, %c0_12, %c0_13, %c0_14] : memref<1x1x16x8xf32, #tpu.memory_space<vmem>>, vector<1x1x16x8xf32>
    %16 = vector.shape_cast %15 : vector<1x1x16x8xf32> to vector<1x16x8xf32>
    %17 = vector.shape_cast %16 : vector<1x16x8xf32> to vector<16x8xf32>
    %c0_15 = arith.constant 0 : index
    %c0_16 = arith.constant 0 : index
    %18 = vector.load %arg5[%c0_15, %c0_16] : memref<8x48xf32, #tpu.memory_space<vmem>>, vector<8x48xf32>
    %cst_17 = arith.constant dense<0.000000e+00> : vector<16x48xf32>
    %19 = tpu.matmul %17, %18, %cst_17 {dimension_numbers = #tpu.dot_dimension_numbers<[1], [0], [0], [1], [0, 0, 1, 1], [], []>, precision = #tpu.contract_precision<fp32>} : vector<16x8xf32>, vector<8x48xf32>, vector<16x48xf32> -> vector<16x48xf32>
    %c0_18 = arith.constant 0 : index
    %c0_19 = arith.constant 0 : index
    %20 = vector.load %arg6[%c0_18, %c0_19] : memref<1x48xf32, #tpu.memory_space<vmem>>, vector<1x48xf32>
    %21 = vector.broadcast %20 : vector<1x48xf32> to vector<16x48xf32>
    %22 = arith.addf %19, %21 : vector<16x48xf32>
    %cst_20 = arith.constant 0.000000e+00 : f32
    %cst_21 = arith.constant 6.000000e+00 : f32
    %23 = vector.broadcast %cst_20 : f32 to vector<16x48xf32>
    %24 = arith.maximumf %23, %22 : vector<16x48xf32>
    %25 = vector.broadcast %cst_21 : f32 to vector<16x48xf32>
    %26 = arith.minimumf %25, %24 : vector<16x48xf32>
    %27 = arith.extui %14 : i1 to i32
    %28 = arith.sitofp %27 : i32 to f32
    %29 = vector.broadcast %28 : f32 to vector<16x48xf32>
    %30 = arith.mulf %26, %29 : vector<16x48xf32>
    %31 = vector.shape_cast %30 : vector<16x48xf32> to vector<1x16x48xf32>
    %c0_22 = arith.constant 0 : index
    %c1_23 = arith.constant 1 : index
    %c0_24 = arith.constant 0 : index
    %32 = vector.load %arg12[%c0_22, %c1_23, %c0_24] : memref<18x18x48xf32, #tpu.memory_space<vmem>>, vector<1x16x48xf32>
    tpu.vector_store %arg12[%c0_22, %c1_23, %c0_24], %31 {strides = array<i32>} : memref<18x18x48xf32, #tpu.memory_space<vmem>>, vector<1x16x48xf32>,
    %c0_i32_25 = arith.constant 0 : i32
    %33 = arith.cmpi slt, %arg1, %c0_i32_25 : i32
    %c0_26 = arith.constant 0 : index
    %c0_27 = arith.constant 0 : index
    %c0_28 = arith.constant 0 : index
    %c0_29 = arith.constant 0 : index
    %34 = vector.load %arg4[%c0_26, %c0_27, %c0_28, %c0_29] : memref<1x1x16x8xf32, #tpu.memory_space<vmem>>, vector<1x1x16x8xf32>
    %35 = vector.shape_cast %34 : vector<1x1x16x8xf32> to vector<1x16x8xf32>
    %36 = vector.shape_cast %35 : vector<1x16x8xf32> to vector<16x8xf32>
    %c0_30 = arith.constant 0 : index
    %c0_31 = arith.constant 0 : index
    %37 = vector.load %arg5[%c0_30, %c0_31] : memref<8x48xf32, #tpu.memory_space<vmem>>, vector<8x48xf32>
    %cst_32 = arith.constant dense<0.000000e+00> : vector<16x48xf32>
    %38 = tpu.matmul %36, %37, %cst_32 {dimension_numbers = #tpu.dot_dimension_numbers<[1], [0], [0], [1], [0, 0, 1, 1], [], []>, precision = #tpu.contract_precision<fp32>} : vector<16x8xf32>, vector<8x48xf32>, vector<16x48xf32> -> vector<16x48xf32>
    %c0_33 = arith.constant 0 : index
    %c0_34 = arith.constant 0 : index
    %39 = vector.load %arg6[%c0_33, %c0_34] : memref<1x48xf32, #tpu.memory_space<vmem>>, vector<1x48xf32>
    %40 = vector.broadcast %39 : vector<1x48xf32> to vector<16x48xf32>
    %41 = arith.addf %38, %40 : vector<16x48xf32>
    %cst_35 = arith.constant 0.000000e+00 : f32
    %cst_36 = arith.constant 6.000000e+00 : f32
    %42 = vector.broadcast %cst_35 : f32 to vector<16x48xf32>
    %43 = arith.maximumf %42, %41 : vector<16x48xf32>
    %44 = vector.broadcast %cst_36 : f32 to vector<16x48xf32>
    %45 = arith.minimumf %44, %43 : vector<16x48xf32>
    %46 = arith.extui %33 : i1 to i32
    %47 = arith.sitofp %46 : i32 to f32
    %48 = vector.broadcast %47 : f32 to vector<16x48xf32>
    %49 = arith.mulf %45, %48 : vector<16x48xf32>
    %50 = vector.shape_cast %49 : vector<16x48xf32> to vector<1x16x48xf32>
    %c17 = arith.constant 17 : index
    %c1_37 = arith.constant 1 : index
    %c0_38 = arith.constant 0 : index
    %51 = vector.load %arg12[%c17, %c1_37, %c0_38] : memref<18x18x48xf32, #tpu.memory_space<vmem>>, vector<1x16x48xf32>
    tpu.vector_store %arg12[%c17, %c1_37, %c0_38], %50 {strides = array<i32>} : memref<18x18x48xf32, #tpu.memory_space<vmem>>, vector<1x16x48xf32>,
    %cst_39 = arith.constant 0.000000e+00 : f32
    %52 = vector.broadcast %cst_39 : f32 to vector<18x1x48xf32>
    %c0_40 = arith.constant 0 : index
    %c0_41 = arith.constant 0 : index
    %c0_42 = arith.constant 0 : index
    %53 = vector.load %arg12[%c0_40, %c0_41, %c0_42] : memref<18x18x48xf32, #tpu.memory_space<vmem>>, vector<18x1x48xf32>
    tpu.vector_store %arg12[%c0_40, %c0_41, %c0_42], %52 {strides = array<i32>} : memref<18x18x48xf32, #tpu.memory_space<vmem>>, vector<18x1x48xf32>,
    %c0_43 = arith.constant 0 : index
    %c17_44 = arith.constant 17 : index
    %c0_45 = arith.constant 0 : index
    %54 = vector.load %arg12[%c0_43, %c17_44, %c0_45] : memref<18x18x48xf32, #tpu.memory_space<vmem>>, vector<18x1x48xf32>
    tpu.vector_store %arg12[%c0_43, %c17_44, %c0_45], %52 {strides = array<i32>} : memref<18x18x48xf32, #tpu.memory_space<vmem>>, vector<18x1x48xf32>,
    %c0_46 = arith.constant 0 : index
    %c0_47 = arith.constant 0 : index
    %55 = vector.load %arg7[%c0_46, %c0_47] : memref<9x48xf32, #tpu.memory_space<vmem>>, vector<9x48xf32>
    %cst_48 = arith.constant 0.000000e+00 : f32
    %56 = vector.broadcast %cst_48 : f32 to vector<16x16x48xf32>
    %c0_49 = arith.constant 0 : index
    %c0_50 = arith.constant 0 : index
    %c0_51 = arith.constant 0 : index
    %57 = vector.load %arg12[%c0_49, %c0_50, %c0_51] : memref<18x18x48xf32, #tpu.memory_space<vmem>>, vector<16x16x48xf32>
    %58 = vector.extract_strided_slice %55 {offsets = [0, 0], sizes = [1, 48], strides = [1, 1]} : vector<9x48xf32> to vector<1x48xf32>
    %59 = vector.shape_cast %58 : vector<1x48xf32> to vector<48xf32>
    %60 = vector.shape_cast %59 : vector<48xf32> to vector<1x1x48xf32>
    %61 = vector.broadcast %60 : vector<1x1x48xf32> to vector<16x16x48xf32>
    %62 = arith.mulf %57, %61 : vector<16x16x48xf32>
    %63 = arith.addf %56, %62 : vector<16x16x48xf32>
    %c0_52 = arith.constant 0 : index
    %c1_53 = arith.constant 1 : index
    %c0_54 = arith.constant 0 : index
    %64 = vector.load %arg12[%c0_52, %c1_53, %c0_54] : memref<18x18x48xf32, #tpu.memory_space<vmem>>, vector<16x16x48xf32>
    %65 = vector.extract_strided_slice %55 {offsets = [1, 0], sizes = [1, 48], strides = [1, 1]} : vector<9x48xf32> to vector<1x48xf32>
    %66 = vector.shape_cast %65 : vector<1x48xf32> to vector<48xf32>
    %67 = vector.shape_cast %66 : vector<48xf32> to vector<1x1x48xf32>
    %68 = vector.broadcast %67 : vector<1x1x48xf32> to vector<16x16x48xf32>
    %69 = arith.mulf %64, %68 : vector<16x16x48xf32>
    %70 = arith.addf %63, %69 : vector<16x16x48xf32>
    %c0_55 = arith.constant 0 : index
    %c2 = arith.constant 2 : index
    %c0_56 = arith.constant 0 : index
    %71 = vector.load %arg12[%c0_55, %c2, %c0_56] : memref<18x18x48xf32, #tpu.memory_space<vmem>>, vector<16x16x48xf32>
    %72 = vector.extract_strided_slice %55 {offsets = [2, 0], sizes = [1, 48], strides = [1, 1]} : vector<9x48xf32> to vector<1x48xf32>
    %73 = vector.shape_cast %72 : vector<1x48xf32> to vector<48xf32>
    %74 = vector.shape_cast %73 : vector<48xf32> to vector<1x1x48xf32>
    %75 = vector.broadcast %74 : vector<1x1x48xf32> to vector<16x16x48xf32>
    %76 = arith.mulf %71, %75 : vector<16x16x48xf32>
    %77 = arith.addf %70, %76 : vector<16x16x48xf32>
    %c1_57 = arith.constant 1 : index
    %c0_58 = arith.constant 0 : index
    %c0_59 = arith.constant 0 : index
    %78 = vector.load %arg12[%c1_57, %c0_58, %c0_59] : memref<18x18x48xf32, #tpu.memory_space<vmem>>, vector<16x16x48xf32>
    %79 = vector.extract_strided_slice %55 {offsets = [3, 0], sizes = [1, 48], strides = [1, 1]} : vector<9x48xf32> to vector<1x48xf32>
    %80 = vector.shape_cast %79 : vector<1x48xf32> to vector<48xf32>
    %81 = vector.shape_cast %80 : vector<48xf32> to vector<1x1x48xf32>
    %82 = vector.broadcast %81 : vector<1x1x48xf32> to vector<16x16x48xf32>
    %83 = arith.mulf %78, %82 : vector<16x16x48xf32>
    %84 = arith.addf %77, %83 : vector<16x16x48xf32>
    %c1_60 = arith.constant 1 : index
    %c1_61 = arith.constant 1 : index
    %c0_62 = arith.constant 0 : index
    %85 = vector.load %arg12[%c1_60, %c1_61, %c0_62] : memref<18x18x48xf32, #tpu.memory_space<vmem>>, vector<16x16x48xf32>
    %86 = vector.extract_strided_slice %55 {offsets = [4, 0], sizes = [1, 48], strides = [1, 1]} : vector<9x48xf32> to vector<1x48xf32>
    %87 = vector.shape_cast %86 : vector<1x48xf32> to vector<48xf32>
    %88 = vector.shape_cast %87 : vector<48xf32> to vector<1x1x48xf32>
    %89 = vector.broadcast %88 : vector<1x1x48xf32> to vector<16x16x48xf32>
    %90 = arith.mulf %85, %89 : vector<16x16x48xf32>
    %91 = arith.addf %84, %90 : vector<16x16x48xf32>
    %c1_63 = arith.constant 1 : index
    %c2_64 = arith.constant 2 : index
    %c0_65 = arith.constant 0 : index
    %92 = vector.load %arg12[%c1_63, %c2_64, %c0_65] : memref<18x18x48xf32, #tpu.memory_space<vmem>>, vector<16x16x48xf32>
    %93 = vector.extract_strided_slice %55 {offsets = [5, 0], sizes = [1, 48], strides = [1, 1]} : vector<9x48xf32> to vector<1x48xf32>
    %94 = vector.shape_cast %93 : vector<1x48xf32> to vector<48xf32>
    %95 = vector.shape_cast %94 : vector<48xf32> to vector<1x1x48xf32>
    %96 = vector.broadcast %95 : vector<1x1x48xf32> to vector<16x16x48xf32>
    %97 = arith.mulf %92, %96 : vector<16x16x48xf32>
    %98 = arith.addf %91, %97 : vector<16x16x48xf32>
    %c2_66 = arith.constant 2 : index
    %c0_67 = arith.constant 0 : index
    %c0_68 = arith.constant 0 : index
    %99 = vector.load %arg12[%c2_66, %c0_67, %c0_68] : memref<18x18x48xf32, #tpu.memory_space<vmem>>, vector<16x16x48xf32>
    %100 = vector.extract_strided_slice %55 {offsets = [6, 0], sizes = [1, 48], strides = [1, 1]} : vector<9x48xf32> to vector<1x48xf32>
    %101 = vector.shape_cast %100 : vector<1x48xf32> to vector<48xf32>
    %102 = vector.shape_cast %101 : vector<48xf32> to vector<1x1x48xf32>
    %103 = vector.broadcast %102 : vector<1x1x48xf32> to vector<16x16x48xf32>
    %104 = arith.mulf %99, %103 : vector<16x16x48xf32>
    %105 = arith.addf %98, %104 : vector<16x16x48xf32>
    %c2_69 = arith.constant 2 : index
    %c1_70 = arith.constant 1 : index
    %c0_71 = arith.constant 0 : index
    %106 = vector.load %arg12[%c2_69, %c1_70, %c0_71] : memref<18x18x48xf32, #tpu.memory_space<vmem>>, vector<16x16x48xf32>
    %107 = vector.extract_strided_slice %55 {offsets = [7, 0], sizes = [1, 48], strides = [1, 1]} : vector<9x48xf32> to vector<1x48xf32>
    %108 = vector.shape_cast %107 : vector<1x48xf32> to vector<48xf32>
    %109 = vector.shape_cast %108 : vector<48xf32> to vector<1x1x48xf32>
    %110 = vector.broadcast %109 : vector<1x1x48xf32> to vector<16x16x48xf32>
    %111 = arith.mulf %106, %110 : vector<16x16x48xf32>
    %112 = arith.addf %105, %111 : vector<16x16x48xf32>
    %c2_72 = arith.constant 2 : index
    %c2_73 = arith.constant 2 : index
    %c0_74 = arith.constant 0 : index
    %113 = vector.load %arg12[%c2_72, %c2_73, %c0_74] : memref<18x18x48xf32, #tpu.memory_space<vmem>>, vector<16x16x48xf32>
    %114 = vector.extract_strided_slice %55 {offsets = [8, 0], sizes = [1, 48], strides = [1, 1]} : vector<9x48xf32> to vector<1x48xf32>
    %115 = vector.shape_cast %114 : vector<1x48xf32> to vector<48xf32>
    %116 = vector.shape_cast %115 : vector<48xf32> to vector<1x1x48xf32>
    %117 = vector.broadcast %116 : vector<1x1x48xf32> to vector<16x16x48xf32>
    %118 = arith.mulf %113, %117 : vector<16x16x48xf32>
    %119 = arith.addf %112, %118 : vector<16x16x48xf32>
    %c0_75 = arith.constant 0 : index
    %c0_76 = arith.constant 0 : index
    %120 = vector.load %arg8[%c0_75, %c0_76] : memref<1x48xf32, #tpu.memory_space<vmem>>, vector<1x48xf32>
    %121 = vector.shape_cast %120 : vector<1x48xf32> to vector<1x1x48xf32>
    %122 = vector.broadcast %121 : vector<1x1x48xf32> to vector<16x16x48xf32>
    %123 = arith.addf %119, %122 : vector<16x16x48xf32>
    %cst_77 = arith.constant 0.000000e+00 : f32
    %cst_78 = arith.constant 6.000000e+00 : f32
    %124 = vector.broadcast %cst_77 : f32 to vector<16x16x48xf32>
    %125 = arith.maximumf %124, %123 : vector<16x16x48xf32>
    %126 = vector.broadcast %cst_78 : f32 to vector<16x16x48xf32>
    %127 = arith.minimumf %126, %125 : vector<16x16x48xf32>
    %128 = vector.shape_cast %127 : vector<16x16x48xf32> to vector<256x48xf32>
    %c0_79 = arith.constant 0 : index
    %c0_80 = arith.constant 0 : index
    %129 = vector.load %arg9[%c0_79, %c0_80] : memref<48x8xf32, #tpu.memory_space<vmem>>, vector<48x8xf32>
    %cst_81 = arith.constant dense<0.000000e+00> : vector<256x8xf32>
    %130 = tpu.matmul %128, %129, %cst_81 {dimension_numbers = #tpu.dot_dimension_numbers<[1], [0], [0], [1], [0, 0, 1, 1], [], []>, precision = #tpu.contract_precision<fp32>} : vector<256x48xf32>, vector<48x8xf32>, vector<256x8xf32> -> vector<256x8xf32>
    %c0_82 = arith.constant 0 : index
    %c0_83 = arith.constant 0 : index
    %131 = vector.load %arg10[%c0_82, %c0_83] : memref<1x8xf32, #tpu.memory_space<vmem>>, vector<1x8xf32>
    %132 = vector.broadcast %131 : vector<1x8xf32> to vector<256x8xf32>
    %133 = arith.addf %130, %132 : vector<256x8xf32>
    %134 = vector.shape_cast %1 : vector<16x16x8xf32> to vector<256x8xf32>
    %135 = arith.addf %133, %134 : vector<256x8xf32>
    %136 = vector.shape_cast %135 : vector<256x8xf32> to vector<1x16x16x8xf32>
    %c0_84 = arith.constant 0 : index
    %c0_85 = arith.constant 0 : index
    %c0_86 = arith.constant 0 : index
    %c0_87 = arith.constant 0 : index
    %137 = vector.load %arg11[%c0_84, %c0_85, %c0_86, %c0_87] : memref<1x16x16x8xf32, #tpu.memory_space<vmem>>, vector<1x16x16x8xf32>
    tpu.vector_store %arg11[%c0_84, %c0_85, %c0_86, %c0_87], %136 {strides = array<i32>} : memref<1x16x16x8xf32, #tpu.memory_space<vmem>>, vector<1x16x16x8xf32>,
    return
  }
  func.func @transform_0(%arg0: i32, %arg1: i32) -> (i32, i32, i32, i32) {
    %c0_i32 = arith.constant 0 : i32
    %c0_i32_0 = arith.constant 0 : i32
    %c0_i32_1 = arith.constant 0 : i32
    return %arg0, %arg1, %c0_i32, %c0_i32_0 : i32, i32, i32, i32
  }
  func.func @transform_1(%arg0: i32, %arg1: i32) -> (i32, i32, i32, i32) {
    %c16_i32 = arith.constant 16 : i32
    %0 = arith.muli %arg1, %c16_i32 : i32
    %c1_i32 = arith.constant 1 : i32
    %1 = arith.subi %0, %c1_i32 : i32
    %c0_i32 = arith.constant 0 : i32
    %2 = arith.maxsi %1, %c0_i32 : i32
    %c0_i32_0 = arith.constant 0 : i32
    %c0_i32_1 = arith.constant 0 : i32
    %c0_i32_2 = arith.constant 0 : i32
    return %arg0, %2, %c0_i32_0, %c0_i32_1 : i32, i32, i32, i32
  }
  func.func @transform_2(%arg0: i32, %arg1: i32) -> (i32, i32, i32, i32) {
    %c1_i32 = arith.constant 1 : i32
    %0 = arith.addi %arg1, %c1_i32 : i32
    %c16_i32 = arith.constant 16 : i32
    %1 = arith.muli %0, %c16_i32 : i32
    %c15_i32 = arith.constant 15 : i32
    %2 = arith.minsi %1, %c15_i32 : i32
    %c0_i32 = arith.constant 0 : i32
    %c0_i32_0 = arith.constant 0 : i32
    %c0_i32_1 = arith.constant 0 : i32
    return %arg0, %2, %c0_i32, %c0_i32_0 : i32, i32, i32, i32
  }
  func.func @transform_3(%arg0: i32, %arg1: i32) -> (i32, i32) {
    %c0_i32 = arith.constant 0 : i32
    %c0_i32_0 = arith.constant 0 : i32
    %c0_i32_1 = arith.constant 0 : i32
    return %c0_i32, %c0_i32_0 : i32, i32
  }
  func.func @transform_4(%arg0: i32, %arg1: i32) -> (i32, i32) {
    %c0_i32 = arith.constant 0 : i32
    %c0_i32_0 = arith.constant 0 : i32
    %c0_i32_1 = arith.constant 0 : i32
    return %c0_i32, %c0_i32_0 : i32, i32
  }
  func.func @transform_5(%arg0: i32, %arg1: i32) -> (i32, i32) {
    %c0_i32 = arith.constant 0 : i32
    %c0_i32_0 = arith.constant 0 : i32
    %c0_i32_1 = arith.constant 0 : i32
    return %c0_i32, %c0_i32_0 : i32, i32
  }
  func.func @transform_6(%arg0: i32, %arg1: i32) -> (i32, i32) {
    %c0_i32 = arith.constant 0 : i32
    %c0_i32_0 = arith.constant 0 : i32
    %c0_i32_1 = arith.constant 0 : i32
    return %c0_i32, %c0_i32_0 : i32, i32
  }
  func.func @transform_7(%arg0: i32, %arg1: i32) -> (i32, i32) {
    %c0_i32 = arith.constant 0 : i32
    %c0_i32_0 = arith.constant 0 : i32
    %c0_i32_1 = arith.constant 0 : i32
    return %c0_i32, %c0_i32_0 : i32, i32
  }
  func.func @transform_8(%arg0: i32, %arg1: i32) -> (i32, i32) {
    %c0_i32 = arith.constant 0 : i32
    %c0_i32_0 = arith.constant 0 : i32
    %c0_i32_1 = arith.constant 0 : i32
    return %c0_i32, %c0_i32_0 : i32, i32
  }
  func.func @transform_9(%arg0: i32, %arg1: i32) -> (i32, i32, i32, i32) {
    %c0_i32 = arith.constant 0 : i32
    %c0_i32_0 = arith.constant 0 : i32
    %c0_i32_1 = arith.constant 0 : i32
    return %arg0, %arg1, %c0_i32, %c0_i32_0 : i32, i32, i32, i32
  }
}

</mosaic_0001>

<bundles_post_ra>
// kernel: tpu_custom_call.1
= control target key start
LH: loop header
LB: loop body
LE: loop exit
PB: predicated region body
PF: predicated region fallthrough
CT: control target
= control target key end

     0   :  { %s8584_s30 = smov 0   ;;  %s8586_s10 = smov 0   ;;  %s11011_s0 = inlined_call_operand.vmem [shape: f32[2,16,16,8], index: 0, kind: input, shape index: {}]   ;;  %s11012_s1 = inlined_call_operand.vmem [shape: f32[2,16,16,8], index: 1, kind: input, shape index: {}]   ;;  %s11013_s2 = inlined_call_operand.vmem [shape: f32[2,16,16,8], index: 2, kind: input, shape index: {}]   ;;  %s11014_s3 = inlined_call_operand.vmem [shape: f32[8,48], index: 3, kind: input, shape index: {}]   ;;  %s11015_s4 = inlined_call_operand.vmem [shape: f32[1,48], index: 4, kind: input, shape index: {}]   ;;  %s11016_s5 = inlined_call_operand.vmem [shape: f32[9,48], index: 5, kind: input, shape index: {}]   ;;  %s11017_s6 = inlined_call_operand.vmem [shape: f32[1,48], index: 6, kind: input, shape index: {}]   ;;  %s11018_s7 = inlined_call_operand.vmem [shape: f32[48,8], index: 7, kind: input, shape index: {}]   ;;  %s11019_s8 = inlined_call_operand.vmem [shape: f32[1,8], index: 8, kind: input, shape index: {}]   ;;  %s11020_s9 = inlined_call_operand.vmem [shape: f32[2,16,16,8], index: 9, kind: output, shape index: {}]  }
   0x1   :  { %s8588_s11 = smov 0  }
   0x2 LB: > { %s31_s12 = sadd.s32 1, %s8527_s10  ;;  %p6752_p0 = scmp.ge.s32.totalorder %s8531_s11, 1  ;;  %s8531_s11 = sphi %s8588_s11, %s19_s11   ;;  %s8527_s10 = sphi %s8586_s10, %s11540_s10   ;;  %s8523_s30 = sphi %s8584_s30, %s11539_s30  }
   0x3   : > { %p33_p1 = scmp.ge.s32.totalorder %s31_s12, 2  ;;  %p373_p2 = scmp.lt.s32.totalorder %s8531_s11, 3 }
   0x5   : > { %s11542_s12 = smov (%p33_p1, %s31_s12), 0  ;;  %p374_p3 = pnand %p6752_p0, %p373_p2 }
   0x7   : > { %377 = sbr.rel (%p374_p3) target bundleno = 1365 (0x555), region = 56 }
   0xe   : > { %v533_v0 = vld [vmem:[%s11014_s3] sm:$0xff]  ;;  %p446_p4 = scmp.lt.s32.totalorder %s8523_s30, 1  ;;  %vm541_vm0 = vcmask 64512   ;;  %vm3550_vm1 = vcmask 385024   ;;  %vm2482_vm2 = vcmask 392192  }
   0xf   : > { %v8605_v1 = vand.u32 4294901760, %v533_v0 }
  0x10   : > { %s11544_s30 = smov (!%p446_p4, %s8523_s30), 1 }
  0x11   : > { %7237 = vmatprep.subr.mxu0 %v8605_v1  ;;  %v8609_v2 = vsub.f32 %v533_v0, %v8605_v1  ;;  %7537 = vmatprep.subr.mxu1 %v8605_v1  ;;  %s8613_s15 = sshll.u32 %s11544_s30, 8 }
  0x12   : > { %7238 = vmatpush3.msra.mxu0 %v8605_v1  ;;  %7538 = vmatpush3.msra.mxu1 %v8605_v1  ;;  %s8620_s18 = scalar_lea.vmem %s11011_s0, %s8613_s15  ;;  %s468_s21 = scalar_lea.vmem %s11012_s1, %s8613_s15 }
  0x13   : > { %v8623_v3 = vand.u32 4294901760, %v8609_v2  ;;  %v501_v4 = vld [vmem:[%s8620_s18] sm:$0xff]  ;;  %v502_v5 = vld [vmem:[%s8620_s18 + $0x8] sm:$0xff]  ;;  %v503_v6 = vld [vmem:[%s8620_s18 + $0x10] sm:$0xff]  ;;  %s6772_s22 = sadd.s32 240, %s8613_s15  ;;  %s10862_s20 = scalar_lea.vmem %s11020_s9, %s8613_s15 }
  0x14   : > { %v543_v7 = vsel %vm541_vm0, %v501_v4, 0  ;;  %v546_v9 = vsel %vm541_vm0, %v502_v5, 0  ;;  %v549_v10 = vsel %vm541_vm0, %v503_v6, 0  ;;  %v504_v11 = vld [vmem:[%s8620_s18 + $0x18] sm:$0xff]  ;;  %v505_v12 = vld [vmem:[%s8620_s18 + $0x20] sm:$0xff]  ;;  %v506_v13 = vld [vmem:[%s8620_s18 + $0x28] sm:$0xff]  ;;  %s485_s25 = scalar_lea.vmem %s11013_s2, %s6772_s22 }
  0x15   : > { %v1028_v8 = vsub.f32 %v8609_v2, %v8623_v3  ;;  %v8636_v14 = vand.u32 4294901760, %v543_v7  ;;  %v8638_v15 = vand.u32 4294901760, %v546_v9  ;;  %v8640_v16 = vand.u32 4294901760, %v549_v10  ;;  %v507_v18 = vld [vmem:[%s8620_s18 + $0x30] sm:$0xff]  ;;  %v508_v19 = vld [vmem:[%s8620_s18 + $0x38] sm:$0xff]  ;;  %v509_v48 = vld [vmem:[%s8620_s18 + $0x40] sm:$0xff] }
  0x16   : > { %v552_v17 = vsel %vm541_vm0, %v504_v11, 0  ;;  %v555_v22 = vsel %vm541_vm0, %v505_v12, 0  ;;  %v558_v23 = vsel %vm541_vm0, %v506_v13, 0  ;;  %v561_v30 = vsel %vm541_vm0, %v507_v18, 0  ;;  %v510_v49 = vld [vmem:[%s8620_s18 + $0x48] sm:$0xff]  ;;  %v511_v50 = vld [vmem:[%s8620_s18 + $0x50] sm:$0xff] }
  0x17   : > { %v8645_v20 = vand.u32 4294901760, %v1028_v8  ;;  %v8647_v21 = vand.u32 4294901760, %v552_v17  ;;  %v8652_v24 = vsub.f32 %v543_v7, %v8636_v14  ;;  %v8655_v25 = vsub.f32 %v546_v9, %v8638_v15  ;;  %v512_v58 = vld [vmem:[%s8620_s18 + $0x58] sm:$0xff]  ;;  %v513_v59 = vld [vmem:[%s8620_s18 + $0x60] sm:$0xff]  ;;  %v514_v7 = vld [vmem:[%s8620_s18 + $0x68] sm:$0xff] }
  0x18   : > { %v8658_v26 = vsub.f32 %v549_v10, %v8640_v16  ;;  %v8660_v27 = vand.u32 4294901760, %v555_v22  ;;  %v8666_v29 = vand.u32 4294901760, %v558_v23  ;;  %v564_v31 = vsel %vm541_vm0, %v508_v19, 0  ;;  %v515_v12 = vld [vmem:[%s8620_s18 + $0x70] sm:$0xff] }
  0x19   : > { %7287 = vmatprep.subr.mxu0 %v8645_v20  ;;  %v8664_v28 = vsub.f32 %v552_v17, %v8647_v21  ;;  %7542 = vmatprep.subr.mxu1 %v8645_v20  ;;  %v11035_v32 = vand.u32 4294901760, %v8652_v24  ;;  %v11034_v33 = vand.u32 4294901760, %v8655_v25  ;;  %v8681_v38 = vand.u32 4294901760, %v561_v30 }
  0x1a   : > { %v11033_v34 = vand.u32 4294901760, %v8658_v26  ;;  %v8675_v35 = vsub.f32 %v555_v22, %v8660_v27  ;;  %v8679_v37 = vsub.f32 %v558_v23, %v8666_v29  ;;  %v8683_v39 = vand.u32 4294901760, %v564_v31 }
  0x1b   : > { %v11032_v36 = vand.u32 4294901760, %v8664_v28  ;;  %v707_v40 = vsub.f32 %v8652_v24, %v11035_v32  ;;  %v717_v41 = vsub.f32 %v8655_v25, %v11034_v33  ;;  %v8700_v46 = vsub.f32 %v561_v30, %v8681_v38 }
  0x1c   : > { %v727_v42 = vsub.f32 %v8658_v26, %v11033_v34  ;;  %v11029_v43 = vand.u32 4294901760, %v8675_v35  ;;  %v11028_v45 = vand.u32 4294901760, %v8679_v37  ;;  %v8703_v47 = vsub.f32 %v564_v31, %v8683_v39 }
  0x1d   : > { %v737_v44 = vsub.f32 %v8664_v28, %v11032_v36  ;;  %v708_v51 = vand.u32 4294901760, %v707_v40  ;;  %v718_v52 = vand.u32 4294901760, %v717_v41  ;;  %v11027_v56 = vand.u32 4294901760, %v8700_v46  ;;  %v516_v40 = vld [vmem:[%s8620_s18 + $0x78] sm:$0xff]  ;;  %v525_v36 = vld [vmem:[%s8620_s18 + $0xc0] sm:$0xff] }
  0x1e   : > { %v728_v53 = vand.u32 4294901760, %v727_v42  ;;  %v747_v54 = vsub.f32 %v8675_v35, %v11029_v43  ;;  %v757_v55 = vsub.f32 %v8679_v37, %v11028_v45  ;;  %v11025_v57 = vand.u32 4294901760, %v8703_v47 }
  0x1f   : > { %7239 = vmatprep.mubr.f32.mxu0 %v708_v51  ;;  %v738_v60 = vand.u32 4294901760, %v737_v44  ;;  %v567_v61 = vsel %vm541_vm0, %v509_v48, 0  ;;  %v570_v62 = vsel %vm541_vm0, %v510_v49, 0  ;;  %v573_v63 = vsel %vm541_vm0, %v511_v50, 0 }
  0x20   : > { %7240 = vmatmul.mubr.f32.vlgmr.msra.gmra.mrb[0].mxu0 %v718_v52  ;;  %v748_v0 = vand.u32 4294901760, %v747_v54  ;;  %v758_v4 = vand.u32 4294901760, %v757_v55  ;;  %v767_v5 = vsub.f32 %v8700_v46, %v11027_v56  ;;  %v8724_v6 = vand.u32 4294901760, %v567_v61 }
  0x21   : > { %7288 = vmatpush3.msra.mxu0 %v8645_v20  ;;  %7242 = vmatprep.mubr.f32.mxu0 %v728_v53  ;;  %v8728_v8 = vand.u32 4294901760, %v570_v62  ;;  %v8730_v9 = vand.u32 4294901760, %v573_v63  ;;  %v576_v10 = vsel %vm541_vm0, %v512_v58, 0  ;;  %v579_v11 = vsel %vm541_vm0, %v513_v59, 0 }
  0x22   : > { %v768_v13 = vand.u32 4294901760, %v767_v5  ;;  %v777_v17 = vsub.f32 %v8703_v47, %v11025_v57  ;;  %v8739_v18 = vsub.f32 %v567_v61, %v8724_v6  ;;  %v8741_v19 = vand.u32 4294901760, %v576_v10  ;;  %7337 = vmatprep.subr.mxu0 %v8609_v2  ;;  %v517_v61 = vld [vmem:[%s8620_s18 + $0x80] sm:$0xff]  ;;  %v518_v5 = vld [vmem:[%s8620_s18 + $0x88] sm:$0xff] }
  0x23   : > { %v8745_v22 = vsub.f32 %v570_v62, %v8728_v8  ;;  %v8748_v23 = vsub.f32 %v573_v63, %v8730_v9  ;;  %v8750_v30 = vand.u32 4294901760, %v579_v11  ;;  %v582_v31 = vsel %vm541_vm0, %v514_v7, 0 }
  0x24   : > { %11255 = vst [vmem:[#allocation3_spill] sm:$0xff] %v8739_v18  ;;  %7243 = vmatmul.mubr.f32.gmra.mrb[2].mxu0 %v738_v60  ;;  %v11024_v41 = vand.u32 4294901760, %v8739_v18  ;;  %v8756_v42 = vsub.f32 %v576_v10, %v8741_v19  ;;  %v8758_v44 = vand.u32 4294901760, %v582_v31  ;;  %v585_v48 = vsel %vm541_vm0, %v515_v12, 0 }
  0x25   : > { %11256 = vst [vmem:[#allocation4_spill] sm:$0xff] %v8745_v22  ;;  %11257 = vst [vmem:[#allocation5_spill] sm:$0xff] %v8748_v23  ;;  %7245 = vmatprep.mubr.f32.mxu0 %v748_v0  ;;  %v11023_v49 = vand.u32 4294901760, %v8745_v22  ;;  %v11021_v50 = vand.u32 4294901760, %v8748_v23  ;;  %v8764_v51 = vsub.f32 %v579_v11, %v8750_v30  ;;  %v8766_v52 = vand.u32 4294901760, %v585_v48  ;;  %v519_v11 = vld [vmem:[%s8620_s18 + $0x90] sm:$0xff] }
  0x26   : > { %11258 = vst [vmem:[#allocation6_spill] sm:$0xff] %v8756_v42  ;;  %v787_v53 = vsub.f32 %v8739_v18, %v11024_v41  ;;  %v11022_v54 = vand.u32 4294901760, %v8756_v42  ;;  %v8773_v55 = vsub.f32 %v582_v31, %v8758_v44  ;;  %v588_v58 = vsel %vm541_vm0, %v516_v40, 0  ;;  %v520_v31 = vld [vmem:[%s8620_s18 + $0x98] sm:$0xff] }
  0x27   : > { %11259 = vst [vmem:[#allocation7_spill] sm:$0xff] %v8764_v51  ;;  %v11026_v59 = vand.u32 4294901760, %v8764_v51  ;;  %v8778_v60 = vsub.f32 %v585_v48, %v8766_v52  ;;  %v778_v62 = vand.u32 4294901760, %v777_v17  ;;  %v797_v63 = vsub.f32 %v8745_v22, %v11023_v49 }
  0x28   : > { %11260 = vst [vmem:[#allocation8_spill] sm:$0xff] %v8773_v55  ;;  %7246 = vmatmul.mubr.f32.gmra.mrb[4].mxu0 %v758_v4  ;;  %v8784_v0 = vand.u32 4294901760, %v588_v58  ;;  %v788_v7 = vand.u32 4294901760, %v787_v53  ;;  %v807_v10 = vsub.f32 %v8748_v23, %v11021_v50  ;;  %v817_v4 = vsub.f32 %v8756_v42, %v11022_v54  ;;  %v521_v50 = vld [vmem:[%s8620_s18 + $0xa0] sm:$0xff]  ;;  %v530_v42 = vld [vmem:[%s8620_s18 + $0xe8] sm:$0xff]  ;;  %v531_v23 = vld [vmem:[%s8620_s18 + $0xf0] sm:$0xff] }
  0x29   : > { %11261 = vst [vmem:[#allocation9_spill] sm:$0xff] %v8778_v60  ;;  %7248 = vmatprep.mubr.f32.mxu0 %v768_v13  ;;  %v11030_v12 = vand.u32 4294901760, %v8773_v55  ;;  %v591_v17 = vsel %vm541_vm0, %v517_v61, 0  ;;  %v827_v13 = vsub.f32 %v8764_v51, %v11026_v59  ;;  %v11031_v40 = vand.u32 4294901760, %v8778_v60 }
  0x2a   : > { %v8801_v48 = vand.u32 4294901760, %v591_v17  ;;  %v594_v53 = vsel %vm541_vm0, %v518_v5, 0  ;;  %v798_v54 = vand.u32 4294901760, %v797_v63  ;;  %v8806_v49 = vsub.f32 %v588_v58, %v8784_v0  ;;  %v522_v5 = vld [vmem:[%s8620_s18 + $0xa8] sm:$0xff]  ;;  %v523_v63 = vld [vmem:[%s8620_s18 + $0xb0] sm:$0xff] }
  0x2b   : > { %v8808_v61 = vand.u32 4294901760, %v594_v53  ;;  %v597_v41 = vsel %vm541_vm0, %v519_v11, 0  ;;  %v808_v57 = vand.u32 4294901760, %v807_v10  ;;  %v600_v45 = vsel %vm541_vm0, %v520_v31, 0 }
  0x2c   : > { %7249 = vmatmul.mubr.f32.gmra.mrb[6].mxu0 %v778_v62  ;;  %11262 = vst [vmem:[#allocation10_spill] sm:$0xff] %v8806_v49  ;;  %v8812_v59 = vsub.f32 %v591_v17, %v8801_v48  ;;  %v8814_v56 = vand.u32 4294901760, %v597_v41  ;;  %v603_v62 = vsel %vm541_vm0, %v521_v50, 0  ;;  %v818_v58 = vand.u32 4294901760, %v817_v4 }
  0x2d   : > { %11263 = vst [vmem:[#allocation11_spill] sm:$0xff] %v8808_v61  ;;  %7251 = vmatprep.mubr.f32.mxu0 %v788_v7  ;;  %v828_v43 = vand.u32 4294901760, %v827_v13  ;;  %v837_v7 = vsub.f32 %v8773_v55, %v11030_v12  ;;  %v847_v10 = vsub.f32 %v8778_v60, %v11031_v40  ;;  %v11038_v11 = vand.u32 4294901760, %v8806_v49 }
  0x2e   : > { %11264 = vst [vmem:[#allocation12_spill] sm:$0xff] %v8812_v59  ;;  %11265 = vst [vmem:[#allocation13_spill] sm:$0xff] %v8814_v56  ;;  %v8828_v17 = vsub.f32 %v594_v53, %v8808_v61  ;;  %v8830_v50 = vand.u32 4294901760, %v600_v45  ;;  %v606_v31 = vsel %vm541_vm0, %v522_v5, 0  ;;  %v11039_v4 = vand.u32 4294901760, %v8812_v59 }
  0x2f   : > { %v8835_v13 = vsub.f32 %v597_v41, %v8814_v56  ;;  %v8837_v12 = vand.u32 4294901760, %v603_v62  ;;  %v609_v40 = vsel %vm541_vm0, %v523_v63, 0  ;;  %v838_v34 = vand.u32 4294901760, %v837_v7 }
  0x30   : > { %7252 = vmatmul.mubr.f32.gmra.mrb[8].mxu0 %v798_v54  ;;  %11266 = vst [vmem:[#allocation14_spill] sm:$0xff] %v8828_v17  ;;  %11267 = vst [vmem:[#allocation15_spill] sm:$0xff] %v8830_v50  ;;  %v524_v54 = vld [vmem:[%s8620_s18 + $0xb8] sm:$0xff]  ;;  %v848_v53 = vand.u32 4294901760, %v847_v10  ;;  %v8842_v33 = vand.u32 4294901760, %v606_v31  ;;  %v8844_v32 = vand.u32 4294901760, %v609_v40  ;;  %v8851_v5 = vsub.f32 %v600_v45, %v8830_v50 }
  0x31   : > { %7254 = vmatprep.mubr.f32.mxu0 %v808_v57  ;;  %11268 = vst [vmem:[#allocation16_spill] sm:$0xff] %v8835_v13  ;;  %11269 = vst [vmem:[#allocation17_spill] sm:$0xff] %v8837_v12  ;;  %v857_v57 = vsub.f32 %v8806_v49, %v11038_v11  ;;  %v612_v63 = vsel %vm541_vm0, %v524_v54, 0  ;;  %v867_v7 = vsub.f32 %v8812_v59, %v11039_v4  ;;  %v615_v60 = vsel %vm541_vm0, %v525_v36, 0  ;;  %v526_v11 = vld [vmem:[%s8620_s18 + $0xc8] sm:$0xff]  ;;  %v527_v54 = vld [vmem:[%s8620_s18 + $0xd0] sm:$0xff] }
  0x32   : > { %11270 = vst [vmem:[#allocation18_spill] sm:$0xff] %v8842_v33  ;;  %11271 = vst [vmem:[#allocation19_spill] sm:$0xff] %v8844_v32  ;;  %v8864_v41 = vsub.f32 %v606_v31, %v8842_v33  ;;  %v8867_v45 = vsub.f32 %v609_v40, %v8844_v32  ;;  %v11277_v10 = vand.u32 4294901760, %v8828_v17  ;;  %v8876_v59 = vand.u32 4294901760, %v615_v60 }
  0x33   : > { %11272 = vst [vmem:[#allocation20_spill] sm:$0xff] %v8851_v5  ;;  %v858_v4 = vand.u32 4294901760, %v857_v57  ;;  %v868_v31 = vand.u32 4294901760, %v867_v7  ;;  %v11279_v49 = vand.u32 4294901760, %v8835_v13  ;;  %v618_v51 = vsel %vm541_vm0, %v526_v11, 0  ;;  %v528_v57 = vld [vmem:[%s8620_s18 + $0xd8] sm:$0xff] }
  0x34   : > { %7255 = vmatmul.mubr.f32.gmra.mrb[10].mxu0 %v818_v58  ;;  %v8859_v58 = vsub.f32 %v603_v62, %v8837_v12  ;;  %11274 = vst [vmem:[#allocation22_spill] sm:$0xff] %v8864_v41  ;;  %11275 = vst [vmem:[#allocation23_spill] sm:$0xff] %v8867_v45  ;;  %v877_v62 = vsub.f32 %v8828_v17, %v11277_v10  ;;  %v8895_v11 = vsub.f32 %v615_v60, %v8876_v59 }
  0x35   : > { %7257 = vmatprep.mubr.f32.mxu0 %v828_v43  ;;  %v8869_v43 = vand.u32 4294901760, %v612_v63  ;;  %11278 = vst [vmem:[#allocation25_spill] sm:$0xff] %v8876_v59  ;;  %v887_v40 = vsub.f32 %v8835_v13, %v11279_v49  ;;  %v11281_v49 = vand.u32 4294901760, %v8851_v5 }
  0x36   : > { %11273 = vst [vmem:[#allocation21_spill] sm:$0xff] %v8859_v58  ;;  %v878_v7 = vand.u32 4294901760, %v877_v62  ;;  %11282 = vst [vmem:[#allocation27_spill] sm:$0xff] %v8895_v11  ;;  %v11284_v36 = vand.u32 4294901760, %v8859_v58 }
  0x37   : > { %11276 = vst [vmem:[#allocation24_spill] sm:$0xff] %v8869_v43  ;;  %v8888_v17 = vsub.f32 %v612_v63, %v8869_v43  ;;  %v897_v55 = vsub.f32 %v8851_v5, %v11281_v49  ;;  %v888_v10 = vand.u32 4294901760, %v887_v40  ;;  %v11286_v49 = vand.u32 4294901760, %v8864_v41 }
  0x38   : > { %7258 = vmatmul.mubr.f32.gmra.mrb[12].mxu0 %v838_v34  ;;  %v621_v34 = vsel %vm541_vm0, %v527_v54, 0  ;;  %v8897_v54 = vand.u32 4294901760, %v618_v51  ;;  %v907_v63 = vsub.f32 %v8859_v58, %v11284_v36  ;;  %v11287_v5 = vand.u32 4294901760, %v8867_v45 }
  0x39   : > { %7260 = vmatprep.mubr.f32.mxu0 %v848_v53  ;;  %11280 = vst [vmem:[#allocation26_spill] sm:$0xff] %v8888_v17  ;;  %v529_v53 = vld [vmem:[%s8620_s18 + $0xe0] sm:$0xff]  ;;  %v8902_v13 = vand.u32 4294901760, %v621_v34  ;;  %v917_v60 = vsub.f32 %v8864_v41, %v11286_v49  ;;  %v898_v36 = vand.u32 4294901760, %v897_v55  ;;  %v633_v40 = vsel %vm541_vm0, %v531_v23, 0 }
  0x3a   : > { %11283 = vst [vmem:[#allocation28_spill] sm:$0xff] %v8897_v54  ;;  %v627_v62 = vsel %vm541_vm0, %v529_v53, 0  ;;  %v908_v22 = vand.u32 4294901760, %v907_v63  ;;  %v11290_v58 = vand.u32 4294901760, %v8888_v17 }
  0x3b   : > { %11285 = vst [vmem:[#allocation29_spill] sm:$0xff] %v8902_v13  ;;  %v8922_v49 = vsub.f32 %v621_v34, %v8902_v13  ;;  %v8924_v41 = vand.u32 4294901760, %v627_v62  ;;  %v918_v55 = vand.u32 4294901760, %v917_v60 }
  0x3c   : > { %7261 = vmatmul.mubr.f32.gmra.mrb[14].mxu0 %v858_v4  ;;  %v624_v4 = vsel %vm541_vm0, %v528_v57, 0  ;;  %v8917_v57 = vsub.f32 %v618_v51, %v8897_v54  ;;  %v937_v51 = vsub.f32 %v8888_v17, %v11290_v58 }
  0x3d   : > { %7263 = vmatprep.mubr.f32.mxu0 %v868_v31  ;;  %v927_v31 = vsub.f32 %v8867_v45, %v11287_v5  ;;  %v8919_v53 = vand.u32 4294901760, %v624_v4  ;;  %11289 = vst [vmem:[#allocation31_spill] sm:$0xff] %v8924_v41  ;;  %v630_v5 = vsel %vm541_vm0, %v530_v42, 0  ;;  %v11073_v23 = vand.u32 4294901760, %v8922_v49 }
  0x3e   : > { %v11072_v34 = vand.u32 4294901760, %v8917_v57  ;;  %v8939_v42 = vand.u32 4294901760, %v630_v5  ;;  %v8943_v60 = vsub.f32 %v627_v62, %v8924_v41 }
  0x3f   : > { %11288 = vst [vmem:[#allocation30_spill] sm:$0xff] %v8919_v53  ;;  %v928_v45 = vand.u32 4294901760, %v927_v31  ;;  %v8937_v18 = vsub.f32 %v624_v4, %v8919_v53  ;;  %v8945_v31 = vand.u32 4294901760, %v633_v40  ;;  %v967_v17 = vsub.f32 %v8922_v49, %v11073_v23 }
  0x40   : > { %7264 = vmatmul.mubr.f32.gmra.mrb[16].mxu0 %v878_v7  ;;  %v532_v7 = vld [vmem:[%s8620_s18 + $0xf8] sm:$0xff]  ;;  %11293 = vst [vmem:[#allocation33_spill] sm:$0xff] %v8939_v42 }
  0x41   : > { %7266 = vmatprep.mubr.f32.mxu0 %v888_v10  ;;  %v11291_v10 = vand.u32 4294901760, %v8895_v11  ;;  %11292 = vst [vmem:[#allocation32_spill] sm:$0xff] %v8937_v18  ;;  %11294 = vst [vmem:[#allocation34_spill] sm:$0xff] %v8945_v31  ;;  %v636_v58 = vsel %vm541_vm0, %v532_v7, 0  ;;  %v11074_v4 = vand.u32 4294901760, %v8937_v18  ;;  %v11080_v7 = vand.u32 4294901760, %v8943_v60 }
  0x43   : > { %v947_v63 = vsub.f32 %v8895_v11, %v11291_v10  ;;  %v957_v10 = vsub.f32 %v8917_v57, %v11072_v34  ;;  %v8953_v11 = vsub.f32 %v630_v5, %v8939_v42  ;;  %v977_v5 = vsub.f32 %v8937_v18, %v11074_v4 }
  0x44   : > { %7267 = vmatmul.mubr.f32.gmra.mrb[18].mxu0 %v898_v36  ;;  %v938_v36 = vand.u32 4294901760, %v937_v51  ;;  %v987_v23 = vsub.f32 %v8943_v60, %v11080_v7  ;;  %v11306_v7 = vld [vmem:[#allocation16_spill] sm:$0xff] }
  0x45   : > { %7269 = vmatprep.mubr.f32.mxu0 %v908_v22  ;;  %v8955_v22 = vand.u32 4294901760, %v636_v58  ;;  %v948_v62 = vand.u32 4294901760, %v947_v63  ;;  %v958_v51 = vand.u32 4294901760, %v957_v10  ;;  %v11079_v34 = vand.u32 4294901760, %v8953_v11 }
  0x46   : > { %v968_v63 = vand.u32 4294901760, %v967_v17  ;;  %v988_v18 = vand.u32 4294901760, %v987_v23  ;;  %v2517_v23 = vld [vmem:[%s468_s21 + $0x8] sm:$0xff] }
  0x47   : > { %11295 = vst [vmem:[#allocation35_spill] sm:$0xff] %v8955_v22  ;;  %v997_v10 = vsub.f32 %v8953_v11, %v11079_v34 }
  0x48   : > { %7270 = vmatmul.mubr.f32.gmra.mrb[20].mxu0 %v918_v55  ;;  %v8962_v55 = vsub.f32 %v633_v40, %v8945_v31 }
  0x49   : > { %7272 = vmatprep.mubr.f32.mxu0 %v928_v45  ;;  %v8969_v45 = vsub.f32 %v636_v58, %v8955_v22  ;;  %v998_v58 = vand.u32 4294901760, %v997_v10  ;;  %v2530_v10 = vsel %vm541_vm0, %v2517_v23, 0  ;;  %v11299_v23 = vld [vmem:[#allocation6_spill] sm:$0xff] }
  0x4a   : > { %v11078_v40 = vand.u32 4294901760, %v8962_v55 }
  0x4b   : > { %v11077_v4 = vand.u32 4294901760, %v8969_v45 }
  0x4c   : > { %7273 = vmatmul.mubr.f32.gmra.mrb[22].mxu0 %v938_v36  ;;  %v978_v36 = vand.u32 4294901760, %v977_v5  ;;  %v1007_v17 = vsub.f32 %v8962_v55, %v11078_v40 }
  0x4d   : > { %7275 = vmatprep.mubr.f32.mxu0 %v948_v62  ;;  %v1017_v62 = vsub.f32 %v8969_v45, %v11077_v4 }
  0x4f   : > { %v1018_v5 = vand.u32 4294901760, %v1017_v62 }
  0x50   : > { %7276 = vmatmul.mubr.f32.gmra.mrb[24].mxu0 %v958_v51  ;;  %v1008_v51 = vand.u32 4294901760, %v1007_v17  ;;  %v9022_v17 = vand.u32 4294901760, %v2530_v10 }
  0x51   : > { %7278 = vmatprep.mubr.f32.mxu0 %v968_v63 }
  0x52   : > { %v2609_v62 = vsub.f32 %v2530_v10, %v9022_v17  ;;  %v11301_v10 = vld [vmem:[#allocation8_spill] sm:$0xff] }
  0x54   : > { %7279 = vmatmul.mubr.f32.gmra.mrb[26].mxu0 %v978_v36 }
  0x55   : > { %7281 = vmatprep.mubr.f32.mxu0 %v988_v18  ;;  %v2516_v18 = vld [vmem:[%s468_s21] sm:$0xff] }
  0x56   : > { %v2527_v63 = vsel %vm541_vm0, %v2516_v18, 0 }
  0x57   : > { %v2598_v36 = vand.u32 4294901760, %v2527_v63 }
  0x58   : > { %7282 = vmatmul.mubr.f32.gmra.mrb[28].mxu0 %v998_v58 }
  0x59   : > { %7284 = vmatprep.mubr.f32.mxu0 %v1008_v51  ;;  %v2599_v58 = vsub.f32 %v2527_v63, %v2598_v36  ;;  %v11300_v63 = vld [vmem:[#allocation7_spill] sm:$0xff] }
  0x5b   : > { %v2600_v51 = vand.u32 4294901760, %v2599_v58 }
  0x5c   : > { %7285 = vmatmul.mubr.f32.gmra.mrb[30].mxu0 %v1018_v5  ;;  %v2610_v5 = vand.u32 4294901760, %v2609_v62 }
  0x5d   : > { %7289 = vmatprep.mubr.f32.mxu0 %v8636_v14  ;;  %v2601_v4 = vsub.f32 %v2599_v58, %v2600_v51 }
  0x5e   : > { %v2611_v18 = vsub.f32 %v2609_v62, %v2610_v5 }
  0x5f   : > { %v2602_v40 = vand.u32 4294901760, %v2601_v4  ;;  %v11297_v4 = vld [vmem:[#allocation4_spill] sm:$0xff] }
  0x60   : > { %7290 = vmatmul.mubr.f32.vlgmr.msra.gmra.mrb[0].mxu0 %v8638_v15  ;;  %v2612_v34 = vand.u32 4294901760, %v2611_v18  ;;  %v11303_v18 = vld [vmem:[#allocation10_spill] sm:$0xff] }
  0x61   : > { %7338 = vmatpush3.msra.mxu0 %v8609_v2  ;;  %7292 = vmatprep.mubr.f32.mxu0 %v8640_v16 }
  0x62   : > { %7387 = vmatprep.subr.mxu0 %v8605_v1  ;;  %7539 = vmatprep.mubr.f32.mxu1 %v2602_v40  ;;  %v11298_v40 = vld [vmem:[#allocation5_spill] sm:$0xff] }
  0x63   : > { %7540 = vmatmul.mubr.f32.vlgmr.msra.gmra.mrb[0].mxu1 %v2612_v34  ;;  %v11296_v34 = vld [vmem:[#allocation3_spill] sm:$0xff] }
  0x64   : > { %7293 = vmatmul.mubr.f32.gmra.mrb[2].mxu0 %v8647_v21  ;;  %7543 = vmatpush3.msra.mxu1 %v8645_v20 }
  0x65   : > { %7295 = vmatprep.mubr.f32.mxu0 %v8660_v27  ;;  %7544 = vmatprep.mubr.f32.mxu1 %v2598_v36 }
  0x66   : > { %7547 = vmatprep.subr.mxu1 %v8609_v2 }
  0x68   : > { %7296 = vmatmul.mubr.f32.gmra.mrb[4].mxu0 %v8666_v29 }
  0x69   : > { %7298 = vmatprep.mubr.f32.mxu0 %v8681_v38 }
  0x6b   : > { %7545 = vmatmul.mubr.f32.vlgmr.msra.gmra.mrb[0].mxu1 %v9022_v17 }
  0x6c   : > { %7299 = vmatmul.mubr.f32.gmra.mrb[6].mxu0 %v8683_v39  ;;  %7548 = vmatpush3.msra.mxu1 %v8609_v2 }
  0x6d   : > { %7301 = vmatprep.mubr.f32.mxu0 %v8724_v6  ;;  %7549 = vmatprep.mubr.f32.mxu1 %v2599_v58  ;;  %v11302_v58 = vld [vmem:[#allocation9_spill] sm:$0xff] }
  0x6e   : > { %7552 = vmatprep.subr.mxu1 %v8605_v1 }
  0x70   : > { %7302 = vmatmul.mubr.f32.gmra.mrb[8].mxu0 %v8728_v8 }
  0x71   : > { %7304 = vmatprep.mubr.f32.mxu0 %v8730_v9 }
  0x73   : > { %7550 = vmatmul.mubr.f32.vlgmr.msra.gmra.mrb[0].mxu1 %v2609_v62  ;;  %v11304_v62 = vld [vmem:[#allocation12_spill] sm:$0xff] }
  0x74   : > { %7305 = vmatmul.mubr.f32.gmra.mrb[10].mxu0 %v8741_v19  ;;  %7553 = vmatpush3.msra.mxu1 %v8605_v1 }
  0x75   : > { %7307 = vmatprep.mubr.f32.mxu0 %v8750_v30  ;;  %7554 = vmatprep.mubr.f32.mxu1 %v2600_v51  ;;  %v11305_v51 = vld [vmem:[#allocation14_spill] sm:$0xff] }
  0x76   : > { %7557 = vmatprep.subr.mxu1 %v8623_v3 }
  0x78   : > { %7308 = vmatmul.mubr.f32.gmra.mrb[12].mxu0 %v8758_v44 }
  0x79   : > { %7310 = vmatprep.mubr.f32.mxu0 %v8766_v52 }
  0x7b   : > { %7555 = vmatmul.mubr.f32.vlgmr.msra.gmra.mrb[0].mxu1 %v2610_v5  ;;  %v3033_v5 = vld [vmem:[%s485_s25] sm:$0xff] }
  0x7c   : > { %7311 = vmatmul.mubr.f32.gmra.mrb[14].mxu0 %v8784_v0  ;;  %7558 = vmatpush3.msra.mxu1 %v8623_v3 }
  0x7d   : > { %7313 = vmatprep.mubr.f32.mxu0 %v8801_v48  ;;  %7559 = vmatprep.mubr.f32.mxu1 %v2598_v36 }
  0x7e   : > { %7562 = vmatprep.subr.mxu1 %v8605_v1 }
  0x80   : > { %7314 = vmatmul.mubr.f32.gmra.mrb[16].mxu0 %v8808_v61  ;;  %v11312_v61 = vld [vmem:[#allocation27_spill] sm:$0xff] }
  0x81   : > { %7316 = vmatprep.mubr.f32.mxu0 %v8814_v56  ;;  %v11311_v56 = vld [vmem:[#allocation26_spill] sm:$0xff] }
  0x83   : > { %7560 = vmatmul.mubr.f32.vlgmr.msra.gmra.mrb[0].mxu1 %v9022_v17 }
  0x84   : > { %7317 = vmatmul.mubr.f32.gmra.mrb[18].mxu0 %v8830_v50  ;;  %7563 = vmatpush3.msra.mxu1 %v8605_v1 }
  0x85   : > { %7319 = vmatprep.mubr.f32.mxu0 %v8837_v12  ;;  %7564 = vmatprep.mubr.f32.mxu1 %v2598_v36  ;;  %v11310_v12 = vld [vmem:[#allocation23_spill] sm:$0xff] }
  0x86   : > { %7567 = vmatprep.subr.mxu1 %v8605_v1 }
  0x88   : > { %7320 = vmatmul.mubr.f32.gmra.mrb[20].mxu0 %v8842_v33 }
  0x89   : > { %7322 = vmatprep.mubr.f32.mxu0 %v8844_v32  ;;  %v11309_v32 = vld [vmem:[#allocation22_spill] sm:$0xff] }
  0x8b   : > { %7565 = vmatmul.mubr.f32.vlgmr.msra.gmra.mrb[0].mxu1 %v9022_v17  ;;  %v11329_v17 = vand.u32 4294901760, %v11303_v18 }
  0x8c   : > { %7323 = vmatmul.mubr.f32.gmra.mrb[22].mxu0 %v8869_v43  ;;  %7568 = vmatpush3.msra.mxu1 %v8605_v1 }
  0x8d   : > { %7325 = vmatprep.mubr.f32.mxu0 %v8876_v59  ;;  %7572 = vmatprep.subr.mxu1 %v8645_v20 }
  0x90   : > { %7326 = vmatmul.mubr.f32.gmra.mrb[24].mxu0 %v8897_v54 }
  0x91   : > { %7328 = vmatprep.mubr.f32.mxu0 %v8902_v13  ;;  %v11308_v13 = vld [vmem:[#allocation21_spill] sm:$0xff] }
  0x94   : > { %7329 = vmatmul.mubr.f32.gmra.mrb[26].mxu0 %v8919_v53 }
  0x95   : > { %7331 = vmatprep.mubr.f32.mxu0 %v8924_v41 }
  0x98   : > { %7332 = vmatmul.mubr.f32.gmra.mrb[28].mxu0 %v8939_v42  ;;  %v11307_v42 = vld [vmem:[#allocation20_spill] sm:$0xff] }
  0x99   : > { %7334 = vmatprep.mubr.f32.mxu0 %v8945_v31  ;;  %v3044_v31 = vsel %vm541_vm0, %v3033_v5, 0 }
  0x9a   : > { %v3115_v41 = vand.u32 4294901760, %v3044_v31 }
  0x9c   : > { %7335 = vmatmul.mubr.f32.gmra.mrb[30].mxu0 %v8955_v22  ;;  %v3034_v22 = vld [vmem:[%s485_s25 + $0x8] sm:$0xff]  ;;  %v3116_v59 = vsub.f32 %v3044_v31, %v3115_v41  ;;  %v11313_v31 = vld [vmem:[#allocation32_spill] sm:$0xff] }
  0x9d   : > { %7339 = vmatprep.mubr.f32.mxu0 %v8652_v24  ;;  %v3047_v53 = vsel %vm541_vm0, %v3034_v22, 0 }
  0x9e   : > { %v3125_v54 = vand.u32 4294901760, %v3047_v53  ;;  %v3117_v33 = vand.u32 4294901760, %v3116_v59 }
  0xa0   : > { %7340 = vmatmul.mubr.f32.vlgmr.msra.gmra.mrb[0].mxu0 %v8655_v25  ;;  %v3126_v43 = vsub.f32 %v3047_v53, %v3125_v54  ;;  %v3118_v5 = vsub.f32 %v3116_v59, %v3117_v33 }
  0xa1   : > { %7388 = vmatpush3.msra.mxu0 %v8605_v1  ;;  %7342 = vmatprep.mubr.f32.mxu0 %v8658_v26 }
  0xa2   : > { %7437 = vmatprep.subr.mxu0 %v8623_v3  ;;  %v3127_v36 = vand.u32 4294901760, %v3126_v43  ;;  %v3119_v22 = vand.u32 4294901760, %v3118_v5  ;;  %v11356_v5 = vld [vmem:[#allocation30_spill] sm:$0xff] }
  0xa4   : > { %7343 = vmatmul.mubr.f32.gmra.mrb[2].mxu0 %v8664_v28  ;;  %v3128_v50 = vsub.f32 %v3126_v43, %v3127_v36  ;;  %7569 = vmatprep.mubr.f32.mxu1 %v3119_v22  ;;  %v11357_v22 = vld [vmem:[#allocation31_spill] sm:$0xff] }
  0xa5   : > { %7345 = vmatprep.mubr.f32.mxu0 %v8675_v35 }
  0xa6   : > { %v3129_v53 = vand.u32 4294901760, %v3128_v50  ;;  %v11315_v50 = vand.u32 4294901760, %v8655_v25  ;;  %v11319_v25 = vand.u32 4294901760, %v8679_v37 }
  0xa8   : > { %7346 = vmatmul.mubr.f32.gmra.mrb[4].mxu0 %v8679_v37  ;;  %7570 = vmatmul.mubr.f32.vlgmr.msra.gmra.mrb[2].mxu1 %v3129_v53  ;;  %v11325_v37 = vand.u32 4294901760, %v11299_v23  ;;  %v11358_v53 = vld [vmem:[#allocation33_spill] sm:$0xff] }
  0xa9   : > { %7348 = vmatprep.mubr.f32.mxu0 %v8700_v46  ;;  %7573 = vmatpush3.msra.mxu1 %v8645_v20  ;;  %v11314_v20 = vand.u32 4294901760, %v8652_v24  ;;  %v11318_v24 = vand.u32 4294901760, %v8675_v35  ;;  %v11323_v35 = vand.u32 4294901760, %v11297_v4 }
  0xaa   : > { %7574 = vmatprep.mubr.f32.mxu1 %v3115_v41  ;;  %7577 = vmatprep.subr.mxu1 %v8609_v2 }
  0xac   : > { %7349 = vmatmul.mubr.f32.gmra.mrb[6].mxu0 %v8703_v47 }
  0xad   : > { %7351 = vmatprep.mubr.f32.mxu0 %v11296_v34 }
  0xb0   : > { %7352 = vmatmul.mubr.f32.gmra.mrb[8].mxu0 %v11297_v4  ;;  %7575 = vmatmul.mubr.f32.vlgmr.msra.gmra.mrb[2].mxu1 %v3125_v54  ;;  %v11332_v4 = vand.u32 4294901760, %v11306_v7 }
  0xb1   : > { %7354 = vmatprep.mubr.f32.mxu0 %v11298_v40  ;;  %7578 = vmatpush3.msra.mxu1 %v8609_v2  ;;  %v11316_v2 = vand.u32 4294901760, %v8658_v26  ;;  %v11320_v26 = vand.u32 4294901760, %v8700_v46  ;;  %v11326_v46 = vand.u32 4294901760, %v11300_v63 }
  0xb2   : > { %7579 = vmatprep.mubr.f32.mxu1 %v3116_v59  ;;  %7582 = vmatprep.subr.mxu1 %v8605_v1  ;;  %v11317_v59 = vand.u32 4294901760, %v8664_v28  ;;  %v11322_v28 = vand.u32 4294901760, %v11296_v34  ;;  %v11330_v34 = vand.u32 4294901760, %v11304_v62 }
  0xb4   : > { %7355 = vmatmul.mubr.f32.gmra.mrb[10].mxu0 %v11299_v23  ;;  %v11335_v23 = vand.u32 4294901760, %v11309_v32 }
  0xb5   : > { %7357 = vmatprep.mubr.f32.mxu0 %v11300_v63  ;;  %v11336_v63 = vand.u32 4294901760, %v11310_v12 }
  0xb8   : > { %7358 = vmatmul.mubr.f32.gmra.mrb[12].mxu0 %v11301_v10  ;;  %7580 = vmatmul.mubr.f32.vlgmr.msra.gmra.mrb[2].mxu1 %v3126_v43  ;;  %v11328_v43 = vand.u32 4294901760, %v11302_v58 }
  0xb9   : > { %7360 = vmatprep.mubr.f32.mxu0 %v11302_v58  ;;  %7583 = vmatpush3.msra.mxu1 %v8605_v1  ;;  %v11338_v58 = vand.u32 4294901760, %v11312_v61 }
  0xba   : > { %7584 = vmatprep.mubr.f32.mxu1 %v3117_v33  ;;  %7587 = vmatprep.subr.mxu1 %v8623_v3  ;;  %v11321_v33 = vand.u32 4294901760, %v8703_v47  ;;  %v11327_v47 = vand.u32 4294901760, %v11301_v10  ;;  %v11337_v10 = vand.u32 4294901760, %v11311_v56 }
  0xbc   : > { %7361 = vmatmul.mubr.f32.gmra.mrb[14].mxu0 %v11303_v18  ;;  %v11352_v18 = vld [vmem:[#allocation24_spill] sm:$0xff] }
  0xbd   : > { %7363 = vmatprep.mubr.f32.mxu0 %v11304_v62  ;;  %v11353_v62 = vld [vmem:[#allocation25_spill] sm:$0xff] }
  0xc0   : > { %7364 = vmatmul.mubr.f32.gmra.mrb[16].mxu0 %v11305_v51  ;;  %7585 = vmatmul.mubr.f32.vlgmr.msra.gmra.mrb[2].mxu1 %v3127_v36  ;;  %v11355_v36 = vld [vmem:[#allocation29_spill] sm:$0xff] }
  0xc1   : > { %7366 = vmatprep.mubr.f32.mxu0 %v11306_v7  ;;  %7588 = vmatpush3.msra.mxu1 %v8623_v3  ;;  %v11339_v7 = vand.u32 4294901760, %v8917_v57 }
  0xc2   : > { %7589 = vmatprep.mubr.f32.mxu1 %v3115_v41  ;;  %7592 = vmatprep.subr.mxu1 %v8605_v1 }
  0xc4   : > { %7367 = vmatmul.mubr.f32.gmra.mrb[18].mxu0 %v11307_v42 }
  0xc5   : > { %7369 = vmatprep.mubr.f32.mxu0 %v11308_v13 }
  0xc8   : > { %7370 = vmatmul.mubr.f32.gmra.mrb[20].mxu0 %v11309_v32  ;;  %7590 = vmatmul.mubr.f32.vlgmr.msra.gmra.mrb[2].mxu1 %v3125_v54  ;;  %v11342_v32 = vand.u32 4294901760, %v8943_v60 }
  0xc9   : > { %7372 = vmatprep.mubr.f32.mxu0 %v11310_v12  ;;  %7593 = vmatpush3.msra.mxu1 %v8605_v1  ;;  %v11343_v12 = vand.u32 4294901760, %v8953_v11 }
  0xca   : > { %7594 = vmatprep.mubr.f32.mxu1 %v3115_v41  ;;  %v11331_v41 = vand.u32 4294901760, %v11305_v51  ;;  %v11354_v51 = vld [vmem:[#allocation28_spill] sm:$0xff] }
  0xcc   : > { %7373 = vmatmul.mubr.f32.gmra.mrb[22].mxu0 %v11311_v56  ;;  %v11344_v56 = vand.u32 4294901760, %v8962_v55 }
  0xcd   : > { %7375 = vmatprep.mubr.f32.mxu0 %v11312_v61  ;;  %v11345_v61 = vand.u32 4294901760, %v8969_v45 }
  0xd0   : > { %7376 = vmatmul.mubr.f32.gmra.mrb[24].mxu0 %v8917_v57  ;;  %7595 = vmatmul.mubr.f32.vlgmr.msra.gmra.mrb[2].mxu1 %v3125_v54  ;;  %v11333_v54 = vand.u32 4294901760, %v11307_v42  ;;  %v11340_v42 = vand.u32 4294901760, %v8922_v49  ;;  %v11347_v57 = vld [vmem:[#allocation13_spill] sm:$0xff] }
  0xd1   : > { %7378 = vmatprep.mubr.f32.mxu0 %v8922_v49  ;;  %v11348_v49 = vld [vmem:[#allocation15_spill] sm:$0xff] }
  0xd4   : > { %7379 = vmatmul.mubr.f32.gmra.mrb[26].mxu0 %v11313_v31 }
  0xd5   : > { %7381 = vmatprep.mubr.f32.mxu0 %v8943_v60  ;;  %v11349_v60 = vld [vmem:[#allocation17_spill] sm:$0xff] }
  0xd8   : > { %7382 = vmatmul.mubr.f32.gmra.mrb[28].mxu0 %v8953_v11  ;;  %v8533_v11 = vmov 0.0  }
  0xd9   : > { %7384 = vmatprep.mubr.f32.mxu0 %v8962_v55  ;;  %3569 = vst.msk [vmem:[#allocation2 + $0x11] sm:$0x1] %vm3550_vm1, %v8533_v11  ;;  %3551 = vst.msk [vmem:[#allocation2] sm:$0x1] %vm3550_vm1, %v8533_v11  ;;  %v11350_v55 = vld [vmem:[#allocation18_spill] sm:$0xff] }
  0xda   : > { %3552 = vst.msk [vmem:[#allocation2 + $0x18] sm:$0x1] %vm3550_vm1, %v8533_v11  ;;  %3553 = vst.msk [vmem:[#allocation2 + $0x30] sm:$0x1] %vm3550_vm1, %v8533_v11 }
  0xdb   : > { %3554 = vst.msk [vmem:[#allocation2 + $0x48] sm:$0x1] %vm3550_vm1, %v8533_v11  ;;  %3555 = vst.msk [vmem:[#allocation2 + $0x60] sm:$0x1] %vm3550_vm1, %v8533_v11 }
  0xdc   : > { %7385 = vmatmul.mubr.f32.gmra.mrb[30].mxu0 %v8969_v45  ;;  %3556 = vst.msk [vmem:[#allocation2 + $0x78] sm:$0x1] %vm3550_vm1, %v8533_v11  ;;  %3557 = vst.msk [vmem:[#allocation2 + $0x90] sm:$0x1] %vm3550_vm1, %v8533_v11  ;;  %v11351_v45 = vld [vmem:[#allocation19_spill] sm:$0xff] }
  0xdd   : > { %7389 = vmatprep.mubr.f32.mxu0 %v11314_v20  ;;  %3558 = vst.msk [vmem:[#allocation2 + $0xa8] sm:$0x1] %vm3550_vm1, %v8533_v11  ;;  %3559 = vst.msk [vmem:[#allocation2 + $0xc0] sm:$0x1] %vm3550_vm1, %v8533_v11  ;;  %v11360_v20 = vld [vmem:[#allocation35_spill] sm:$0xff] }
  0xde   : > { %3560 = vst.msk [vmem:[#allocation2 + $0xd8] sm:$0x1] %vm3550_vm1, %v8533_v11  ;;  %3561 = vst.msk [vmem:[#allocation2 + $0xf0] sm:$0x1] %vm3550_vm1, %v8533_v11 }
  0xdf   : > { %3562 = vst.msk [vmem:[#allocation2 + $0x108] sm:$0x1] %vm3550_vm1, %v8533_v11  ;;  %3563 = vst.msk [vmem:[#allocation2 + $0x120] sm:$0x1] %vm3550_vm1, %v8533_v11 }
  0xe0   : > { %7390 = vmatmul.mubr.f32.vlgmr.msra.gmra.mrb[0].mxu0 %v11315_v50  ;;  %3564 = vst.msk [vmem:[#allocation2 + $0x138] sm:$0x1] %vm3550_vm1, %v8533_v11  ;;  %3565 = vst.msk [vmem:[#allocation2 + $0x150] sm:$0x1] %vm3550_vm1, %v8533_v11 }
  0xe1   : > { %7438 = vmatpush3.msra.mxu0 %v8623_v3  ;;  %7392 = vmatprep.mubr.f32.mxu0 %v11316_v2  ;;  %v11324_v3 = vand.u32 4294901760, %v11298_v40  ;;  %v11334_v40 = vand.u32 4294901760, %v11308_v13  ;;  %v11341_v13 = vand.u32 4294901760, %v11313_v31  ;;  %3566 = vst.msk [vmem:[#allocation2 + $0x168] sm:$0x1] %vm3550_vm1, %v8533_v11  ;;  %v11359_v31 = vld [vmem:[#allocation34_spill] sm:$0xff] }
  0xe2   : > { %7487 = vmatprep.subr.mxu0 %v8605_v1  ;;  %3567 = vst.msk [vmem:[#allocation2 + $0x180] sm:$0x1] %vm3550_vm1, %v8533_v11  ;;  %3568 = vst.msk [vmem:[#allocation2 + $0x198] sm:$0x1] %vm3550_vm1, %v8533_v11 }
  0xe3   : > { %3570 = vst.msk [vmem:[#allocation2 + $0x29] sm:$0x1] %vm3550_vm1, %v8533_v11  ;;  %3571 = vst.msk [vmem:[#allocation2 + $0x41] sm:$0x1] %vm3550_vm1, %v8533_v11 }
  0xe4   : > { %7393 = vmatmul.mubr.f32.gmra.mrb[2].mxu0 %v11317_v59  ;;  %3572 = vst.msk [vmem:[#allocation2 + $0x59] sm:$0x1] %vm3550_vm1, %v8533_v11  ;;  %3573 = vst.msk [vmem:[#allocation2 + $0x71] sm:$0x1] %vm3550_vm1, %v8533_v11 }
  0xe5   : > { %7395 = vmatprep.mubr.f32.mxu0 %v11318_v24  ;;  %3574 = vst.msk [vmem:[#allocation2 + $0x89] sm:$0x1] %vm3550_vm1, %v8533_v11  ;;  %3575 = vst.msk [vmem:[#allocation2 + $0xa1] sm:$0x1] %vm3550_vm1, %v8533_v11 }
  0xe6   : > { %3576 = vst.msk [vmem:[#allocation2 + $0xb9] sm:$0x1] %vm3550_vm1, %v8533_v11  ;;  %3577 = vst.msk [vmem:[#allocation2 + $0xd1] sm:$0x1] %vm3550_vm1, %v8533_v11 }
  0xe7   : > { %3578 = vst.msk [vmem:[#allocation2 + $0xe9] sm:$0x1] %vm3550_vm1, %v8533_v11  ;;  %3579 = vst.msk [vmem:[#allocation2 + $0x101] sm:$0x1] %vm3550_vm1, %v8533_v11 }
  0xe8   : > { %7396 = vmatmul.mubr.f32.gmra.mrb[4].mxu0 %v11319_v25  ;;  %3580 = vst.msk [vmem:[#allocation2 + $0x119] sm:$0x1] %vm3550_vm1, %v8533_v11  ;;  %3581 = vst.msk [vmem:[#allocation2 + $0x131] sm:$0x1] %vm3550_vm1, %v8533_v11  ;;  %v9273_v25 = vld [vmem:[%s11018_s7] sm:$0xff] }
  0xe9   : > { %7398 = vmatprep.mubr.f32.mxu0 %v11320_v26  ;;  %3582 = vst.msk [vmem:[#allocation2 + $0x149] sm:$0x1] %vm3550_vm1, %v8533_v11  ;;  %3583 = vst.msk [vmem:[#allocation2 + $0x161] sm:$0x1] %vm3550_vm1, %v8533_v11  ;;  %v9278_v26 = vld [vmem:[%s11018_s7 + $0x8] sm:$0xff] }
  0xea   : > { %3584 = vst.msk [vmem:[#allocation2 + $0x179] sm:$0x1] %vm3550_vm1, %v8533_v11  ;;  %3585 = vst.msk [vmem:[#allocation2 + $0x191] sm:$0x1] %vm3550_vm1, %v8533_v11 }
  0xeb   : > { %3586 = vst.msk [vmem:[#allocation2 + $0x1a9] sm:$0x1] %vm3550_vm1, %v8533_v11 }
  0xec   : > { %7399 = vmatmul.mubr.f32.gmra.mrb[6].mxu0 %v11321_v33  ;;  %v11119_v33 = vand.u32 4294901760, %v9273_v25 }
  0xed   : > { %7401 = vmatprep.mubr.f32.mxu0 %v11322_v28  ;;  %v11118_v28 = vand.u32 4294901760, %v9278_v26 }
  0xf0   : > { %7402 = vmatmul.mubr.f32.gmra.mrb[8].mxu0 %v11323_v35  ;;  %v9288_v35 = vpack.c.bf16 %v11118_v28, %v11119_v33 }
  0xf1   : > { %7404 = vmatprep.mubr.f32.mxu0 %v11324_v3  ;;  %v9293_v3 = vld [vmem:[%s11018_s7 + $0x10] sm:$0xff] }
  0xf2   : > { %8029 = vmatprep.subr.bf16.mxu1 %v9288_v35 }
  0xf3   : > { %8032 = vmatpush3.bf16.msra.mxu1 %v9288_v35 }
  0xf4   : > { %7405 = vmatmul.mubr.f32.gmra.mrb[10].mxu0 %v11325_v37  ;;  %v9298_v37 = vld [vmem:[%s11018_s7 + $0x18] sm:$0xff] }
  0xf5   : > { %7407 = vmatprep.mubr.f32.mxu0 %v11326_v46  ;;  %v11117_v46 = vand.u32 4294901760, %v9293_v3 }
  0xf8   : > { %7408 = vmatmul.mubr.f32.gmra.mrb[12].mxu0 %v11327_v47  ;;  %v11115_v47 = vand.u32 4294901760, %v9298_v37 }
  0xf9   : > { %7410 = vmatprep.mubr.f32.mxu0 %v11328_v43 }
  0xfa   : > { %v9310_v43 = vpack.c.bf16 %v11115_v47, %v11117_v46 }
  0xfc   : > { %7411 = vmatmul.mubr.f32.gmra.mrb[14].mxu0 %v11329_v17  ;;  %11361 = vst [vmem:[#allocation3_spill] sm:$0xff] %v9310_v43  ;;  %v9315_v17 = vld [vmem:[%s11018_s7 + $0x20] sm:$0xff]  ;;  %8030 = vmatprep.subr.bf16.mxu1 %v9310_v43 }
  0xfd   : > { %7413 = vmatprep.mubr.f32.mxu0 %v11330_v34  ;;  %v9320_v34 = vld [vmem:[%s11018_s7 + $0x28] sm:$0xff]  ;;  %8033 = vmatpush3.bf16.msra.mxu1 %v9310_v43 }
 0x100   : > { %7414 = vmatmul.mubr.f32.gmra.mrb[16].mxu0 %v11331_v41  ;;  %v11114_v41 = vand.u32 4294901760, %v9315_v17 }
 0x101   : > { %7416 = vmatprep.mubr.f32.mxu0 %v11332_v4  ;;  %v11113_v4 = vand.u32 4294901760, %v9320_v34 }
 0x104   : > { %7417 = vmatmul.mubr.f32.gmra.mrb[18].mxu0 %v11333_v54  ;;  %v9332_v54 = vpack.c.bf16 %v11113_v4, %v11114_v41 }
 0x105   : > { %7419 = vmatprep.mubr.f32.mxu0 %v11334_v40  ;;  %v3621_v40 = vlaneseq }
 0x106   : > { %11362 = vst [vmem:[#allocation4_spill] sm:$0xff] %v9332_v54  ;;  %8031 = vmatprep.subr.bf16.mxu1 %v9332_v54 }
 0x107   : > { %8034 = vmatpush3.bf16.msra.mxu1 %v9332_v54 }
 0x108   : > { %7420 = vmatmul.mubr.f32.gmra.mrb[20].mxu0 %v11335_v23  ;;  %v9338_v23 = vshrl.u32 %v3621_v40, 7 }
 0x109   : > { %7422 = vmatprep.mubr.f32.mxu0 %v11336_v63 }
 0x10a   : > { %v3723_v63 = vsub.s32 1, %v9338_v23 }
 0x10c   : > { %7423 = vmatmul.mubr.f32.gmra.mrb[22].mxu0 %v11337_v10  ;;  %v3623_v10 = vsub.s32 0, %v9338_v23 }
 0x10d   : > { %7425 = vmatprep.mubr.f32.mxu0 %v11338_v58  ;;  %v3587_v58 = vld [vmem:[%s11016_s5] sm:$0xff] }
 0x110   : > { %7426 = vmatmul.mubr.f32.gmra.mrb[24].mxu0 %v11339_v7  ;;  %v9345_v7 = vrot.slane %v3587_v58, %v3723_v63 }
 0x111   : > { %7428 = vmatprep.mubr.f32.mxu0 %v11340_v42  ;;  %v9347_v42 = vrot.slane %v3587_v58, %v3623_v10 }
 0x114   : > { %7429 = vmatmul.mubr.f32.gmra.mrb[26].mxu0 %v11341_v13 }
 0x115   : > { %7431 = vmatprep.mubr.f32.mxu0 %v11342_v32  ;;  %v3823_v32 = vsub.s32 2, %v9338_v23 }
 0x118   : > { %7432 = vmatmul.mubr.f32.gmra.mrb[28].mxu0 %v11343_v12 }
 0x119   : > { %7434 = vmatprep.mubr.f32.mxu0 %v11344_v56 }
 0x11c   : > { %7435 = vmatmul.mubr.f32.gmra.mrb[30].mxu0 %v11345_v61 }
 0x11d   : > { %7439 = vmatprep.mubr.f32.mxu0 %v8636_v14 }
 0x120   : > { %7440 = vmatmul.mubr.f32.vlgmr.msra.gmra.mrb[0].mxu0 %v8638_v15 }
 0x121   : > { %7488 = vmatpush3.msra.mxu0 %v8605_v1  ;;  %7442 = vmatprep.mubr.f32.mxu0 %v8640_v16  ;;  %v11346_v1 = vld [vmem:[#allocation11_spill] sm:$0xff] }
 0x122   : > { %7958 = vmatprep.subr.bf16.mxu0 %v9288_v35 }
 0x124   : > { %7443 = vmatmul.mubr.f32.gmra.mrb[2].mxu0 %v8647_v21 }
 0x125   : > { %7445 = vmatprep.mubr.f32.mxu0 %v8660_v27 }
 0x128   : > { %7446 = vmatmul.mubr.f32.gmra.mrb[4].mxu0 %v8666_v29 }
 0x129   : > { %7448 = vmatprep.mubr.f32.mxu0 %v8681_v38 }
 0x12c   : > { %7449 = vmatmul.mubr.f32.gmra.mrb[6].mxu0 %v8683_v39 }
 0x12d   : > { %7451 = vmatprep.mubr.f32.mxu0 %v8724_v6 }
 0x130   : > { %7452 = vmatmul.mubr.f32.gmra.mrb[8].mxu0 %v8728_v8 }
 0x131   : > { %7454 = vmatprep.mubr.f32.mxu0 %v8730_v9 }
 0x134   : > { %7455 = vmatmul.mubr.f32.gmra.mrb[10].mxu0 %v8741_v19 }
 0x135   : > { %7457 = vmatprep.mubr.f32.mxu0 %v8750_v30 }
 0x138   : > { %7458 = vmatmul.mubr.f32.gmra.mrb[12].mxu0 %v8758_v44 }
 0x139   : > { %7460 = vmatprep.mubr.f32.mxu0 %v8766_v52 }
 0x13c   : > { %7461 = vmatmul.mubr.f32.gmra.mrb[14].mxu0 %v8784_v0 }
 0x13d   : > { %7463 = vmatprep.mubr.f32.mxu0 %v8801_v48 }
 0x140   : > { %7464 = vmatmul.mubr.f32.gmra.mrb[16].mxu0 %v11346_v1 }
 0x141   : > { %7466 = vmatprep.mubr.f32.mxu0 %v11347_v57 }
 0x144   : > { %7467 = vmatmul.mubr.f32.gmra.mrb[18].mxu0 %v11348_v49 }
 0x145   : > { %7469 = vmatprep.mubr.f32.mxu0 %v11349_v60 }
 0x148   : > { %7470 = vmatmul.mubr.f32.gmra.mrb[20].mxu0 %v11350_v55 }
 0x149   : > { %7472 = vmatprep.mubr.f32.mxu0 %v11351_v45 }
 0x14c   : > { %7473 = vmatmul.mubr.f32.gmra.mrb[22].mxu0 %v11352_v18 }
 0x14d   : > { %7475 = vmatprep.mubr.f32.mxu0 %v11353_v62 }
 0x150   : > { %7476 = vmatmul.mubr.f32.gmra.mrb[24].mxu0 %v11354_v51 }
 0x151   : > { %7478 = vmatprep.mubr.f32.mxu0 %v11355_v36 }
 0x154   : > { %7479 = vmatmul.mubr.f32.gmra.mrb[26].mxu0 %v11356_v5 }
 0x155   : > { %7481 = vmatprep.mubr.f32.mxu0 %v11357_v22 }
 0x158   : > { %7482 = vmatmul.mubr.f32.gmra.mrb[28].mxu0 %v11358_v53 }
 0x159   : > { %7484 = vmatprep.mubr.f32.mxu0 %v11359_v31 }
 0x15c   : > { %7485 = vmatmul.mubr.f32.gmra.mrb[30].mxu0 %v11360_v20 }
 0x15d   : > { %7489 = vmatprep.mubr.f32.mxu0 %v8636_v14  ;;  %v9261_v14 = vld [vmem:[%s11015_s4] ss:$0 sm:$0xff] }
 0x160   : > { %7490 = vmatmul.mubr.f32.vlgmr.msra.gmra.mrb[0].mxu0 %v8638_v15  ;;  %v7566_v15 = vpop.f32.mrb[0].mxu1 }
 0x161   : > { %7492 = vmatprep.mubr.f32.mxu0 %v8640_v16  ;;  %v8067_v16 = vadd.f32 %v7566_v15, %v9261_v14  ;;  %7960 = vmatpush3.bf16.msra.mxu0 %v9288_v35 }
 0x162   : > { %7962 = vmatprep.subr.bf16.mxu0 %v9310_v43 }
 0x164   : > { %7493 = vmatmul.mubr.f32.gmra.mrb[2].mxu0 %v8647_v21  ;;  %v3011_v21 = vpop.f32.mrb[1].mxu1 }
 0x165   : > { %7495 = vmatprep.mubr.f32.mxu0 %v8660_v27  ;;  %v8068_v27 = vadd.f32 %v9261_v14, %v3011_v21  ;;  %7964 = vmatpush3.bf16.msra.mxu0 %v9310_v43 }
 0x166   : > { %7966 = vmatprep.subr.bf16.mxu0 %v9332_v54 }
 0x168   : > { %7496 = vmatmul.mubr.f32.gmra.mrb[4].mxu0 %v8666_v29  ;;  %v3022_v29 = vmax.f32 %v8067_v16, 0.0 }
 0x169   : > { %7498 = vmatprep.mubr.f32.mxu0 %v8681_v38  ;;  %v3021_v38 = vmax.f32 %v8068_v27, 0.0  ;;  %7968 = vmatpush3.bf16.msra.mxu0 %v9332_v54 }
 0x16c   : > { %7499 = vmatmul.mubr.f32.gmra.mrb[6].mxu0 %v8683_v39  ;;  %v3024_v39 = vmin.f32 %v3022_v29, 6.0  ;;  %v4023_v29 = vsub.s32 4, %v9338_v23 }
 0x16d   : > { %7501 = vmatprep.mubr.f32.mxu0 %v8724_v6  ;;  %v3023_v6 = vmin.f32 %v3021_v38, 6.0  ;;  %v4123_v38 = vsub.s32 5, %v9338_v23 }
 0x16e   : > { %v9372_v63 = vrot.slane %v3587_v58, %v4023_v29 }
 0x16f   : > { %v9374_v10 = vrot.slane %v3587_v58, %v4123_v38 }
 0x170   : > { %7502 = vmatmul.mubr.f32.gmra.mrb[8].mxu0 %v8728_v8  ;;  %v3029_v8 = vmul.f32 0.0, %v3024_v39 }
 0x171   : > { %7504 = vmatprep.mubr.f32.mxu0 %v8730_v9  ;;  %v3028_v9 = vmul.f32 0.0, %v3023_v6 }
 0x172   : > { %3031 = vst.msk [vmem:[#allocation2 + $0x9] sm:$0xff] %vm2482_vm2, %v3029_v8 }
 0x173   : > { %3030 = vst.msk [vmem:[#allocation2 + $0x1] sm:$0xff] %vm2482_vm2, %v3028_v9 }
 0x174   : > { %7505 = vmatmul.mubr.f32.gmra.mrb[10].mxu0 %v8741_v19 }
 0x175   : > { %7507 = vmatprep.mubr.f32.mxu0 %v8750_v30 }
 0x178   : > { %7508 = vmatmul.mubr.f32.gmra.mrb[12].mxu0 %v8758_v44 }
 0x179   : > { %7510 = vmatprep.mubr.f32.mxu0 %v8766_v52  ;;  %v3790_v15 = vld [vmem:[#allocation2 + $0xa] sm:$0xff] }
 0x17a   : > { %v3589_v61 = vld [vmem:[#allocation2] sm:$0xff] }
 0x17b   : > { %v3689_v11 = vld [vmem:[#allocation2 + $0x1] sm:$0xff] }
 0x17c   : > { %7511 = vmatmul.mubr.f32.gmra.mrb[14].mxu0 %v8784_v0 }
 0x17d   : > { %7513 = vmatprep.mubr.f32.mxu0 %v8801_v48 }
 0x180   : > { %7514 = vmatmul.mubr.f32.gmra.mrb[16].mxu0 %v11346_v1  ;;  %v3690_v1 = vld [vmem:[#allocation2 + $0x9] sm:$0xff] }
 0x181   : > { %7516 = vmatprep.mubr.f32.mxu0 %v11347_v57  ;;  %v3590_v57 = vld [vmem:[#allocation2 + $0x8] sm:$0xff] }
 0x184   : > { %7517 = vmatmul.mubr.f32.gmra.mrb[18].mxu0 %v11348_v49 }
 0x185   : > { %7519 = vmatprep.mubr.f32.mxu0 %v11349_v60 }
 0x188   : > { %7520 = vmatmul.mubr.f32.gmra.mrb[20].mxu0 %v11350_v55 }
 0x189   : > { %7522 = vmatprep.mubr.f32.mxu0 %v11351_v45 }
 0x18c   : > { %7523 = vmatmul.mubr.f32.gmra.mrb[22].mxu0 %v11352_v18  ;;  %v3625_v18 = vmul.f32 %v9347_v42, %v3589_v61 }
 0x18d   : > { %7525 = vmatprep.mubr.f32.mxu0 %v11353_v62  ;;  %v3725_v62 = vmul.f32 %v9345_v7, %v3689_v11 }
 0x18f   : > { %v3757_v8 = vadd.f32 %v3725_v62, %v3625_v18 }
 0x190   : > { %7526 = vmatmul.mubr.f32.gmra.mrb[24].mxu0 %v11354_v51  ;;  %v9354_v51 = vrot.slane %v3587_v58, %v3823_v32 }
 0x191   : > { %7528 = vmatprep.mubr.f32.mxu0 %v11355_v36  ;;  %v3726_v36 = vmul.f32 %v9345_v7, %v3690_v1 }
 0x194   : > { %7529 = vmatmul.mubr.f32.gmra.mrb[26].mxu0 %v11356_v5  ;;  %v3626_v5 = vmul.f32 %v9347_v42, %v3590_v57 }
 0x195   : > { %7531 = vmatprep.mubr.f32.mxu0 %v11357_v22 }
 0x198   : > { %7532 = vmatmul.mubr.f32.gmra.mrb[28].mxu0 %v11358_v53 }
 0x199   : > { %7534 = vmatprep.mubr.f32.mxu0 %v11359_v31 }
 0x19c   : > { %7535 = vmatmul.mubr.f32.gmra.mrb[30].mxu0 %v11360_v20  ;;  %v3789_v20 = vld [vmem:[#allocation2 + $0x2] sm:$0xff] }
 0x19d   : > { %v3825_v9 = vmul.f32 %v9354_v51, %v3789_v20 }
 0x19f   : > { %v3857_v1 = vadd.f32 %v3825_v9, %v3757_v8 }
 0x1a3   : > { %v7596_v19 = vpop.f32.mrb[2].mxu1 }
 0x1a4   : > { %v3528_v30 = vpop.f32.mrb[3].mxu1  ;;  %v8069_v44 = vadd.f32 %v7596_v19, %v9261_v14  ;;  %v3923_v19 = vsub.s32 3, %v9338_v23 }
 0x1a5   : > { %v8070_v52 = vadd.f32 %v9261_v14, %v3528_v30 }
 0x1a6   : > { %v3539_v0 = vmax.f32 %v8069_v44, 0.0 }
 0x1a7   : > { %v3538_v48 = vmax.f32 %v8070_v52, 0.0 }
 0x1a8   : > { %v3541_v50 = vmin.f32 %v3539_v0, 6.0  ;;  %v3758_v0 = vadd.f32 %v3726_v36, %v3626_v5 }
 0x1a9   : > { %v3540_v2 = vmin.f32 %v3538_v48, 6.0  ;;  %v3826_v48 = vmul.f32 %v9354_v51, %v3790_v15 }
 0x1aa   : > { %v3546_v59 = vmul.f32 0.0, %v3541_v50 }
 0x1ab   : > { %v3545_v24 = vmul.f32 0.0, %v3540_v2  ;;  %v3858_v57 = vadd.f32 %v3826_v48, %v3758_v0 }
 0x1ac   : > { %3549 = vst.msk [vmem:[#allocation2 + $0x1a1] sm:$0xff] %vm2482_vm2, %v3546_v59  ;;  %v4224_v59 = vsub.s32 6, %v9338_v23 }
 0x1ad   : > { %3548 = vst.msk [vmem:[#allocation2 + $0x199] sm:$0xff] %vm2482_vm2, %v3545_v24  ;;  %v4324_v24 = vsub.s32 7, %v9338_v23 }
 0x233   : > { %v7491_v13 = vpop.f32.mrb[0].mxu0 }
 0x234   : > { %v8035_v12 = vadd.f32 %v7491_v13, %v9261_v14  ;;  %v2227_v56 = vpop.f32.mrb[1].mxu0 }
 0x235   : > { %v8036_v49 = vadd.f32 %v9261_v14, %v2227_v56 }
 0x236   : > { %v2418_v60 = vmax.f32 %v8035_v12, 0.0  ;;  %v9377_v12 = vrot.slane %v3587_v58, %v3923_v19 }
 0x237   : > { %v2417_v55 = vmax.f32 %v8036_v49, 0.0  ;;  %v7494_v45 = vpop.f32.mrb[2].mxu0 }
 0x238   : > { %v2450_v22 = vmin.f32 %v2418_v60, 6.0  ;;  %v8037_v53 = vadd.f32 %v7494_v45, %v9261_v14  ;;  %v2239_v31 = vpop.f32.mrb[3].mxu0  ;;  %v9381_v60 = vrot.slane %v3587_v58, %v4224_v59 }
 0x239   : > { %v2449_v16 = vmin.f32 %v2417_v55, 6.0  ;;  %v8038_v21 = vadd.f32 %v9261_v14, %v2239_v31  ;;  %v9383_v55 = vrot.slane %v3587_v58, %v4324_v24 }
 0x23a   : > { %2484 = vst.msk [vmem:[#allocation2 + $0x21] sm:$0xff] %vm2482_vm2, %v2450_v22  ;;  %v2420_v27 = vmax.f32 %v8037_v53, 0.0 }
 0x23b   : > { %2483 = vst.msk [vmem:[#allocation2 + $0x19] sm:$0xff] %vm2482_vm2, %v2449_v16  ;;  %v2419_v39 = vmax.f32 %v8038_v21, 0.0  ;;  %v7497_v6 = vpop.f32.mrb[4].mxu0  ;;  %v9400_v16 = vld [vmem:[%s11016_s5 + $0x8] ss:$0 sm:$0xff] }
 0x23c   : > { %v2452_v30 = vmin.f32 %v2420_v27, 6.0  ;;  %v8039_v44 = vadd.f32 %v7497_v6, %v9261_v14  ;;  %v2251_v52 = vpop.f32.mrb[5].mxu0 }
 0x23d   : > { %v2451_v50 = vmin.f32 %v2419_v39, 6.0  ;;  %v8040_v2 = vadd.f32 %v9261_v14, %v2251_v52 }
 0x23e   : > { %2486 = vst.msk [vmem:[#allocation2 + $0x39] sm:$0xff] %vm2482_vm2, %v2452_v30  ;;  %v2422_v40 = vmax.f32 %v8039_v44, 0.0 }
 0x23f   : > { %2485 = vst.msk [vmem:[#allocation2 + $0x31] sm:$0xff] %vm2482_vm2, %v2451_v50  ;;  %v2421_v13 = vmax.f32 %v8040_v2, 0.0  ;;  %v7500_v32 = vpop.f32.mrb[6].mxu0 }
 0x240   : > { %v2454_v56 = vmin.f32 %v2422_v40, 6.0  ;;  %v8041_v61 = vadd.f32 %v7500_v32, %v9261_v14  ;;  %v2263_v11 = vpop.f32.mrb[7].mxu0 }
 0x241   : > { %v2453_v23 = vmin.f32 %v2421_v13, 6.0  ;;  %v8042_v49 = vadd.f32 %v9261_v14, %v2263_v11  ;;  %v3990_v45 = vld [vmem:[#allocation2 + $0x21] sm:$0xff] }
 0x242   : > { %v9385_v18 = vld [vmem:[#allocation2 + $0x22] sm:$0xff]  ;;  %2488 = vst.msk [vmem:[#allocation2 + $0x51] sm:$0xff] %vm2482_vm2, %v2454_v56  ;;  %v2424_v36 = vmax.f32 %v8041_v61, 0.0  ;;  %v3889_v5 = vld [vmem:[#allocation2 + $0x18] sm:$0xff]  ;;  %v4026_v53 = vmul.f32 %v9372_v63, %v3990_v45  ;;  %v9394_v20 = vmul.f32 %v3990_v45, %v9345_v7 }
 0x243   : > { %v9387_v62 = vld [vmem:[#allocation2 + $0x20] sm:$0xff]  ;;  %v4126_v31 = vmul.f32 %v9374_v10, %v9385_v18  ;;  %2487 = vst.msk [vmem:[#allocation2 + $0x49] sm:$0xff] %vm2482_vm2, %v2453_v23  ;;  %v2423_v58 = vmax.f32 %v8042_v49, 0.0  ;;  %v7503_v15 = vpop.f32.mrb[8].mxu0  ;;  %v3925_v21 = vmul.f32 %v9377_v12, %v3889_v5  ;;  %v3627_v19 = vmul.f32 %v3889_v5, %v9347_v42 }
 0x244   : > { %v3989_v22 = vld [vmem:[#allocation2 + $0x19] sm:$0xff]  ;;  %v3926_v38 = vmul.f32 %v9377_v12, %v9387_v62  ;;  %v2456_v39 = vmin.f32 %v2424_v36, 6.0  ;;  %v8043_v6 = vadd.f32 %v7503_v15, %v9261_v14  ;;  %v2275_v8 = vpop.f32.mrb[9].mxu0 }
 0x245   : > { %v4025_v27 = vmul.f32 %v9372_v63, %v3989_v22  ;;  %v4089_v29 = vld [vmem:[#allocation2 + $0x1a] sm:$0xff]  ;;  %v2455_v30 = vmin.f32 %v2423_v58, 6.0  ;;  %v8044_v44 = vadd.f32 %v9261_v14, %v2275_v8  ;;  %v3957_v52 = vadd.f32 %v3925_v21, %v3857_v1 }
 0x246   : > { %v4125_v9 = vmul.f32 %v9374_v10, %v4089_v29  ;;  %v3958_v0 = vadd.f32 %v3926_v38, %v3858_v57  ;;  %v9410_v48 = vld [vmem:[#allocation2 + $0x39] sm:$0xff]  ;;  %2490 = vst.msk [vmem:[#allocation2 + $0x69] sm:$0xff] %vm2482_vm2, %v2456_v39  ;;  %v2426_v2 = vmax.f32 %v8043_v6, 0.0  ;;  %v9415_v59 = vld [vmem:[#allocation2 + $0x30] sm:$0xff]  ;;  %v3727_v56 = vmul.f32 %v3989_v22, %v9345_v7 }
 0x247   : > { %v9412_v50 = vld [vmem:[#allocation2 + $0x3a] sm:$0xff]  ;;  %v9417_v24 = vld [vmem:[#allocation2 + $0x31] sm:$0xff]  ;;  %v4327_v13 = vmul.f32 %v9383_v55, %v9410_v48  ;;  %2489 = vst.msk [vmem:[#allocation2 + $0x61] sm:$0xff] %vm2482_vm2, %v2455_v30  ;;  %v2425_v61 = vmax.f32 %v8044_v44, 0.0  ;;  %v7506_v11 = vpop.f32.mrb[10].mxu0  ;;  %v4057_v1 = vadd.f32 %v4025_v27, %v3957_v52  ;;  %v4226_v57 = vmul.f32 %v9381_v60, %v9415_v59 }
 0x248   : > { %v9419_v40 = vld [vmem:[#allocation2 + $0x32] sm:$0xff]  ;;  %v4427_v32 = vmul.f32 %v9400_v16, %v9412_v50  ;;  %v4326_v23 = vmul.f32 %v9383_v55, %v9417_v24  ;;  %v2458_v45 = vmin.f32 %v2426_v2, 6.0  ;;  %v8045_v36 = vadd.f32 %v7506_v11, %v9261_v14  ;;  %v2287_v5 = vpop.f32.mrb[11].mxu0 }
 0x249   : > { %v9431_v49 = vld [vmem:[#allocation2 + $0x38] sm:$0xff]  ;;  %v4426_v22 = vmul.f32 %v9400_v16, %v9419_v40  ;;  %v4058_v58 = vadd.f32 %v4026_v53, %v3958_v0  ;;  %v2457_v15 = vmin.f32 %v2425_v61, 6.0  ;;  %v8046_v21 = vadd.f32 %v9261_v14, %v2287_v5 }
 0x24a   : > { %v4157_v27 = vadd.f32 %v4125_v9, %v4057_v1  ;;  %v4227_v38 = vmul.f32 %v9381_v60, %v9431_v49  ;;  %2492 = vst.msk [vmem:[#allocation2 + $0x81] sm:$0xff] %vm2482_vm2, %v2458_v45  ;;  %v2428_v39 = vmax.f32 %v8045_v36, 0.0  ;;  %v3759_v8 = vadd.f32 %v3727_v56, %v3627_v19  ;;  %v9446_v0 = vld [vmem:[#allocation2 + $0x48] sm:$0xff] }
 0x24b   : > { %v4158_v6 = vadd.f32 %v4126_v31, %v4058_v58  ;;  %v3827_v30 = vmul.f32 %v4089_v29, %v9354_v51  ;;  %2491 = vst.msk [vmem:[#allocation2 + $0x79] sm:$0xff] %vm2482_vm2, %v2457_v15  ;;  %v2427_v44 = vmax.f32 %v8046_v21, 0.0  ;;  %v7509_v52 = vpop.f32.mrb[12].mxu0  ;;  %v3927_v53 = vmul.f32 %v9415_v59, %v9377_v12  ;;  %v9449_v29 = vld [vmem:[#allocation2 + $0x49] sm:$0xff]  ;;  %v9460_v15 = vld [vmem:[%s11017_s6] ss:$0 sm:$0xff] }
 0x24c   : > { %v4258_v2 = vadd.f32 %v4226_v57, %v4157_v27  ;;  %v4027_v9 = vmul.f32 %v9417_v24, %v9372_v63  ;;  %v2460_v61 = vmin.f32 %v2428_v39, 6.0  ;;  %v8047_v11 = vadd.f32 %v7509_v52, %v9261_v14  ;;  %v2299_v31 = vpop.f32.mrb[13].mxu0  ;;  %v9451_v1 = vld [vmem:[#allocation2 + $0x4a] sm:$0xff] }
 0x24d   : > { %v4259_v19 = vadd.f32 %v4227_v38, %v4158_v6  ;;  %v3859_v56 = vadd.f32 %v3827_v30, %v3759_v8  ;;  %v2459_v45 = vmin.f32 %v2427_v44, 6.0  ;;  %v8048_v57 = vadd.f32 %v9261_v14, %v2299_v31 }
 0x24e   : > { %v4358_v36 = vadd.f32 %v4326_v23, %v4258_v2  ;;  %v4127_v5 = vmul.f32 %v9419_v40, %v9374_v10  ;;  %2494 = vst.msk [vmem:[#allocation2 + $0x99] sm:$0xff] %vm2482_vm2, %v2460_v61  ;;  %v2430_v58 = vmax.f32 %v8047_v11, 0.0  ;;  %v4228_v38 = vmul.f32 %v9381_v60, %v9446_v0 }
 0x24f   : > { %v4359_v21 = vadd.f32 %v4327_v13, %v4259_v19  ;;  %v3959_v27 = vadd.f32 %v3927_v53, %v3859_v56  ;;  %2493 = vst.msk [vmem:[#allocation2 + $0x91] sm:$0xff] %vm2482_vm2, %v2459_v45  ;;  %v2429_v39 = vmax.f32 %v8048_v57, 0.0  ;;  %v7512_v23 = vpop.f32.mrb[14].mxu0  ;;  %v4328_v8 = vmul.f32 %v9383_v55, %v9449_v29 }
 0x250   : > { %v4458_v6 = vadd.f32 %v4426_v22, %v4358_v36  ;;  %v4428_v30 = vmul.f32 %v9400_v16, %v9451_v1  ;;  %v2462_v44 = vmin.f32 %v2430_v58, 6.0  ;;  %v8049_v52 = vadd.f32 %v7512_v23, %v9261_v14  ;;  %v2311_v2 = vpop.f32.mrb[15].mxu0 }
 0x251   : > { %v4459_v13 = vadd.f32 %v4427_v32, %v4359_v21  ;;  %v4059_v53 = vadd.f32 %v4027_v9, %v3959_v27  ;;  %v2461_v61 = vmin.f32 %v2429_v39, 6.0  ;;  %v8050_v11 = vadd.f32 %v9261_v14, %v2311_v2 }
 0x252   : > { %v4497_v31 = vadd.f32 %v9460_v15, %v4458_v6  ;;  %v3628_v22 = vmul.f32 %v9387_v62, %v9347_v42  ;;  %2496 = vst.msk [vmem:[#allocation2 + $0xb1] sm:$0xff] %vm2482_vm2, %v2462_v44  ;;  %v2432_v19 = vmax.f32 %v8049_v52, 0.0  ;;  %v3828_v57 = vmul.f32 %v9385_v18, %v9354_v51  ;;  %v9624_v33 = vld [vmem:[#allocation2 + $0x78] sm:$0xff] }
 0x253   : > { %v4498_v56 = vadd.f32 %v9460_v15, %v4459_v13  ;;  %v4159_v45 = vadd.f32 %v4127_v5, %v4059_v53  ;;  %2495 = vst.msk [vmem:[#allocation2 + $0xa9] sm:$0xff] %vm2482_vm2, %v2461_v61  ;;  %v2431_v32 = vmax.f32 %v8050_v11, 0.0  ;;  %v7515_v9 = vpop.f32.mrb[16].mxu0  ;;  %v3928_v21 = vmul.f32 %v9431_v49, %v9377_v12 }
 0x254   : > { %v4529_v36 = vmax.f32 %v4497_v31, 0.0  ;;  %v3760_v58 = vadd.f32 %v9394_v20, %v3628_v22  ;;  %v2464_v62 = vmin.f32 %v2432_v19, 6.0  ;;  %v8051_v27 = vadd.f32 %v7515_v9, %v9261_v14  ;;  %v2323_v39 = vpop.f32.mrb[17].mxu0  ;;  %v9491_v19 = vld [vmem:[#allocation2 + $0x50] sm:$0xff] }
 0x255   : > { %v4530_v23 = vmax.f32 %v4498_v56, 0.0  ;;  %v4260_v6 = vadd.f32 %v4228_v38, %v4159_v45  ;;  %v2463_v5 = vmin.f32 %v2431_v32, 6.0  ;;  %v8052_v44 = vadd.f32 %v9261_v14, %v2323_v39  ;;  %v9497_v9 = vld [vmem:[#allocation2 + $0x51] sm:$0xff] }
 0x256   : > { %v4561_v18 = vmin.f32 %v4529_v36, 6.0  ;;  %v3860_v52 = vadd.f32 %v3828_v57, %v3760_v58  ;;  %2498 = vst.msk [vmem:[#allocation2 + $0xc9] sm:$0xff] %vm2482_vm2, %v2464_v62  ;;  %v2434_v2 = vmax.f32 %v8051_v27, 0.0  ;;  %v4028_v20 = vmul.f32 %v9410_v48, %v9372_v63 }
 0x257   : > { %v4562_v13 = vmin.f32 %v4530_v23, 6.0  ;;  %v4360_v53 = vadd.f32 %v4328_v8, %v4260_v6  ;;  %2497 = vst.msk [vmem:[#allocation2 + $0xc1] sm:$0xff] %vm2482_vm2, %v2463_v5  ;;  %v2433_v61 = vmax.f32 %v8052_v44, 0.0  ;;  %v7518_v11 = vpop.f32.mrb[18].mxu0  ;;  %v4128_v22 = vmul.f32 %v9412_v50, %v9374_v10 }
 0x258   : > { %v4607_v31 = vsel %vm2482_vm2, %v4561_v18, 0  ;;  %v3960_v38 = vadd.f32 %v3928_v21, %v3860_v52  ;;  %v2466_v56 = vmin.f32 %v2434_v2, 6.0  ;;  %v8053_v45 = vadd.f32 %v7518_v11, %v9261_v14  ;;  %v2335_v57 = vpop.f32.mrb[19].mxu0  ;;  %v9515_v2 = vld [vmem:[#allocation2 + $0x52] sm:$0xff] }
 0x259   : > { %v9494_v8 = vand.u32 4294901760, %v4607_v31  ;;  %v4610_v32 = vsel %vm2482_vm2, %v4562_v13, 0  ;;  %v2465_v36 = vmin.f32 %v2433_v61, 6.0  ;;  %v8054_v58 = vadd.f32 %v9261_v14, %v2335_v57 }
 0x25a   : > { %v9500_v62 = vand.u32 4294901760, %v4610_v32  ;;  %v4460_v21 = vadd.f32 %v4428_v30, %v4360_v53  ;;  %2500 = vst.msk [vmem:[#allocation2 + $0xe1] sm:$0xff] %vm2482_vm2, %v2466_v56  ;;  %v2436_v27 = vmax.f32 %v8053_v45, 0.0  ;;  %v4060_v23 = vadd.f32 %v4028_v20, %v3960_v38 }
 0x25b   : > { %v9504_v39 = vsub.f32 %v4607_v31, %v9494_v8  ;;  %v4229_v6 = vmul.f32 %v9381_v60, %v9491_v19  ;;  %2499 = vst.msk [vmem:[#allocation2 + $0xd9] sm:$0xff] %vm2482_vm2, %v2465_v36  ;;  %v2435_v5 = vmax.f32 %v8054_v58, 0.0  ;;  %v7521_v44 = vpop.f32.mrb[20].mxu0  ;;  %v4329_v30 = vmul.f32 %v9383_v55, %v9497_v9 }
 0x25c   : > { %v9510_v18 = vsub.f32 %v4610_v32, %v9500_v62  ;;  %v4499_v52 = vadd.f32 %v9460_v15, %v4460_v21  ;;  %v2468_v13 = vmin.f32 %v2436_v27, 6.0  ;;  %v8055_v53 = vadd.f32 %v7521_v44, %v9261_v14  ;;  %v2347_v20 = vpop.f32.mrb[21].mxu0 }
 0x25d   : > { %11363 = vst [vmem:[#allocation5_spill] sm:$0xff] %v9504_v39  ;;  %v11111_v61 = vand.u32 4294901760, %v9504_v39  ;;  %v4160_v11 = vadd.f32 %v4128_v22, %v4060_v23  ;;  %v2467_v31 = vmin.f32 %v2435_v5, 6.0  ;;  %v8056_v38 = vadd.f32 %v9261_v14, %v2347_v20 }
 0x25e   : > { %11364 = vst [vmem:[#allocation6_spill] sm:$0xff] %v9510_v18  ;;  %v11112_v56 = vand.u32 4294901760, %v9510_v18  ;;  %v4531_v45 = vmax.f32 %v4499_v52, 0.0  ;;  %2502 = vst.msk [vmem:[#allocation2 + $0xf9] sm:$0xff] %vm2482_vm2, %v2468_v13  ;;  %v2438_v57 = vmax.f32 %v8055_v53, 0.0  ;;  %v4429_v58 = vmul.f32 %v9400_v16, %v9515_v2 }
 0x25f   : > { %v4776_v32 = vsub.f32 %v9504_v39, %v11111_v61  ;;  %v4261_v36 = vadd.f32 %v4229_v6, %v4160_v11  ;;  %2501 = vst.msk [vmem:[#allocation2 + $0xf1] sm:$0xff] %vm2482_vm2, %v2467_v31  ;;  %v2437_v22 = vmax.f32 %v8056_v38, 0.0  ;;  %v7524_v21 = vpop.f32.mrb[22].mxu0  ;;  %v3629_v5 = vmul.f32 %v9415_v59, %v9347_v42 }
 0x260   : > { %v4786_v27 = vsub.f32 %v9510_v18, %v11112_v56  ;;  %v4563_v23 = vmin.f32 %v4531_v45, 6.0  ;;  %v2470_v44 = vmin.f32 %v2438_v57, 6.0  ;;  %v8057_v52 = vadd.f32 %v7524_v21, %v9261_v14  ;;  %v2359_v13 = vpop.f32.mrb[23].mxu0  ;;  %v9548_v21 = vld [vmem:[#allocation2 + $0x60] sm:$0xff] }
 0x261   : > { %v4777_v6 = vand.u32 4294901760, %v4776_v32  ;;  %v4361_v53 = vadd.f32 %v4329_v30, %v4261_v36  ;;  %v2469_v20 = vmin.f32 %v2437_v22, 6.0  ;;  %v8058_v11 = vadd.f32 %v9261_v14, %v2359_v13 }
 0x262   : > { %v4787_v31 = vand.u32 4294901760, %v4786_v27  ;;  %v4613_v38 = vsel %vm2482_vm2, %v4563_v23, 0  ;;  %2504 = vst.msk [vmem:[#allocation2 + $0x111] sm:$0xff] %vm2482_vm2, %v2470_v44  ;;  %v2440_v61 = vmax.f32 %v8057_v52, 0.0  ;;  %v3729_v59 = vmul.f32 %v9417_v24, %v9345_v7  ;;  %v9555_v52 = vld [vmem:[#allocation2 + $0x61] sm:$0xff] }
 0x263   : > { %7609 = vmatprep.mubr.f32.mxu0 %v4777_v6  ;;  %v9537_v45 = vand.u32 4294901760, %v4613_v38  ;;  %v4461_v56 = vadd.f32 %v4429_v58, %v4361_v53  ;;  %2503 = vst.msk [vmem:[#allocation2 + $0x109] sm:$0xff] %vm2482_vm2, %v2469_v20  ;;  %v2439_v57 = vmax.f32 %v8058_v11, 0.0  ;;  %v7527_v30 = vpop.f32.mrb[24].mxu0  ;;  %v3829_v32 = vmul.f32 %v9419_v40, %v9354_v51  ;;  %v9557_v40 = vld [vmem:[#allocation2 + $0x62] sm:$0xff] }
 0x264   : > { %7610 = vmatmul.mubr.f32.vlgmr.msra.gmra.mrb[32].mxu0 %v4787_v31  ;;  %v3929_v36 = vmul.f32 %v9446_v0, %v9377_v12  ;;  %v4029_v22 = vmul.f32 %v9449_v29, %v9372_v63  ;;  %v2472_v58 = vmin.f32 %v2440_v61, 6.0  ;;  %v8059_v27 = vadd.f32 %v7527_v30, %v9261_v14  ;;  %v2371_v24 = vpop.f32.mrb[25].mxu0 }
 0x265   : > { %v9552_v23 = vsub.f32 %v4613_v38, %v9537_v45  ;;  %v4500_v44 = vadd.f32 %v9460_v15, %v4461_v56  ;;  %v2471_v13 = vmin.f32 %v2439_v57, 6.0  ;;  %v8060_v6 = vadd.f32 %v9261_v14, %v2371_v24 }
 0x266   : > { %v3761_v53 = vadd.f32 %v3729_v59, %v3629_v5  ;;  %v4129_v20 = vmul.f32 %v9451_v1, %v9374_v10  ;;  %2506 = vst.msk [vmem:[#allocation2 + $0x129] sm:$0xff] %vm2482_vm2, %v2472_v58  ;;  %v2442_v61 = vmax.f32 %v8059_v27, 0.0  ;;  %v4230_v56 = vmul.f32 %v9381_v60, %v9548_v21 }
 0x267   : > { %11365 = vst [vmem:[#allocation7_spill] sm:$0xff] %v9552_v23  ;;  %v11116_v11 = vand.u32 4294901760, %v9552_v23  ;;  %v4532_v31 = vmax.f32 %v4500_v44, 0.0  ;;  %2505 = vst.msk [vmem:[#allocation2 + $0x121] sm:$0xff] %vm2482_vm2, %v2471_v13  ;;  %v2441_v38 = vmax.f32 %v8060_v6, 0.0  ;;  %v7530_v30 = vpop.f32.mrb[26].mxu0  ;;  %v4330_v5 = vmul.f32 %v9383_v55, %v9555_v52 }
 0x268   : > { %v3861_v57 = vadd.f32 %v3829_v32, %v3761_v53  ;;  %v9571_v59 = vmul.f32 %v9400_v16, %v9557_v40  ;;  %v2474_v58 = vmin.f32 %v2442_v61, 6.0  ;;  %v8061_v24 = vadd.f32 %v7530_v30, %v9261_v14  ;;  %v2383_v4 = vpop.f32.mrb[27].mxu0 }
 0x269   : > { %v4796_v27 = vsub.f32 %v9552_v23, %v11116_v11  ;;  %v4564_v44 = vmin.f32 %v4532_v31, 6.0  ;;  %v2473_v13 = vmin.f32 %v2441_v38, 6.0  ;;  %v8062_v6 = vadd.f32 %v9261_v14, %v2383_v4 }
 0x26a   : > { %v3961_v32 = vadd.f32 %v3929_v36, %v3861_v57  ;;  %v3630_v53 = vmul.f32 %v9431_v49, %v9347_v42  ;;  %2508 = vst.msk [vmem:[#allocation2 + $0x141] sm:$0xff] %vm2482_vm2, %v2474_v58  ;;  %v2444_v47 = vmax.f32 %v8061_v24, 0.0  ;;  %v3730_v11 = vmul.f32 %v9410_v48, %v9345_v7  ;;  %v9589_v49 = vld [vmem:[#allocation2 + $0x68] sm:$0xff] }
 0x26b   : > { %v4797_v41 = vand.u32 4294901760, %v4796_v27  ;;  %v4616_v61 = vsel %vm2482_vm2, %v4564_v44, 0  ;;  %2507 = vst.msk [vmem:[#allocation2 + $0x139] sm:$0xff] %vm2482_vm2, %v2473_v13  ;;  %v2443_v38 = vmax.f32 %v8062_v6, 0.0  ;;  %v7533_v4 = vpop.f32.mrb[28].mxu0  ;;  %v3830_v36 = vmul.f32 %v9412_v50, %v9354_v51  ;;  %v9594_v24 = vld [vmem:[#allocation2 + $0x69] sm:$0xff] }
 0x26c   : > { %v9585_v31 = vand.u32 4294901760, %v4616_v61  ;;  %v4061_v30 = vadd.f32 %v4029_v22, %v3961_v32  ;;  %v2476_v57 = vmin.f32 %v2444_v47, 6.0  ;;  %v8063_v58 = vadd.f32 %v7533_v4, %v9261_v14  ;;  %v9596_v44 = vld [vmem:[#allocation2 + $0x6a] sm:$0xff]  ;;  %v2395_v13 = vpop.f32.mrb[29].mxu0 }
 0x26d   : > { %7612 = vmatprep.mubr.f32.mxu0 %v4797_v41  ;;  %v3762_v27 = vadd.f32 %v3730_v11, %v3630_v53  ;;  %v3930_v48 = vmul.f32 %v9491_v19, %v9377_v12  ;;  %v2475_v6 = vmin.f32 %v2443_v38, 6.0  ;;  %v4030_v41 = vmul.f32 %v9497_v9, %v9372_v63 }
 0x26e   : > { %v9599_v22 = vsub.f32 %v4616_v61, %v9585_v31  ;;  %v4161_v50 = vadd.f32 %v4129_v20, %v4061_v30  ;;  %2510 = vst.msk [vmem:[#allocation2 + $0x159] sm:$0xff] %vm2482_vm2, %v2476_v57  ;;  %v2446_v47 = vmax.f32 %v8063_v58, 0.0  ;;  %v4130_v32 = vmul.f32 %v9515_v2, %v9374_v10 }
 0x26f   : > { %v3862_v11 = vadd.f32 %v3830_v36, %v3762_v27  ;;  %v4231_v53 = vmul.f32 %v9381_v60, %v9589_v49  ;;  %2509 = vst.msk [vmem:[#allocation2 + $0x151] sm:$0xff] %vm2482_vm2, %v2475_v6  ;;  %v4331_v20 = vmul.f32 %v9383_v55, %v9594_v24  ;;  %v4431_v38 = vmul.f32 %v9400_v16, %v9596_v44  ;;  %v7536_v30 = vpop.f32.mrb[30].mxu0 }
 0x270   : > { %11366 = vst [vmem:[#allocation8_spill] sm:$0xff] %v9599_v22  ;;  %v11120_v4 = vand.u32 4294901760, %v9599_v22  ;;  %v4262_v61 = vadd.f32 %v4230_v56, %v4161_v50  ;;  %v2478_v57 = vmin.f32 %v2446_v47, 6.0  ;;  %v8064_v58 = vadd.f32 %v9261_v14, %v2395_v13  ;;  %v2407_v46 = vpop.f32.mrb[31].mxu0 }
 0x271   : > { %v3962_v36 = vadd.f32 %v3930_v48, %v3862_v11  ;;  %v3631_v27 = vmul.f32 %v9446_v0, %v9347_v42  ;;  %v3731_v50 = vmul.f32 %v9449_v29, %v9345_v7  ;;  %v3831_v28 = vmul.f32 %v9451_v1, %v9354_v51  ;;  %v9626_v48 = vld [vmem:[#allocation2 + $0x79] sm:$0xff] }
 0x272   : > { %v4806_v6 = vsub.f32 %v9599_v22, %v11120_v4  ;;  %v4362_v56 = vadd.f32 %v4330_v5, %v4262_v61  ;;  %2512 = vst.msk [vmem:[#allocation2 + $0x171] sm:$0xff] %vm2482_vm2, %v2478_v57  ;;  %v2445_v0 = vmax.f32 %v8064_v58, 0.0  ;;  %v3931_v47 = vmul.f32 %v9548_v21, %v9377_v12  ;;  %v9633_v11 = vld [vmem:[#allocation2 + $0x7a] sm:$0xff] }
 0x273   : > { %v4062_v13 = vadd.f32 %v4030_v41, %v3962_v36  ;;  %v4031_v5 = vmul.f32 %v9555_v52, %v9372_v63  ;;  %v3763_v1 = vadd.f32 %v3731_v50, %v3631_v27  ;;  %v4131_v4 = vmul.f32 %v9557_v40, %v9374_v10 }
 0x274   : > { %v4807_v29 = vand.u32 4294901760, %v4806_v6  ;;  %v4462_v61 = vadd.f32 %v9571_v59, %v4362_v56  ;;  %v2477_v22 = vmin.f32 %v2445_v0, 6.0  ;;  %v4232_v41 = vmul.f32 %v9381_v60, %v9624_v33 }
 0x275   : > { %v4162_v54 = vadd.f32 %v4130_v32, %v4062_v13  ;;  %v4332_v57 = vmul.f32 %v9383_v55, %v9626_v48  ;;  %v3863_v58 = vadd.f32 %v3831_v28, %v3763_v1  ;;  %v4432_v6 = vmul.f32 %v9400_v16, %v9633_v11  ;;  %v9653_v13 = vld [vmem:[#allocation2 + $0x80] sm:$0xff] }
 0x276   : > { %7613 = vmatmul.mubr.f32.gmra.mrb[34].mxu0 %v4807_v29  ;;  %v4501_v36 = vadd.f32 %v9460_v15, %v4462_v61  ;;  %v8065_v59 = vadd.f32 %v7536_v30, %v9261_v14  ;;  %2511 = vst.msk [vmem:[#allocation2 + $0x169] sm:$0xff] %vm2482_vm2, %v2477_v22  ;;  %v3632_v32 = vmul.f32 %v9491_v19, %v9347_v42  ;;  %v9659_v22 = vld [vmem:[#allocation2 + $0x82] sm:$0xff] }
 0x277   : > { %v4263_v27 = vadd.f32 %v4231_v53, %v4162_v54  ;;  %v3732_v56 = vmul.f32 %v9497_v9, %v9345_v7  ;;  %v3832_v50 = vmul.f32 %v9515_v2, %v9354_v51  ;;  %v3963_v0 = vadd.f32 %v3931_v47, %v3863_v58  ;;  %v9657_v54 = vld [vmem:[#allocation2 + $0x81] sm:$0xff] }
 0x278   : > { %v4533_v28 = vmax.f32 %v4501_v36, 0.0  ;;  %v2448_v29 = vmax.f32 %v8065_v59, 0.0  ;;  %v3932_v30 = vmul.f32 %v9589_v49, %v9377_v12  ;;  %v4032_v9 = vmul.f32 %v9594_v24, %v9372_v63 }
 0x279   : > { %v4363_v53 = vadd.f32 %v4331_v20, %v4263_v27  ;;  %v3764_v19 = vadd.f32 %v3732_v56, %v3632_v32  ;;  %v4132_v2 = vmul.f32 %v9596_v44, %v9374_v10  ;;  %v4063_v1 = vadd.f32 %v4031_v5, %v3963_v0 }
 0x27a   : > { %v4565_v61 = vmin.f32 %v4533_v28, 6.0  ;;  %v2480_v36 = vmin.f32 %v2448_v29, 6.0  ;;  %v4233_v47 = vmul.f32 %v9381_v60, %v9653_v13  ;;  %v4333_v43 = vmul.f32 %v9383_v55, %v9657_v54 }
 0x27b   : > { %v4463_v58 = vadd.f32 %v4431_v38, %v4363_v53  ;;  %v3864_v59 = vadd.f32 %v3832_v50, %v3764_v19  ;;  %v4433_v20 = vmul.f32 %v9400_v16, %v9659_v22  ;;  %v4163_v32 = vadd.f32 %v4131_v4, %v4063_v1  ;;  %v9688_v1 = vld [vmem:[#allocation2 + $0x90] sm:$0xff] }
 0x27c   : > { %v4619_v27 = vsel %vm2482_vm2, %v4565_v61, 0  ;;  %2514 = vst.msk [vmem:[#allocation2 + $0x189] sm:$0xff] %vm2482_vm2, %v2480_v36  ;;  %v8066_v56 = vadd.f32 %v9261_v14, %v2407_v46  ;;  %v3633_v5 = vmul.f32 %v9548_v21, %v9347_v42  ;;  %v3733_v0 = vmul.f32 %v9555_v52, %v9345_v7  ;;  %v9692_v36 = vld [vmem:[#allocation2 + $0x92] sm:$0xff] }
 0x27d   : > { %v9676_v28 = vand.u32 4294901760, %v4619_v27  ;;  %v4502_v38 = vadd.f32 %v9460_v15, %v4463_v58  ;;  %v3964_v50 = vadd.f32 %v3932_v30, %v3864_v59  ;;  %v4264_v29 = vadd.f32 %v4232_v41, %v4163_v32  ;;  %v9690_v30 = vld [vmem:[#allocation2 + $0x91] sm:$0xff] }
 0x27e   : > { %v2447_v53 = vmax.f32 %v8066_v56, 0.0  ;;  %v3833_v4 = vmul.f32 %v9557_v40, %v9354_v51  ;;  %v3933_v19 = vmul.f32 %v9624_v33, %v9377_v12  ;;  %v3765_v61 = vadd.f32 %v3733_v0, %v3633_v5 }
 0x27f   : > { %v9686_v14 = vsub.f32 %v4619_v27, %v9676_v28  ;;  %v4534_v46 = vmax.f32 %v4502_v38, 0.0  ;;  %v4064_v21 = vadd.f32 %v4032_v9, %v3964_v50  ;;  %v4364_v52 = vadd.f32 %v4332_v57, %v4264_v29 }
 0x280   : > { %v2479_v41 = vmin.f32 %v2447_v53, 6.0  ;;  %v4033_v40 = vmul.f32 %v9626_v48, %v9372_v63  ;;  %v4133_v58 = vmul.f32 %v9633_v11, %v9374_v10  ;;  %v3865_v9 = vadd.f32 %v3833_v4, %v3765_v61 }
 0x281   : > { %11367 = vst [vmem:[#allocation9_spill] sm:$0xff] %v9686_v14  ;;  %v11127_v59 = vand.u32 4294901760, %v9686_v14  ;;  %v4566_v27 = vmin.f32 %v4534_v46, 6.0  ;;  %v4164_v32 = vadd.f32 %v4132_v2, %v4064_v21  ;;  %v4464_v56 = vadd.f32 %v4432_v6, %v4364_v52 }
 0x282   : > { %2513 = vst.msk [vmem:[#allocation2 + $0x181] sm:$0xff] %vm2482_vm2, %v2479_v41  ;;  %v4234_v5 = vmul.f32 %v9381_v60, %v9688_v1  ;;  %v4334_v57 = vmul.f32 %v9383_v55, %v9690_v30  ;;  %v4434_v38 = vmul.f32 %v9400_v16, %v9692_v36  ;;  %v3965_v29 = vadd.f32 %v3933_v19, %v3865_v9  ;;  %v9728_v9 = vld [vmem:[#allocation2 + $0x9a] sm:$0xff] }
 0x283   : > { %v4816_v50 = vsub.f32 %v9686_v14, %v11127_v59  ;;  %v4622_v0 = vsel %vm2482_vm2, %v4566_v27, 0  ;;  %v4265_v2 = vadd.f32 %v4233_v47, %v4164_v32  ;;  %v4503_v53 = vadd.f32 %v9460_v15, %v4464_v56  ;;  %v9719_v59 = vld [vmem:[#allocation2 + $0x98] sm:$0xff] }
 0x284   : > { %v9710_v6 = vand.u32 4294901760, %v4622_v0  ;;  %v3634_v4 = vmul.f32 %v9589_v49, %v9347_v42  ;;  %v3734_v46 = vmul.f32 %v9594_v24, %v9345_v7  ;;  %v4065_v52 = vadd.f32 %v4033_v40, %v3965_v29  ;;  %v9726_v49 = vld [vmem:[#allocation2 + $0x99] sm:$0xff] }
 0x285   : > { %v4817_v21 = vand.u32 4294901760, %v4816_v50  ;;  %v4365_v61 = vadd.f32 %v4333_v43, %v4265_v2  ;;  %v3834_v41 = vmul.f32 %v9596_v44, %v9354_v51  ;;  %v4535_v19 = vmax.f32 %v4503_v53, 0.0 }
 0x286   : > { %v9722_v47 = vsub.f32 %v4622_v0, %v9710_v6  ;;  %v3766_v27 = vadd.f32 %v3734_v46, %v3634_v4  ;;  %v3934_v32 = vmul.f32 %v9653_v13, %v9377_v12  ;;  %v4165_v24 = vadd.f32 %v4133_v58, %v4065_v52 }
 0x287   : > { %7615 = vmatprep.mubr.f32.mxu0 %v4817_v21  ;;  %v4465_v43 = vadd.f32 %v4433_v20, %v4365_v61  ;;  %v4034_v44 = vmul.f32 %v9657_v54, %v9372_v63  ;;  %v4134_v40 = vmul.f32 %v9659_v22, %v9374_v10  ;;  %v4567_v50 = vmin.f32 %v4535_v19, 6.0 }
 0x288   : > { %11368 = vst [vmem:[#allocation10_spill] sm:$0xff] %v9722_v47  ;;  %v11128_v56 = vand.u32 4294901760, %v9722_v47  ;;  %v3866_v0 = vadd.f32 %v3834_v41, %v3766_v27  ;;  %v4235_v2 = vmul.f32 %v9381_v60, %v9719_v59  ;;  %v4266_v53 = vadd.f32 %v4234_v5, %v4165_v24  ;;  %v9752_v27 = vld [vmem:[#allocation2 + $0xa8] sm:$0xff] }
 0x289   : > { %v4504_v29 = vadd.f32 %v9460_v15, %v4465_v43  ;;  %v4335_v20 = vmul.f32 %v9383_v55, %v9726_v49  ;;  %v4435_v58 = vmul.f32 %v9400_v16, %v9728_v9  ;;  %v4625_v46 = vsel %vm2482_vm2, %v4567_v50, 0 }
 0x28a   : > { %v4826_v4 = vsub.f32 %v9722_v47, %v11128_v56  ;;  %v3966_v21 = vadd.f32 %v3934_v32, %v3866_v0  ;;  %v3635_v61 = vmul.f32 %v9624_v33, %v9347_v42  ;;  %v9748_v52 = vand.u32 4294901760, %v4625_v46 }
 0x28b   : > { %v4536_v41 = vmax.f32 %v4504_v29, 0.0  ;;  %v4366_v5 = vadd.f32 %v4334_v57, %v4266_v53  ;;  %v3735_v19 = vmul.f32 %v9626_v48, %v9345_v7  ;;  %v3835_v56 = vmul.f32 %v9633_v11, %v9354_v51  ;;  %v9761_v57 = vld [vmem:[#allocation2 + $0xa9] sm:$0xff] }
 0x28c   : > { %v4827_v43 = vand.u32 4294901760, %v4826_v4  ;;  %v4066_v24 = vadd.f32 %v4034_v44, %v3966_v21  ;;  %v3935_v32 = vmul.f32 %v9688_v1, %v9377_v12  ;;  %v9759_v50 = vsub.f32 %v4625_v46, %v9748_v52  ;;  %v9763_v53 = vld [vmem:[#allocation2 + $0xaa] sm:$0xff] }
 0x28d   : > { %v4568_v33 = vmin.f32 %v4536_v41, 6.0  ;;  %v4466_v0 = vadd.f32 %v4434_v38, %v4366_v5  ;;  %v3767_v29 = vadd.f32 %v3735_v19, %v3635_v61  ;;  %v4035_v44 = vmul.f32 %v9690_v30, %v9372_v63 }
 0x28e   : > { %11369 = vst [vmem:[#allocation12_spill] sm:$0xff] %v9759_v50  ;;  %7616 = vmatmul.mubr.f32.gmra.mrb[36].mxu0 %v4827_v43  ;;  %v4166_v48 = vadd.f32 %v4134_v40, %v4066_v24  ;;  %v4135_v11 = vmul.f32 %v9692_v36, %v9374_v10  ;;  %v4236_v4 = vmul.f32 %v9381_v60, %v9752_v27  ;;  %v11135_v46 = vand.u32 4294901760, %v9759_v50 }
 0x28f   : > { %v4628_v38 = vsel %vm2482_vm2, %v4568_v33, 0  ;;  %v4505_v21 = vadd.f32 %v9460_v15, %v4466_v0  ;;  %v3867_v61 = vadd.f32 %v3835_v56, %v3767_v29  ;;  %v4336_v40 = vmul.f32 %v9383_v55, %v9761_v57 }
 0x290   : > { %v9774_v41 = vand.u32 4294901760, %v4628_v38  ;;  %v4267_v5 = vadd.f32 %v4235_v2, %v4166_v48  ;;  %v4436_v19 = vmul.f32 %v9400_v16, %v9763_v53  ;;  %v4836_v43 = vsub.f32 %v9759_v50, %v11135_v46  ;;  %v9792_v48 = vld [vmem:[#allocation2 + $0xb0] sm:$0xff]  ;;  %v9823_v50 = vld [vmem:[#allocation2 + $0xc0] sm:$0xff] }
 0x291   : > { %v4537_v24 = vmax.f32 %v4505_v21, 0.0  ;;  %v3967_v47 = vadd.f32 %v3935_v32, %v3867_v61  ;;  %v3636_v33 = vmul.f32 %v9653_v13, %v9347_v42  ;;  %v3736_v2 = vmul.f32 %v9657_v54, %v9345_v7  ;;  %v9799_v61 = vld [vmem:[#allocation2 + $0xb1] sm:$0xff] }
 0x292   : > { %11370 = vst [vmem:[#allocation14_spill] sm:$0xff] %v9774_v41  ;;  %v9786_v56 = vsub.f32 %v4628_v38, %v9774_v41  ;;  %v4367_v0 = vadd.f32 %v4335_v20, %v4267_v5  ;;  %v3836_v29 = vmul.f32 %v9659_v22, %v9354_v51  ;;  %v4837_v14 = vand.u32 4294901760, %v4836_v43  ;;  %v9801_v54 = vld [vmem:[#allocation2 + $0xb2] sm:$0xff] }
 0x293   : > { %v4569_v23 = vmin.f32 %v4537_v24, 6.0  ;;  %v4067_v46 = vadd.f32 %v4035_v44, %v3967_v47  ;;  %v3936_v32 = vmul.f32 %v9719_v59, %v9377_v12  ;;  %v3768_v38 = vadd.f32 %v3736_v2, %v3636_v33 }
 0x294   : > { %11371 = vst [vmem:[#allocation16_spill] sm:$0xff] %v9786_v56  ;;  %v11136_v13 = vand.u32 4294901760, %v9786_v56  ;;  %v4467_v21 = vadd.f32 %v4435_v58, %v4367_v0  ;;  %v4036_v20 = vmul.f32 %v9726_v49, %v9372_v63  ;;  %7618 = vmatprep.mubr.f32.mxu0 %v4837_v14  ;;  %v4136_v47 = vmul.f32 %v9728_v9, %v9374_v10 }
 0x295   : > { %v4631_v22 = vsel %vm2482_vm2, %v4569_v23, 0  ;;  %v4167_v5 = vadd.f32 %v4135_v11, %v4067_v46  ;;  %v4237_v44 = vmul.f32 %v9381_v60, %v9792_v48  ;;  %v3868_v33 = vadd.f32 %v3836_v29, %v3768_v38 }
 0x296   : > { %v4846_v58 = vsub.f32 %v9786_v56, %v11136_v13  ;;  %v9811_v43 = vand.u32 4294901760, %v4631_v22  ;;  %v4506_v24 = vadd.f32 %v9460_v15, %v4467_v21  ;;  %v4337_v23 = vmul.f32 %v9383_v55, %v9799_v61 }
 0x297   : > { %v4268_v0 = vadd.f32 %v4236_v4, %v4167_v5  ;;  %v4437_v14 = vmul.f32 %v9400_v16, %v9801_v54  ;;  %v3637_v11 = vmul.f32 %v9688_v1, %v9347_v42  ;;  %v3968_v56 = vadd.f32 %v3936_v32, %v3868_v33  ;;  %v9831_v5 = vld [vmem:[#allocation2 + $0xc1] sm:$0xff] }
 0x298   : > { %11372 = vst [vmem:[#allocation20_spill] sm:$0xff] %v9811_v43  ;;  %v4847_v46 = vand.u32 4294901760, %v4846_v58  ;;  %v9821_v2 = vsub.f32 %v4631_v22, %v9811_v43  ;;  %v4538_v13 = vmax.f32 %v4506_v24, 0.0  ;;  %v3737_v4 = vmul.f32 %v9690_v30, %v9345_v7 }
 0x299   : > { %v4368_v21 = vadd.f32 %v4336_v40, %v4268_v0  ;;  %v3837_v29 = vmul.f32 %v9692_v36, %v9354_v51  ;;  %v3937_v38 = vmul.f32 %v9752_v27, %v9377_v12  ;;  %v4068_v58 = vadd.f32 %v4036_v20, %v3968_v56  ;;  %v9836_v40 = vld [vmem:[#allocation2 + $0xc2] sm:$0xff] }
 0x29a   : > { %11373 = vst [vmem:[#allocation21_spill] sm:$0xff] %v9821_v2  ;;  %7619 = vmatmul.mubr.f32.gmra.mrb[38].mxu0 %v4847_v46  ;;  %v11145_v1 = vand.u32 4294901760, %v9821_v2  ;;  %v4570_v22 = vmin.f32 %v4538_v13, 6.0  ;;  %v4037_v32 = vmul.f32 %v9761_v57, %v9372_v63  ;;  %v3769_v30 = vadd.f32 %v3737_v4, %v3637_v11 }
 0x29b   : > { %v4468_v24 = vadd.f32 %v4436_v19, %v4368_v21  ;;  %v4137_v36 = vmul.f32 %v9763_v53, %v9374_v10  ;;  %v4238_v33 = vmul.f32 %v9381_v60, %v9823_v50  ;;  %v4168_v56 = vadd.f32 %v4136_v47, %v4068_v58 }
 0x29c   : > { %v4856_v0 = vsub.f32 %v9821_v2, %v11145_v1  ;;  %v4634_v13 = vsel %vm2482_vm2, %v4570_v22, 0  ;;  %v4338_v20 = vmul.f32 %v9383_v55, %v9831_v5  ;;  %v3869_v11 = vadd.f32 %v3837_v29, %v3769_v30  ;;  %v9862_v29 = vld [vmem:[#allocation2 + $0xc8] sm:$0xff] }
 0x29d   : > { %v9848_v46 = vand.u32 4294901760, %v4634_v13  ;;  %v4507_v19 = vadd.f32 %v9460_v15, %v4468_v24  ;;  %v4438_v21 = vmul.f32 %v9400_v16, %v9836_v40  ;;  %v4269_v18 = vadd.f32 %v4237_v44, %v4168_v56  ;;  %v9864_v30 = vld [vmem:[#allocation2 + $0xc9] sm:$0xff] }
 0x29e   : > { %v4857_v4 = vand.u32 4294901760, %v4856_v0  ;;  %v3638_v39 = vmul.f32 %v9719_v59, %v9347_v42  ;;  %v3738_v22 = vmul.f32 %v9726_v49, %v9345_v7  ;;  %v3969_v1 = vadd.f32 %v3937_v38, %v3869_v11 }
 0x29f   : > { %11374 = vst [vmem:[#allocation22_spill] sm:$0xff] %v9848_v46  ;;  %v9858_v47 = vsub.f32 %v4634_v13, %v9848_v46  ;;  %v4539_v58 = vmax.f32 %v4507_v19, 0.0  ;;  %v3838_v24 = vmul.f32 %v9728_v9, %v9354_v51  ;;  %v4369_v44 = vadd.f32 %v4337_v23, %v4269_v18  ;;  %v9870_v13 = vld [vmem:[#allocation2 + $0xca] sm:$0xff] }
 0x2a0   : > { %7621 = vmatprep.mubr.f32.mxu0 %v4857_v4  ;;  %v3770_v0 = vadd.f32 %v3738_v22, %v3638_v39  ;;  %v3938_v59 = vmul.f32 %v9792_v48, %v9377_v12  ;;  %v4038_v49 = vmul.f32 %v9799_v61, %v9372_v63  ;;  %v4069_v19 = vadd.f32 %v4037_v32, %v3969_v1 }
 0x2a1   : > { %11375 = vst [vmem:[#allocation23_spill] sm:$0xff] %v9858_v47  ;;  %v11150_v38 = vand.u32 4294901760, %v9858_v47  ;;  %v4571_v56 = vmin.f32 %v4539_v58, 6.0  ;;  %v4138_v9 = vmul.f32 %v9801_v54, %v9374_v10  ;;  %v4469_v11 = vadd.f32 %v4437_v14, %v4369_v44 }
 0x2a2   : > { %v3870_v2 = vadd.f32 %v3838_v24, %v3770_v0  ;;  %v4239_v39 = vmul.f32 %v9381_v60, %v9862_v29  ;;  %v4339_v18 = vmul.f32 %v9383_v55, %v9864_v30  ;;  %v4169_v22 = vadd.f32 %v4137_v36, %v4069_v19  ;;  %v9894_v36 = vld [vmem:[#allocation2 + $0xd8] sm:$0xff] }
 0x2a3   : > { %v4866_v23 = vsub.f32 %v9858_v47, %v11150_v38  ;;  %v4637_v4 = vsel %vm2482_vm2, %v4571_v56, 0  ;;  %v4439_v1 = vmul.f32 %v9400_v16, %v9870_v13  ;;  %v4508_v14 = vadd.f32 %v9460_v15, %v4469_v11 }
 0x2a4   : > { %v9885_v32 = vand.u32 4294901760, %v4637_v4  ;;  %v3970_v58 = vadd.f32 %v3938_v59, %v3870_v2  ;;  %v3639_v24 = vmul.f32 %v9752_v27, %v9347_v42  ;;  %v4270_v0 = vadd.f32 %v4238_v33, %v4169_v22  ;;  %v9901_v59 = vld [vmem:[#allocation2 + $0xd9] sm:$0xff] }
 0x2a5   : > { %v4867_v44 = vand.u32 4294901760, %v4866_v23  ;;  %v3739_v46 = vmul.f32 %v9761_v57, %v9345_v7  ;;  %v3839_v56 = vmul.f32 %v9763_v53, %v9354_v51  ;;  %v4540_v19 = vmax.f32 %v4508_v14, 0.0  ;;  %v9903_v27 = vld [vmem:[#allocation2 + $0xda] sm:$0xff] }
 0x2a6   : > { %11376 = vst [vmem:[#allocation26_spill] sm:$0xff] %v9885_v32  ;;  %v9897_v16 = vsub.f32 %v4637_v4, %v9885_v32  ;;  %v4070_v38 = vadd.f32 %v4038_v49, %v3970_v58  ;;  %v3939_v2 = vmul.f32 %v9823_v50, %v9377_v12  ;;  %v4370_v33 = vadd.f32 %v4338_v20, %v4270_v0  ;;  %v9917_v20 = vld [vmem:[%s11016_s5 + $0x8] ss:$0 sm:$0xff] }
 0x2a7   : > { %7622 = vmatmul.mubr.f32.gmra.mrb[40].mxu0 %v4867_v44  ;;  %v3771_v57 = vadd.f32 %v3739_v46, %v3639_v24  ;;  %v4039_v53 = vmul.f32 %v9831_v5, %v9372_v63  ;;  %v4139_v11 = vmul.f32 %v9836_v40, %v9374_v10  ;;  %v4572_v4 = vmin.f32 %v4540_v19, 6.0 }
 0x2a8   : > { %11377 = vst [vmem:[#allocation27_spill] sm:$0xff] %v9897_v16  ;;  %v11151_v23 = vand.u32 4294901760, %v9897_v16  ;;  %v4170_v49 = vadd.f32 %v4138_v9, %v4070_v38  ;;  %v4240_v22 = vmul.f32 %v9381_v60, %v9894_v36  ;;  %v4470_v14 = vadd.f32 %v4438_v21, %v4370_v33  ;;  %v8469_v21 = vld [vmem:[%s11018_s7] sm:$0xff] }
 0x2a9   : > { %v3871_v58 = vadd.f32 %v3839_v56, %v3771_v57  ;;  %v4340_v44 = vmul.f32 %v9383_v55, %v9901_v59  ;;  %v4440_v46 = vmul.f32 %v9917_v20, %v9903_v27  ;;  %v4640_v9 = vsel %vm2482_vm2, %v4572_v4, 0 }
 0x2aa   : > { %v4876_v38 = vsub.f32 %v9897_v16, %v11151_v23  ;;  %v4271_v24 = vadd.f32 %v4239_v39, %v4170_v49  ;;  %v11378_v0 = vand.u32 4294901760, %v9273_v25  ;;  %v9932_v19 = vand.u32 4294901760, %v4640_v9  ;;  %v8470_v23 = vld [vmem:[%s11018_s7 + $0x8] sm:$0xff] }
 0x2ab   : > { %v4509_v33 = vadd.f32 %v9460_v15, %v4470_v14  ;;  %v3971_v57 = vadd.f32 %v3939_v2, %v3871_v58  ;;  %v11380_v4 = vand.u32 4294901760, %v9278_v26  ;;  %v3640_v25 = vmul.f32 %v9792_v48, %v9347_v42 }
 0x2ac   : > { %v9930_v56 = vsub.f32 %v8469_v21, %v11378_v0  ;;  %11379 = vst [vmem:[#allocation32_spill] sm:$0xff] %v9932_v19  ;;  %v4877_v49 = vand.u32 4294901760, %v4876_v38  ;;  %v4371_v16 = vadd.f32 %v4339_v18, %v4271_v24  ;;  %v9946_v21 = vsub.f32 %v4640_v9, %v9932_v19 }
 0x2ad   : > { %v9940_v39 = vsub.f32 %v8470_v23, %v11380_v4  ;;  %v4541_v14 = vmax.f32 %v4509_v33, 0.0  ;;  %v4071_v2 = vadd.f32 %v4039_v53, %v3971_v57  ;;  %v3740_v18 = vmul.f32 %v9799_v61, %v9345_v7 }
 0x2ae   : > { %v11158_v47 = vand.u32 4294901760, %v9930_v56  ;;  %11381 = vst [vmem:[#allocation11_spill] sm:$0xff] %v9946_v21  ;;  %7624 = vmatprep.mubr.f32.mxu0 %v4877_v49  ;;  %v4471_v0 = vadd.f32 %v4439_v1, %v4371_v16  ;;  %v3840_v23 = vmul.f32 %v9801_v54, %v9354_v51  ;;  %v11157_v48 = vand.u32 4294901760, %v9946_v21 }
 0x2af   : > { %v11156_v58 = vand.u32 4294901760, %v9940_v39  ;;  %v4573_v38 = vmin.f32 %v4541_v14, 6.0  ;;  %v4171_v9 = vadd.f32 %v4139_v11, %v4071_v2  ;;  %v3772_v24 = vadd.f32 %v3740_v18, %v3640_v25  ;;  %v9967_v11 = vld [vmem:[#allocation2 + $0xe0] sm:$0xff] }
 0x2b0   : > { %v5097_v26 = vsub.f32 %v9930_v56, %v11158_v47  ;;  %v4510_v1 = vadd.f32 %v9460_v15, %v4471_v0  ;;  %v3940_v33 = vmul.f32 %v9862_v29, %v9377_v12  ;;  %v4886_v61 = vsub.f32 %v9946_v21, %v11157_v48  ;;  %v9973_v0 = vld [vmem:[#allocation2 + $0xe1] sm:$0xff] }
 0x2b1   : > { %v5104_v53 = vsub.f32 %v9940_v39, %v11156_v58  ;;  %v4643_v54 = vsel %vm2482_vm2, %v4573_v38, 0  ;;  %v4272_v57 = vadd.f32 %v4240_v22, %v4171_v9  ;;  %v3872_v2 = vadd.f32 %v3840_v23, %v3772_v24 }
 0x2b2   : > { %v5098_v16 = vand.u32 4294901760, %v5097_v26  ;;  %v9969_v49 = vand.u32 4294901760, %v4643_v54  ;;  %v4542_v14 = vmax.f32 %v4510_v1, 0.0  ;;  %v4040_v25 = vmul.f32 %v9864_v30, %v9372_v63  ;;  %v9975_v26 = vld [vmem:[#allocation2 + $0xe2] sm:$0xff] }
 0x2b3   : > { %v5105_v4 = vand.u32 4294901760, %v5104_v53  ;;  %v4887_v18 = vand.u32 4294901760, %v4886_v61  ;;  %v4372_v58 = vadd.f32 %v4340_v44, %v4272_v57  ;;  %v4140_v22 = vmul.f32 %v9870_v13, %v9374_v10 }
 0x2b4   : > { %11382 = vst [vmem:[#allocation13_spill] sm:$0xff] %v9969_v49  ;;  %v9982_v38 = vsub.f32 %v4643_v54, %v9969_v49  ;;  %v4574_v9 = vmin.f32 %v4542_v14, 6.0  ;;  %v3972_v53 = vadd.f32 %v3940_v33, %v3872_v2  ;;  %v4241_v23 = vmul.f32 %v9381_v60, %v9967_v11  ;;  %v10002_v14 = vld [vmem:[#allocation2 + $0xf0] sm:$0xff] }
 0x2b5   : > { %v9977_v48 = vpack.c.bf16 %v5105_v4, %v5098_v16  ;;  %7625 = vmatmul.mubr.f32.gmra.mrb[42].mxu0 %v4887_v18  ;;  %v4472_v1 = vadd.f32 %v4440_v46, %v4372_v58  ;;  %v4341_v44 = vmul.f32 %v9383_v55, %v9973_v0  ;;  %v4441_v16 = vmul.f32 %v9917_v20, %v9975_v26  ;;  %v10004_v2 = vld [vmem:[#allocation2 + $0xf1] sm:$0xff] }
 0x2b6   : > { %11383 = vst [vmem:[#allocation15_spill] sm:$0xff] %v9982_v38  ;;  %v11161_v24 = vand.u32 4294901760, %v9982_v38  ;;  %v4646_v61 = vsel %vm2482_vm2, %v4574_v9, 0  ;;  %v4072_v54 = vadd.f32 %v4040_v25, %v3972_v53  ;;  %v3641_v33 = vmul.f32 %v9823_v50, %v9347_v42  ;;  %v10013_v9 = vld [vmem:[#allocation2 + $0xf2] sm:$0xff] }
 0x2b7   : > { %7970 = vmatprep.subr.bf16.mxu1 %v9977_v48  ;;  %v9995_v57 = vand.u32 4294901760, %v4646_v61  ;;  %v4511_v46 = vadd.f32 %v9460_v15, %v4472_v1  ;;  %v3741_v58 = vmul.f32 %v9831_v5, %v9345_v7  ;;  %v3841_v4 = vmul.f32 %v9836_v40, %v9354_v51 }
 0x2b8   : > { %v4896_v25 = vsub.f32 %v9982_v38, %v11161_v24  ;;  %v4172_v18 = vadd.f32 %v4140_v22, %v4072_v54  ;;  %v3941_v50 = vmul.f32 %v9894_v36, %v9377_v12  ;;  %v4041_v15 = vmul.f32 %v9901_v59, %v9372_v63 }
 0x2b9   : > { %11384 = vst [vmem:[#allocation17_spill] sm:$0xff] %v9995_v57  ;;  %v10016_v5 = vsub.f32 %v4646_v61, %v9995_v57  ;;  %v4543_v40 = vmax.f32 %v4511_v46, 0.0  ;;  %v3773_v53 = vadd.f32 %v3741_v58, %v3641_v33  ;;  %v4141_v1 = vmul.f32 %v9903_v27, %v9374_v10 }
 0x2ba   : > { %v4897_v47 = vand.u32 4294901760, %v4896_v25  ;;  %v4273_v21 = vadd.f32 %v4241_v23, %v4172_v18  ;;  %v4242_v22 = vmul.f32 %v9381_v60, %v10002_v14  ;;  %v4342_v54 = vmul.f32 %v9383_v55, %v10004_v2  ;;  %v10033_v25 = vld [vmem:[#allocation2 + $0xf8] sm:$0xff] }
 0x2bb   : > { %11385 = vst [vmem:[#allocation18_spill] sm:$0xff] %v10016_v5  ;;  %v11170_v24 = vand.u32 4294901760, %v10016_v5  ;;  %v4575_v38 = vmin.f32 %v4543_v40, 6.0  ;;  %v3873_v49 = vadd.f32 %v3841_v4, %v3773_v53  ;;  %v4442_v61 = vmul.f32 %v9917_v20, %v10013_v9  ;;  %v10047_v53 = vld [vmem:[#allocation2 + $0xfa] sm:$0xff] }
 0x2bc   : > { %7627 = vmatprep.mubr.f32.mxu0 %v4897_v47  ;;  %v4373_v33 = vadd.f32 %v4341_v44, %v4273_v21  ;;  %v3642_v46 = vmul.f32 %v9862_v29, %v9347_v42  ;;  %v3742_v23 = vmul.f32 %v9864_v30, %v9345_v7  ;;  %v3842_v58 = vmul.f32 %v9870_v13, %v9354_v51  ;;  %v10041_v21 = vld [vmem:[#allocation2 + $0xf9] sm:$0xff] }
 0x2bd   : > { %v4906_v4 = vsub.f32 %v10016_v5, %v11170_v24  ;;  %v4649_v18 = vsel %vm2482_vm2, %v4575_v38, 0  ;;  %v3973_v40 = vadd.f32 %v3941_v50, %v3873_v49  ;;  %v3942_v47 = vmul.f32 %v9967_v11, %v9377_v12 }
 0x2be   : > { %v10043_v29 = vand.u32 4294901760, %v4649_v18  ;;  %v4473_v30 = vadd.f32 %v4441_v16, %v4373_v33  ;;  %v3774_v44 = vadd.f32 %v3742_v23, %v3642_v46  ;;  %v4042_v13 = vmul.f32 %v9973_v0, %v9372_v63  ;;  %v10059_v16 = vld [vmem:[%s11017_s6] ss:$0 sm:$0xff] }
 0x2bf   : > { %v4907_v57 = vand.u32 4294901760, %v4906_v4  ;;  %v4073_v19 = vadd.f32 %v4041_v15, %v3973_v40  ;;  %v4142_v38 = vmul.f32 %v9975_v26, %v9374_v10  ;;  %v4243_v49 = vmul.f32 %v9381_v60, %v10033_v25 }
 0x2c0   : > { %11386 = vst [vmem:[#allocation19_spill] sm:$0xff] %v10043_v29  ;;  %v10054_v50 = vsub.f32 %v4649_v18, %v10043_v29  ;;  %v4512_v33 = vadd.f32 %v10059_v16, %v4473_v30  ;;  %v3874_v46 = vadd.f32 %v3842_v58, %v3774_v44  ;;  %v4343_v15 = vmul.f32 %v9383_v55, %v10041_v21  ;;  %v10073_v30 = vld [vmem:[#allocation2 + $0x108] sm:$0xff] }
 0x2c1   : > { %7628 = vmatmul.mubr.f32.gmra.mrb[44].mxu0 %v4907_v57  ;;  %v4173_v23 = vadd.f32 %v4141_v1, %v4073_v19  ;;  %v4443_v4 = vmul.f32 %v9917_v20, %v10047_v53  ;;  %v3643_v18 = vmul.f32 %v9894_v36, %v9347_v42  ;;  %v3743_v40 = vmul.f32 %v9901_v59, %v9345_v7  ;;  %v10075_v57 = vld [vmem:[#allocation2 + $0x109] sm:$0xff] }
 0x2c2   : > { %11387 = vst [vmem:[#allocation24_spill] sm:$0xff] %v10054_v50  ;;  %v11181_v24 = vand.u32 4294901760, %v10054_v50  ;;  %v4544_v5 = vmax.f32 %v4512_v33, 0.0  ;;  %v3974_v29 = vadd.f32 %v3942_v47, %v3874_v46  ;;  %v3843_v58 = vmul.f32 %v9903_v27, %v9354_v51  ;;  %v10081_v59 = vld [vmem:[#allocation2 + $0x10a] sm:$0xff] }
 0x2c3   : > { %v4274_v19 = vadd.f32 %v4242_v22, %v4173_v23  ;;  %v3775_v1 = vadd.f32 %v3743_v40, %v3643_v18  ;;  %v3943_v44 = vmul.f32 %v10002_v14, %v9377_v12  ;;  %v4043_v36 = vmul.f32 %v10004_v2, %v9372_v63 }
 0x2c4   : > { %v4916_v47 = vsub.f32 %v10054_v50, %v11181_v24  ;;  %v4576_v33 = vmin.f32 %v4544_v5, 6.0  ;;  %v4074_v27 = vadd.f32 %v4042_v13, %v3974_v29  ;;  %v4143_v46 = vmul.f32 %v10013_v9, %v9374_v10 }
 0x2c5   : > { %v4374_v32 = vadd.f32 %v4342_v54, %v4274_v19  ;;  %v3875_v22 = vadd.f32 %v3843_v58, %v3775_v1  ;;  %v4244_v23 = vmul.f32 %v9381_v60, %v10073_v30  ;;  %v4344_v18 = vmul.f32 %v9383_v55, %v10075_v57  ;;  %v10099_v58 = vld [vmem:[#allocation2 + $0x110] sm:$0xff] }
 0x2c6   : > { %v4917_v40 = vand.u32 4294901760, %v4916_v47  ;;  %v4652_v43 = vsel %vm2482_vm2, %v4576_v33, 0  ;;  %v4174_v41 = vadd.f32 %v4142_v38, %v4074_v27  ;;  %v4444_v24 = vmul.f32 %v9917_v20, %v10081_v59  ;;  %v10107_v33 = vld [vmem:[#allocation2 + $0x111] sm:$0xff] }
 0x2c7   : > { %v10095_v5 = vand.u32 4294901760, %v4652_v43  ;;  %v4474_v29 = vadd.f32 %v4442_v61, %v4374_v32  ;;  %v3975_v13 = vadd.f32 %v3943_v44, %v3875_v22  ;;  %v3644_v54 = vmul.f32 %v9967_v11, %v9347_v42 }
 0x2c8   : > { %7630 = vmatprep.mubr.f32.mxu1 %v4917_v40  ;;  %v4275_v19 = vadd.f32 %v4243_v49, %v4174_v41  ;;  %v3744_v1 = vmul.f32 %v9973_v0, %v9345_v7  ;;  %v3844_v38 = vmul.f32 %v9975_v26, %v9354_v51  ;;  %v3944_v47 = vmul.f32 %v10033_v25, %v9377_v12  ;;  %v10115_v49 = vld [vmem:[#allocation2 + $0x112] sm:$0xff] }
 0x2c9   : > { %11388 = vst [vmem:[#allocation25_spill] sm:$0xff] %v10095_v5  ;;  %v10110_v32 = vsub.f32 %v4652_v43, %v10095_v5  ;;  %v4513_v11 = vadd.f32 %v10059_v16, %v4474_v29  ;;  %v4075_v61 = vadd.f32 %v4043_v36, %v3975_v13  ;;  %v4044_v41 = vmul.f32 %v10041_v21, %v9372_v63 }
 0x2ca   : > { %v4375_v0 = vadd.f32 %v4343_v15, %v4275_v19  ;;  %v3776_v44 = vadd.f32 %v3744_v1, %v3644_v54  ;;  %v4144_v26 = vmul.f32 %v10047_v53, %v9374_v10  ;;  %v4245_v27 = vmul.f32 %v9381_v60, %v10099_v58 }
 0x2cb   : > { %11389 = vst [vmem:[#allocation28_spill] sm:$0xff] %v10110_v32  ;;  %v11184_v22 = vand.u32 4294901760, %v10110_v32  ;;  %v4545_v43 = vmax.f32 %v4513_v11, 0.0  ;;  %v4175_v40 = vadd.f32 %v4143_v46, %v4075_v61  ;;  %v4345_v36 = vmul.f32 %v9383_v55, %v10107_v33 }
 0x2cc   : > { %v4475_v29 = vadd.f32 %v4443_v4, %v4375_v0  ;;  %v3876_v13 = vadd.f32 %v3844_v38, %v3776_v44  ;;  %v4445_v50 = vmul.f32 %v9917_v20, %v10115_v49  ;;  %v3645_v15 = vmul.f32 %v10002_v14, %v9347_v42  ;;  %v10138_v0 = vld [vmem:[#allocation2 + $0x120] sm:$0xff] }
 0x2cd   : > { %v4926_v54 = vsub.f32 %v10110_v32, %v11184_v22  ;;  %v4577_v19 = vmin.f32 %v4545_v43, 6.0  ;;  %v4276_v1 = vadd.f32 %v4244_v23, %v4175_v40  ;;  %v3745_v46 = vmul.f32 %v10004_v2, %v9345_v7  ;;  %v10141_v23 = vld [vmem:[#allocation2 + $0x121] sm:$0xff] }
 0x2ce   : > { %v4514_v11 = vadd.f32 %v10059_v16, %v4475_v29  ;;  %v3976_v61 = vadd.f32 %v3944_v47, %v3876_v13  ;;  %v3845_v4 = vmul.f32 %v10013_v9, %v9354_v51  ;;  %v3945_v38 = vmul.f32 %v10073_v30, %v9377_v12  ;;  %v10147_v9 = vld [vmem:[#allocation2 + $0x122] sm:$0xff] }
 0x2cf   : > { %v4927_v14 = vand.u32 4294901760, %v4926_v54  ;;  %v4655_v44 = vsel %vm2482_vm2, %v4577_v19, 0  ;;  %v4376_v22 = vadd.f32 %v4344_v18, %v4276_v1  ;;  %v3777_v43 = vadd.f32 %v3745_v46, %v3645_v15 }
 0x2d0   : > { %v10143_v40 = vand.u32 4294901760, %v4655_v44  ;;  %v4546_v2 = vmax.f32 %v4514_v11, 0.0  ;;  %v4076_v29 = vadd.f32 %v4044_v41, %v3976_v61  ;;  %v4045_v47 = vmul.f32 %v10075_v57, %v9372_v63  ;;  %v8472_v11 = vld [vmem:[%s11018_s7 + $0x10] sm:$0xff] }
 0x2d1   : > { %7631 = vmatmul.mubr.f32.vlgmr.msra.gmra.mrb[4].mxu1 %v4927_v14  ;;  %v4476_v13 = vadd.f32 %v4444_v24, %v4376_v22  ;;  %v3877_v32 = vadd.f32 %v3845_v4, %v3777_v43  ;;  %v4145_v54 = vmul.f32 %v10081_v59, %v9374_v10  ;;  %v4246_v18 = vmul.f32 %v9381_v60, %v10138_v0 }
 0x2d2   : > { %11390 = vst [vmem:[#allocation29_spill] sm:$0xff] %v10143_v40  ;;  %7972 = vmatpush3.bf16.msra.mxu1 %v9977_v48  ;;  %v10155_v15 = vsub.f32 %v4655_v44, %v10143_v40  ;;  %v4578_v41 = vmin.f32 %v4546_v2, 6.0  ;;  %v4176_v19 = vadd.f32 %v4144_v26, %v4076_v29  ;;  %v4346_v1 = vmul.f32 %v9383_v55, %v10141_v23 }
 0x2d3   : > { %v4515_v46 = vadd.f32 %v10059_v16, %v4476_v13  ;;  %v3977_v24 = vadd.f32 %v3945_v38, %v3877_v32  ;;  %v4446_v22 = vmul.f32 %v9917_v20, %v10147_v9  ;;  %v11392_v48 = vand.u32 4294901760, %v9293_v3  ;;  %v8473_v32 = vld [vmem:[%s11018_s7 + $0x18] sm:$0xff] }
 0x2d4   : > { %11391 = vst [vmem:[#allocation30_spill] sm:$0xff] %v10155_v15  ;;  %v11188_v4 = vand.u32 4294901760, %v10155_v15  ;;  %v4658_v26 = vsel %vm2482_vm2, %v4578_v41, 0  ;;  %v4277_v14 = vadd.f32 %v4245_v27, %v4176_v19  ;;  %v11393_v38 = vand.u32 4294901760, %v9298_v37 }
 0x2d5   : > { %v10167_v61 = vsub.f32 %v8472_v11, %v11392_v48  ;;  %v10178_v43 = vand.u32 4294901760, %v4658_v26  ;;  %v4547_v2 = vmax.f32 %v4515_v46, 0.0  ;;  %v4077_v29 = vadd.f32 %v4045_v47, %v3977_v24 }
 0x2d6   : > { %v10176_v44 = vsub.f32 %v8473_v32, %v11393_v38  ;;  %v4936_v13 = vsub.f32 %v10155_v15, %v11188_v4  ;;  %v4377_v41 = vadd.f32 %v4345_v36, %v4277_v14  ;;  %v3646_v19 = vmul.f32 %v10033_v25, %v9347_v42 }
 0x2d7   : > { %11394 = vst [vmem:[#allocation31_spill] sm:$0xff] %v10178_v43  ;;  %v11191_v3 = vand.u32 4294901760, %v10167_v61  ;;  %v10188_v37 = vsub.f32 %v4658_v26, %v10178_v43  ;;  %v4579_v11 = vmin.f32 %v4547_v2, 6.0  ;;  %v4177_v48 = vadd.f32 %v4145_v54, %v4077_v29 }
 0x2d8   : > { %v11189_v27 = vand.u32 4294901760, %v10176_v44  ;;  %v4937_v46 = vand.u32 4294901760, %v4936_v13  ;;  %v4477_v24 = vadd.f32 %v4445_v50, %v4377_v41  ;;  %v3746_v14 = vmul.f32 %v10041_v21, %v9345_v7 }
 0x2d9   : > { %11395 = vst [vmem:[#allocation33_spill] sm:$0xff] %v10188_v37  ;;  %v5111_v47 = vsub.f32 %v10167_v61, %v11191_v3  ;;  %v11187_v25 = vand.u32 4294901760, %v10188_v37  ;;  %v4661_v26 = vsel %vm2482_vm2, %v4579_v11, 0  ;;  %v4278_v32 = vadd.f32 %v4246_v18, %v4177_v48  ;;  %v10210_v18 = vld [vmem:[#allocation2 + $0x128] sm:$0xff] }
 0x2da   : > { %v5118_v36 = vsub.f32 %v10176_v44, %v11189_v27  ;;  %7633 = vmatprep.mubr.f32.mxu1 %v4937_v46  ;;  %v10200_v54 = vand.u32 4294901760, %v4661_v26  ;;  %v4516_v2 = vadd.f32 %v10059_v16, %v4477_v24  ;;  %v3778_v50 = vadd.f32 %v3746_v14, %v3646_v19  ;;  %v10212_v48 = vld [vmem:[#allocation2 + $0x129] sm:$0xff]  ;;  %v10247_v27 = vld [vmem:[#allocation2 + $0x139] sm:$0xff] }
 0x2db   : > { %v5112_v38 = vand.u32 4294901760, %v5111_v47  ;;  %v4946_v13 = vsub.f32 %v10188_v37, %v11187_v25  ;;  %v4378_v41 = vadd.f32 %v4346_v1, %v4278_v32  ;;  %v3846_v21 = vmul.f32 %v10047_v53, %v9354_v51 }
 0x2dc   : > { %11396 = vst [vmem:[#allocation34_spill] sm:$0xff] %v10200_v54  ;;  %v5119_v29 = vand.u32 4294901760, %v5118_v36  ;;  %v3946_v11 = vmul.f32 %v10099_v58, %v9377_v12  ;;  %v10215_v47 = vsub.f32 %v4661_v26, %v10200_v54  ;;  %v4548_v46 = vmax.f32 %v4516_v2, 0.0  ;;  %v10219_v36 = vld [vmem:[#allocation2 + $0x12a] sm:$0xff] }
 0x2dd   : > { %v4046_v24 = vmul.f32 %v10107_v33, %v9372_v63  ;;  %v4947_v1 = vand.u32 4294901760, %v4946_v13  ;;  %v4478_v14 = vadd.f32 %v4446_v22, %v4378_v41  ;;  %v3878_v53 = vadd.f32 %v3846_v21, %v3778_v50 }
 0x2de   : > { %11397 = vst [vmem:[#allocation35_spill] sm:$0xff] %v10215_v47  ;;  %v7973_v19 = vpack.c.bf16 %v5119_v29, %v5112_v38  ;;  %v4146_v32 = vmul.f32 %v10115_v49, %v9374_v10  ;;  %v11190_v25 = vand.u32 4294901760, %v10215_v47  ;;  %v4580_v4 = vmin.f32 %v4548_v46, 6.0 }
 0x2df   : > { %v4247_v26 = vmul.f32 %v9381_v60, %v10210_v18  ;;  %v4347_v38 = vmul.f32 %v9383_v55, %v10212_v48  ;;  %7634 = vmatmul.mubr.f32.gmra.mrb[6].mxu1 %v4947_v1  ;;  %v4517_v2 = vadd.f32 %v10059_v16, %v4478_v14  ;;  %v3978_v29 = vadd.f32 %v3946_v11, %v3878_v53  ;;  %v10241_v11 = vld [vmem:[#allocation2 + $0x138] sm:$0xff] }
 0x2e0   : > { %7974 = vmatprep.subr.bf16.mxu1 %v7973_v19  ;;  %v4447_v22 = vmul.f32 %v9917_v20, %v10219_v36  ;;  %v3647_v50 = vmul.f32 %v10073_v30, %v9347_v42  ;;  %v4956_v13 = vsub.f32 %v10215_v47, %v11190_v25  ;;  %v4664_v41 = vsel %vm2482_vm2, %v4580_v4, 0  ;;  %v10249_v25 = vld [vmem:[#allocation2 + $0x13a] sm:$0xff] }
 0x2e1   : > { %7976 = vmatpush3.bf16.msra.mxu1 %v7973_v19  ;;  %v3747_v21 = vmul.f32 %v10075_v57, %v9345_v7  ;;  %v3847_v46 = vmul.f32 %v10081_v59, %v9354_v51  ;;  %v10243_v1 = vand.u32 4294901760, %v4664_v41  ;;  %v4549_v14 = vmax.f32 %v4517_v2, 0.0 }
 0x2e2   : > { %v4078_v53 = vadd.f32 %v4046_v24, %v3978_v29  ;;  %v3947_v30 = vmul.f32 %v10138_v0, %v9377_v12  ;;  %v4957_v4 = vand.u32 4294901760, %v4956_v13  ;;  %v4047_v57 = vmul.f32 %v10141_v23, %v9372_v63 }
 0x2e3   : > { %11398 = vst [vmem:[#allocation36_spill] sm:$0xff] %v10243_v1  ;;  %v3779_v19 = vadd.f32 %v3747_v21, %v3647_v50  ;;  %v4147_v59 = vmul.f32 %v10147_v9, %v9374_v10  ;;  %v10256_v3 = vsub.f32 %v4664_v41, %v10243_v1  ;;  %v4581_v2 = vmin.f32 %v4549_v14, 6.0  ;;  %v10285_v1 = vld [vmem:[#allocation2 + $0x142] sm:$0xff] }
 0x2e4   : > { %v4178_v24 = vadd.f32 %v4146_v32, %v4078_v53  ;;  %v4248_v29 = vmul.f32 %v9381_v60, %v10241_v11  ;;  %7636 = vmatprep.mubr.f32.mxu1 %v4957_v4  ;;  %v4348_v13 = vmul.f32 %v9383_v55, %v10247_v27  ;;  %v4448_v50 = vmul.f32 %v9917_v20, %v10249_v25  ;;  %v10270_v53 = vld [vmem:[#allocation2 + $0x140] sm:$0xff] }
 0x2e5   : > { %11399 = vst [vmem:[#allocation37_spill] sm:$0xff] %v10256_v3  ;;  %v3879_v47 = vadd.f32 %v3847_v46, %v3779_v19  ;;  %v3648_v21 = vmul.f32 %v10099_v58, %v9347_v42  ;;  %v11206_v37 = vand.u32 4294901760, %v10256_v3  ;;  %v4667_v41 = vsel %vm2482_vm2, %v4581_v2, 0  ;;  %v10278_v58 = vld [vmem:[#allocation2 + $0x141] sm:$0xff] }
 0x2e6   : > { %v4279_v14 = vadd.f32 %v4247_v26, %v4178_v24  ;;  %v3748_v32 = vmul.f32 %v10107_v33, %v9345_v7  ;;  %v10272_v46 = vand.u32 4294901760, %v4667_v41  ;;  %v3848_v19 = vmul.f32 %v10115_v49, %v9354_v51 }
 0x2e7   : > { %v3979_v4 = vadd.f32 %v3947_v30, %v3879_v47  ;;  %v3948_v15 = vmul.f32 %v10210_v18, %v9377_v12  ;;  %v4966_v26 = vsub.f32 %v10256_v3, %v11206_v37  ;;  %v4048_v33 = vmul.f32 %v10212_v48, %v9372_v63 }
 0x2e8   : > { %11400 = vst [vmem:[#allocation38_spill] sm:$0xff] %v10272_v46  ;;  %v4379_v2 = vadd.f32 %v4347_v38, %v4279_v14  ;;  %v3780_v24 = vadd.f32 %v3748_v32, %v3648_v21  ;;  %v10288_v47 = vsub.f32 %v4667_v41, %v10272_v46  ;;  %v4148_v30 = vmul.f32 %v10219_v36, %v9374_v10 }
 0x2e9   : > { %v4079_v49 = vadd.f32 %v4047_v57, %v3979_v4  ;;  %v4249_v54 = vmul.f32 %v9381_v60, %v10270_v53  ;;  %v4967_v43 = vand.u32 4294901760, %v4966_v26  ;;  %v4349_v38 = vmul.f32 %v9383_v55, %v10278_v58  ;;  %v10306_v26 = vld [vmem:[#allocation2 + $0x150] sm:$0xff] }
 0x2ea   : > { %11401 = vst [vmem:[#allocation39_spill] sm:$0xff] %v10288_v47  ;;  %v4479_v40 = vadd.f32 %v4447_v22, %v4379_v2  ;;  %v3880_v37 = vadd.f32 %v3848_v19, %v3780_v24  ;;  %v11209_v21 = vand.u32 4294901760, %v10288_v47  ;;  %v4449_v41 = vmul.f32 %v9917_v20, %v10285_v1  ;;  %v10308_v2 = vld [vmem:[#allocation2 + $0x151] sm:$0xff] }
 0x2eb   : > { %v4179_v14 = vadd.f32 %v4147_v59, %v4079_v49  ;;  %v3649_v57 = vmul.f32 %v10138_v0, %v9347_v42  ;;  %7637 = vmatmul.mubr.f32.gmra.mrb[8].mxu1 %v4967_v43  ;;  %v3749_v22 = vmul.f32 %v10141_v23, %v9345_v7  ;;  %v3849_v19 = vmul.f32 %v10147_v9, %v9354_v51 }
 0x2ec   : > { %v4518_v32 = vadd.f32 %v10059_v16, %v4479_v40  ;;  %v3980_v4 = vadd.f32 %v3948_v15, %v3880_v37  ;;  %v4976_v59 = vsub.f32 %v10288_v47, %v11209_v21  ;;  %v3949_v0 = vmul.f32 %v10241_v11, %v9377_v12  ;;  %v10317_v15 = vld [vmem:[#allocation2 + $0x152] sm:$0xff] }
 0x2ed   : > { %v4280_v24 = vadd.f32 %v4248_v29, %v4179_v14  ;;  %v4049_v40 = vmul.f32 %v10247_v27, %v9372_v63  ;;  %v3781_v9 = vadd.f32 %v3749_v22, %v3649_v57  ;;  %v4149_v37 = vmul.f32 %v10249_v25, %v9374_v10 }
 0x2ee   : > { %v4550_v23 = vmax.f32 %v4518_v32, 0.0  ;;  %v4080_v43 = vadd.f32 %v4048_v33, %v3980_v4  ;;  %v4977_v49 = vand.u32 4294901760, %v4976_v59  ;;  %v4250_v21 = vmul.f32 %v9381_v60, %v10306_v26  ;;  %v10333_v4 = vld [vmem:[#allocation2 + $0x158] sm:$0xff] }
 0x2ef   : > { %v4380_v3 = vadd.f32 %v4348_v13, %v4280_v24  ;;  %v4350_v29 = vmul.f32 %v9383_v55, %v10308_v2  ;;  %v3881_v46 = vadd.f32 %v3849_v19, %v3781_v9  ;;  %v4450_v5 = vmul.f32 %v9917_v20, %v10317_v15  ;;  %v10338_v24 = vld [vmem:[#allocation2 + $0x159] sm:$0xff] }
 0x2f0   : > { %v4582_v14 = vmin.f32 %v4550_v23, 6.0  ;;  %v4180_v47 = vadd.f32 %v4148_v30, %v4080_v43  ;;  %7639 = vmatprep.mubr.f32.mxu1 %v4977_v49  ;;  %v3650_v57 = vmul.f32 %v10210_v18, %v9347_v42  ;;  %v3750_v13 = vmul.f32 %v10212_v48, %v9345_v7 }
 0x2f1   : > { %v4480_v33 = vadd.f32 %v4448_v50, %v4380_v3  ;;  %v3850_v32 = vmul.f32 %v10219_v36, %v9354_v51  ;;  %v3981_v19 = vadd.f32 %v3949_v0, %v3881_v46  ;;  %v3950_v59 = vmul.f32 %v10270_v53, %v9377_v12  ;;  %v10345_v36 = vld [vmem:[#allocation2 + $0x15a] sm:$0xff] }
 0x2f2   : > { %v4670_v22 = vsel %vm2482_vm2, %v4582_v14, 0  ;;  %v4281_v30 = vadd.f32 %v4249_v54, %v4180_v47  ;;  %v3782_v50 = vadd.f32 %v3750_v13, %v3650_v57  ;;  %v4050_v48 = vmul.f32 %v10278_v58, %v9372_v63 }
 0x2f3   : > { %v10340_v3 = vand.u32 4294901760, %v4670_v22  ;;  %v4519_v18 = vadd.f32 %v10059_v16, %v4480_v33  ;;  %v4081_v43 = vadd.f32 %v4049_v40, %v3981_v19  ;;  %v4150_v54 = vmul.f32 %v10285_v1, %v9374_v10 }
 0x2f4   : > { %v4381_v23 = vadd.f32 %v4349_v38, %v4281_v30  ;;  %v4251_v46 = vmul.f32 %v9381_v60, %v10333_v4  ;;  %v3882_v9 = vadd.f32 %v3850_v32, %v3782_v50  ;;  %v4351_v49 = vmul.f32 %v9383_v55, %v10338_v24 }
 0x2f5   : > { %11402 = vst [vmem:[#allocation40_spill] sm:$0xff] %v10340_v3  ;;  %v10352_v47 = vsub.f32 %v4670_v22, %v10340_v3  ;;  %v4551_v0 = vmax.f32 %v4519_v18, 0.0  ;;  %v4181_v33 = vadd.f32 %v4149_v37, %v4081_v43  ;;  %v4451_v38 = vmul.f32 %v9917_v20, %v10345_v36 }
 0x2f6   : > { %v4481_v14 = vadd.f32 %v4449_v41, %v4381_v23  ;;  %v3651_v40 = vmul.f32 %v10241_v11, %v9347_v42  ;;  %v3982_v30 = vadd.f32 %v3950_v59, %v3882_v9  ;;  %v3751_v22 = vmul.f32 %v10247_v27, %v9345_v7  ;;  %v10372_v23 = vld [vmem:[#allocation2 + $0x168] sm:$0xff] }
 0x2f7   : > { %v11216_v57 = vand.u32 4294901760, %v10352_v47  ;;  %v4583_v13 = vmin.f32 %v4551_v0, 6.0  ;;  %v4282_v19 = vadd.f32 %v4250_v21, %v4181_v33  ;;  %v3851_v41 = vmul.f32 %v10249_v25, %v9354_v51  ;;  %v10378_v0 = vld [vmem:[#allocation2 + $0x169] sm:$0xff] }
 0x2f8   : > { %v4520_v32 = vadd.f32 %v10059_v16, %v4481_v14  ;;  %v3951_v37 = vmul.f32 %v10306_v26, %v9377_v12  ;;  %v4082_v50 = vadd.f32 %v4050_v48, %v3982_v30  ;;  %v3783_v59 = vadd.f32 %v3751_v22, %v3651_v40  ;;  %v10380_v9 = vld [vmem:[#allocation2 + $0x16a] sm:$0xff] }
 0x2f9   : > { %v4986_v11 = vsub.f32 %v10352_v47, %v11216_v57  ;;  %v4673_v18 = vsel %vm2482_vm2, %v4583_v13, 0  ;;  %v4382_v21 = vadd.f32 %v4350_v29, %v4282_v19  ;;  %v4051_v25 = vmul.f32 %v10308_v2, %v9372_v63 }
 0x2fa   : > { %v10374_v27 = vand.u32 4294901760, %v4673_v18  ;;  %v4552_v43 = vmax.f32 %v4520_v32, 0.0  ;;  %v4182_v33 = vadd.f32 %v4150_v54, %v4082_v50  ;;  %v3883_v57 = vadd.f32 %v3851_v41, %v3783_v59 }
 0x2fb   : > { %v4987_v14 = vand.u32 4294901760, %v4986_v11  ;;  %v4151_v48 = vmul.f32 %v10317_v15, %v9374_v10  ;;  %v4482_v30 = vadd.f32 %v4450_v5, %v4382_v21  ;;  %v4252_v29 = vmul.f32 %v9381_v60, %v10372_v23  ;;  %v8474_v5 = vld [vmem:[%s11018_s7 + $0x20] sm:$0xff] }
 0x2fc   : > { %11403 = vst [vmem:[#allocation41_spill] sm:$0xff] %v10374_v27  ;;  %v10385_v40 = vsub.f32 %v4673_v18, %v10374_v27  ;;  %v4584_v13 = vmin.f32 %v4552_v43, 6.0  ;;  %v4283_v22 = vadd.f32 %v4251_v46, %v4182_v33  ;;  %v3983_v32 = vadd.f32 %v3951_v37, %v3883_v57  ;;  %v8475_v43 = vld [vmem:[%s11018_s7 + $0x28] sm:$0xff] }
 0x2fd   : > { %7640 = vmatmul.mubr.f32.gmra.mrb[10].mxu1 %v4987_v14  ;;  %v4352_v19 = vmul.f32 %v9383_v55, %v10378_v0  ;;  %v4452_v54 = vmul.f32 %v9917_v20, %v10380_v9  ;;  %v4521_v18 = vadd.f32 %v10059_v16, %v4482_v30  ;;  %v11404_v50 = vand.u32 4294901760, %v9315_v17 }
 0x2fe   : > { %v11217_v41 = vand.u32 4294901760, %v10385_v40  ;;  %v4676_v11 = vsel %vm2482_vm2, %v4584_v13, 0  ;;  %v4383_v37 = vadd.f32 %v4351_v49, %v4283_v22  ;;  %v4083_v59 = vadd.f32 %v4051_v25, %v3983_v32 }
 0x2ff   : > { %v10401_v46 = vsub.f32 %v8474_v5, %v11404_v50  ;;  %v10403_v57 = vand.u32 4294901760, %v4676_v11  ;;  %v11406_v21 = vand.u32 4294901760, %v9320_v34  ;;  %v4553_v13 = vmax.f32 %v4521_v18, 0.0 }
 0x300   : > { %v4996_v33 = vsub.f32 %v10385_v40, %v11217_v41  ;;  %v3652_v30 = vmul.f32 %v10270_v53, %v9347_v42  ;;  %v4483_v25 = vadd.f32 %v4451_v38, %v4383_v37  ;;  %v4183_v22 = vadd.f32 %v4151_v48, %v4083_v59 }
 0x301   : > { %11405 = vst [vmem:[#allocation42_spill] sm:$0xff] %v10403_v57  ;;  %v10410_v14 = vsub.f32 %v8475_v43, %v11406_v21  ;;  %v11222_v17 = vand.u32 4294901760, %v10401_v46  ;;  %v10419_v49 = vsub.f32 %v4676_v11, %v10403_v57  ;;  %v4585_v5 = vmin.f32 %v4553_v13, 6.0 }
 0x302   : > { %v4997_v34 = vand.u32 4294901760, %v4996_v33  ;;  %v3752_v18 = vmul.f32 %v10278_v58, %v9345_v7  ;;  %v4522_v53 = vadd.f32 %v10059_v16, %v4483_v25  ;;  %v4284_v21 = vadd.f32 %v4252_v29, %v4183_v22 }
 0x303   : > { %v11221_v32 = vand.u32 4294901760, %v10410_v14  ;;  %v5125_v50 = vsub.f32 %v10401_v46, %v11222_v17  ;;  %v11218_v43 = vand.u32 4294901760, %v10419_v49  ;;  %v4679_v48 = vsel %vm2482_vm2, %v4585_v5, 0 }
 0x304   : > { %7642 = vmatprep.mubr.f32.mxu1 %v4997_v34  ;;  %v3784_v37 = vadd.f32 %v3752_v18, %v3652_v30  ;;  %v3852_v59 = vmul.f32 %v10285_v1, %v9354_v51  ;;  %v10438_v33 = vand.u32 4294901760, %v4679_v48  ;;  %v4554_v13 = vmax.f32 %v4522_v53, 0.0 }
 0x305   : > { %v5132_v38 = vsub.f32 %v10410_v14, %v11221_v32  ;;  %v5126_v11 = vand.u32 4294901760, %v5125_v50  ;;  %v5006_v58 = vsub.f32 %v10419_v49, %v11218_v43  ;;  %v4384_v29 = vadd.f32 %v4352_v19, %v4284_v21 }
 0x306   : > { %11407 = vst [vmem:[#allocation43_spill] sm:$0xff] %v10438_v33  ;;  %v3884_v22 = vadd.f32 %v3852_v59, %v3784_v37  ;;  %v3952_v34 = vmul.f32 %v10333_v4, %v9377_v12  ;;  %v10443_v5 = vsub.f32 %v4679_v48, %v10438_v33  ;;  %v4586_v30 = vmin.f32 %v4554_v13, 6.0 }
 0x307   : > { %v5133_v25 = vand.u32 4294901760, %v5132_v38  ;;  %v5007_v41 = vand.u32 4294901760, %v5006_v58  ;;  %v4484_v50 = vadd.f32 %v4452_v54, %v4384_v29  ;;  %v4052_v43 = vmul.f32 %v10338_v24, %v9372_v63  ;;  %v10450_v38 = vld [vmem:[#allocation2 + $0x170] sm:$0xff] }
 0x308   : > { %v3984_v18 = vadd.f32 %v3952_v34, %v3884_v22  ;;  %v11220_v53 = vand.u32 4294901760, %v10443_v5  ;;  %v4682_v19 = vsel %vm2482_vm2, %v4586_v30, 0  ;;  %v4152_v54 = vmul.f32 %v10345_v36, %v9374_v10  ;;  %v10461_v58 = vld [vmem:[#allocation2 + $0x171] sm:$0xff] }
 0x309   : > { %v7977_v1 = vpack.c.bf16 %v5133_v25, %v5126_v11  ;;  %7643 = vmatmul.mubr.f32.gmra.mrb[12].mxu1 %v5007_v41  ;;  %v4523_v21 = vadd.f32 %v10059_v16, %v4484_v50  ;;  %v10452_v37 = vand.u32 4294901760, %v4682_v19  ;;  %v3653_v11 = vmul.f32 %v10306_v26, %v9347_v42  ;;  %v10470_v22 = vld [vmem:[#allocation2 + $0x172] sm:$0xff] }
 0x30a   : > { %v4084_v48 = vadd.f32 %v4052_v43, %v3984_v18  ;;  %v5016_v41 = vsub.f32 %v10443_v5, %v11220_v53  ;;  %v3753_v13 = vmul.f32 %v10308_v2, %v9345_v7  ;;  %v4253_v25 = vmul.f32 %v9381_v60, %v10450_v38 }
 0x30b   : > { %11408 = vst [vmem:[#allocation44_spill] sm:$0xff] %v10452_v37  ;;  %7978 = vmatprep.subr.bf16.mxu1 %v7977_v1  ;;  %v4555_v59 = vmax.f32 %v4523_v21, 0.0  ;;  %v10466_v29 = vsub.f32 %v4682_v19, %v10452_v37  ;;  %v3853_v26 = vmul.f32 %v10317_v15, %v9354_v51  ;;  %v4353_v19 = vmul.f32 %v9383_v55, %v10461_v58 }
 0x30c   : > { %7980 = vmatpush3.bf16.msra.mxu1 %v7977_v1  ;;  %v4184_v43 = vadd.f32 %v4152_v54, %v4084_v48  ;;  %v5017_v34 = vand.u32 4294901760, %v5016_v41  ;;  %v3785_v50 = vadd.f32 %v3753_v13, %v3653_v11  ;;  %v3953_v1 = vmul.f32 %v10372_v23, %v9377_v12  ;;  %v4218_v13 = vld [vmem:[#allocation2 + $0x180] sm:$0xff] }
 0x30d   : > { %11409 = vst [vmem:[#allocation45_spill] sm:$0xff] %v10466_v29  ;;  %v4587_v30 = vmin.f32 %v4555_v59, 6.0  ;;  %v11219_v2 = vand.u32 4294901760, %v10466_v29  ;;  %v4453_v48 = vmul.f32 %v9917_v20, %v10470_v22  ;;  %v3654_v15 = vmul.f32 %v10333_v4, %v9347_v42 }
 0x30e   : > { %v4285_v18 = vadd.f32 %v4253_v25, %v4184_v43  ;;  %7645 = vmatprep.mubr.f32.mxu1 %v5017_v34  ;;  %v3885_v54 = vadd.f32 %v3853_v26, %v3785_v50  ;;  %v3754_v43 = vmul.f32 %v10338_v24, %v9345_v7  ;;  %v4053_v34 = vmul.f32 %v10378_v0, %v9372_v63 }
 0x30f   : > { %v4685_v21 = vsel %vm2482_vm2, %v4587_v30, 0  ;;  %v5026_v11 = vsub.f32 %v10466_v29, %v11219_v2  ;;  %v4318_v30 = vld [vmem:[#allocation2 + $0x181] sm:$0xff]  ;;  %v3854_v26 = vmul.f32 %v10345_v36, %v9354_v51  ;;  %v3954_v4 = vmul.f32 %v10450_v38, %v9377_v12 }
 0x310   : > { %v10487_v41 = vand.u32 4294901760, %v4685_v21  ;;  %v4385_v59 = vadd.f32 %v4353_v19, %v4285_v18  ;;  %v3985_v25 = vadd.f32 %v3953_v1, %v3885_v54  ;;  %v4418_v19 = vld [vmem:[#allocation2 + $0x182] sm:$0xff]  ;;  %v3786_v53 = vadd.f32 %v3754_v43, %v3654_v15 }
 0x311   : > { %v5027_v50 = vand.u32 4294901760, %v5026_v11  ;;  %v4153_v24 = vmul.f32 %v10380_v9, %v9374_v10  ;;  %v4254_v1 = vmul.f32 %v9381_v60, %v4218_v13  ;;  %v4354_v17 = vmul.f32 %v9383_v55, %v4318_v30 }
 0x312   : > { %11410 = vst [vmem:[#allocation46_spill] sm:$0xff] %v10487_v41  ;;  %v10498_v2 = vsub.f32 %v4685_v21, %v10487_v41  ;;  %v4485_v18 = vadd.f32 %v4453_v48, %v4385_v59  ;;  %v4085_v32 = vadd.f32 %v4053_v34, %v3985_v25  ;;  %v3886_v11 = vadd.f32 %v3854_v26, %v3786_v53  ;;  %v4319_v53 = vld [vmem:[#allocation2 + $0x189] sm:$0xff] }
 0x313   : > { %7646 = vmatmul.mubr.f32.gmra.mrb[14].mxu1 %v5027_v50  ;;  %v4454_v21 = vmul.f32 %v9917_v20, %v4418_v19  ;;  %v3655_v48 = vmul.f32 %v10372_v23, %v9347_v42  ;;  %v3755_v15 = vmul.f32 %v10378_v0, %v9345_v7  ;;  %v4054_v34 = vmul.f32 %v10461_v58, %v9372_v63  ;;  %v4219_v50 = vld [vmem:[#allocation2 + $0x188] sm:$0xff] }
 0x314   : > { %11411 = vst [vmem:[#allocation47_spill] sm:$0xff] %v10498_v2  ;;  %v11225_v54 = vand.u32 4294901760, %v10498_v2  ;;  %v4524_v36 = vadd.f32 %v10059_v16, %v4485_v18  ;;  %v4185_v29 = vadd.f32 %v4153_v24, %v4085_v32  ;;  %v3986_v25 = vadd.f32 %v3954_v4, %v3886_v11 }
 0x315   : > { %v3787_v26 = vadd.f32 %v3755_v15, %v3655_v48  ;;  %v3855_v20 = vmul.f32 %v10380_v9, %v9354_v51  ;;  %v3955_v23 = vmul.f32 %v4218_v13, %v9377_v12  ;;  %v4255_v4 = vmul.f32 %v9381_v60, %v4219_v50 }
 0x316   : > { %v5036_v59 = vsub.f32 %v10498_v2, %v11225_v54  ;;  %v4556_v43 = vmax.f32 %v4524_v36, 0.0  ;;  %v4286_v32 = vadd.f32 %v4254_v1, %v4185_v29  ;;  %v4086_v24 = vadd.f32 %v4054_v34, %v3986_v25  ;;  %v4220_v25 = vld [vmem:[#allocation2 + $0x198] sm:$0xff] }
 0x317   : > { %v4154_v54 = vmul.f32 %v10470_v22, %v9374_v10  ;;  %v4355_v11 = vmul.f32 %v9383_v55, %v4319_v53  ;;  %v3887_v2 = vadd.f32 %v3855_v20, %v3787_v26  ;;  %v3656_v9 = vmul.f32 %v10450_v38, %v9347_v42 }
 0x318   : > { %v5037_v18 = vand.u32 4294901760, %v5036_v59  ;;  %v4588_v0 = vmin.f32 %v4556_v43, 6.0  ;;  %v4386_v36 = vadd.f32 %v4354_v17, %v4286_v32  ;;  %v3756_v13 = vmul.f32 %v10461_v58, %v9345_v7  ;;  %v4419_v59 = vld [vmem:[#allocation2 + $0x18a] sm:$0xff]  ;;  %v4320_v32 = vld [vmem:[#allocation2 + $0x199] sm:$0xff] }
 0x319   : > { %v4186_v1 = vadd.f32 %v4154_v54, %v4086_v24  ;;  %v3987_v17 = vadd.f32 %v3955_v23, %v3887_v2  ;;  %v4055_v43 = vmul.f32 %v4318_v30, %v9372_v63  ;;  %v3856_v54 = vmul.f32 %v10470_v22, %v9354_v51  ;;  %v8476_v30 = vld [vmem:[%s11016_s5 + $0x8] ss:$0 sm:$0xff]  ;;  %v4420_v24 = vld [vmem:[#allocation2 + $0x19a] sm:$0xff] }
 0x31a   : > { %7648 = vmatprep.mubr.f32.mxu1 %v5037_v18  ;;  %v4688_v29 = vsel %vm2482_vm2, %v4588_v0, 0  ;;  %v4486_v15 = vadd.f32 %v4454_v21, %v4386_v36  ;;  %v3788_v26 = vadd.f32 %v3756_v13, %v3656_v9  ;;  %v3956_v20 = vmul.f32 %v4219_v50, %v9377_v12  ;;  %v4221_v9 = vld [vmem:[#allocation2 + $0x1a0] sm:$0xff] }
 0x31b   : > { %v10528_v48 = vand.u32 4294901760, %v4688_v29  ;;  %v4287_v34 = vadd.f32 %v4255_v4, %v4186_v1  ;;  %v4087_v38 = vadd.f32 %v4055_v43, %v3987_v17  ;;  %v4155_v58 = vmul.f32 %v4418_v19, %v9374_v10 }
 0x31c   : > { %v4525_v7 = vadd.f32 %v10059_v16, %v4486_v15  ;;  %v4455_v21 = vmul.f32 %v8476_v30, %v4419_v59  ;;  %v4256_v23 = vmul.f32 %v9381_v60, %v4220_v25  ;;  %v3888_v18 = vadd.f32 %v3856_v54, %v3788_v26 }
 0x31d   : > { %11412 = vst [vmem:[#allocation48_spill] sm:$0xff] %v10528_v48  ;;  %v10535_v42 = vsub.f32 %v4688_v29, %v10528_v48  ;;  %v4387_v2 = vadd.f32 %v4355_v11, %v4287_v34  ;;  %v4187_v22 = vadd.f32 %v4155_v58, %v4087_v38  ;;  %v4356_v50 = vmul.f32 %v9383_v55, %v4320_v32  ;;  %v4321_v32 = vld [vmem:[#allocation2 + $0x1a1] sm:$0xff] }
 0x31e   : > { %v4557_v12 = vmax.f32 %v4525_v7, 0.0  ;;  %v3988_v36 = vadd.f32 %v3956_v20, %v3888_v18  ;;  %v4056_v19 = vmul.f32 %v4319_v53, %v9372_v63  ;;  %v7981_v4 = vpack.c.bf16 %v9940_v39, %v9930_v56  ;;  %v4421_v58 = vld [vmem:[#allocation2 + $0x1a2] sm:$0xff] }
 0x31f   : > { %v11232_v51 = vand.u32 4294901760, %v10535_v42  ;;  %v4487_v0 = vadd.f32 %v4455_v21, %v4387_v2  ;;  %v4288_v1 = vadd.f32 %v4256_v23, %v4187_v22  ;;  %v10553_v13 = vpack.c.bf16 %v10410_v14, %v10401_v46 }
 0x320   : > { %v4589_v29 = vmin.f32 %v4557_v12, 6.0  ;;  %v4088_v17 = vadd.f32 %v4056_v19, %v3988_v36  ;;  %v4156_v43 = vmul.f32 %v4419_v59, %v9374_v10  ;;  %7982 = vmatprep.subr.bf16.mxu1 %v7981_v4  ;;  %v4456_v34 = vmul.f32 %v8476_v30, %v4420_v24 }
 0x321   : > { %v5046_v11 = vsub.f32 %v10535_v42, %v11232_v51  ;;  %v4526_v15 = vadd.f32 %v10059_v16, %v4487_v0  ;;  %v4388_v25 = vadd.f32 %v4356_v50, %v4288_v1  ;;  %v4257_v7 = vmul.f32 %v9381_v60, %v4221_v9  ;;  %v11446_v51 = vld [vmem:[#allocation9_spill] sm:$0xff] }
 0x322   : > { %v4691_v53 = vsel %vm2482_vm2, %v4589_v29, 0  ;;  %v4188_v20 = vadd.f32 %v4156_v43, %v4088_v17  ;;  %v4357_v21 = vmul.f32 %v9383_v55, %v4321_v32  ;;  %v4457_v50 = vmul.f32 %v8476_v30, %v4421_v58 }
 0x323   : > { %v5047_v63 = vand.u32 4294901760, %v5046_v11  ;;  %v10558_v26 = vand.u32 4294901760, %v4691_v53  ;;  %v4558_v54 = vmax.f32 %v4526_v15, 0.0  ;;  %v4488_v38 = vadd.f32 %v4456_v34, %v4388_v25 }
 0x324   : > { %v4289_v59 = vadd.f32 %v4257_v7, %v4188_v20 }
 0x325   : > { %11413 = vst [vmem:[#allocation49_spill] sm:$0xff] %v10558_v26  ;;  %7649 = vmatmul.mubr.f32.gmra.mrb[16].mxu1 %v5047_v63  ;;  %v10562_v2 = vsub.f32 %v4691_v53, %v10558_v26  ;;  %v4590_v10 = vmin.f32 %v4558_v54, 6.0  ;;  %v4527_v23 = vadd.f32 %v10059_v16, %v4488_v38 }
 0x326   : > { %v4389_v22 = vadd.f32 %v4357_v21, %v4289_v59  ;;  %v11417_v59 = vld [vmem:[#allocation14_spill] sm:$0xff] }
 0x327   : > { %v11231_v18 = vand.u32 4294901760, %v10562_v2  ;;  %v4694_v12 = vsel %vm2482_vm2, %v4590_v10, 0  ;;  %v4559_v60 = vmax.f32 %v4527_v23, 0.0  ;;  %v7985_v10 = vpack.c.bf16 %v10176_v44, %v10167_v61  ;;  %v11419_v21 = vld [vmem:[#allocation22_spill] sm:$0xff] }
 0x328   : > { %v10568_v0 = vand.u32 4294901760, %v4694_v12  ;;  %v4489_v36 = vadd.f32 %v4457_v50, %v4389_v22  ;;  %v11420_v23 = vld [vmem:[#allocation26_spill] sm:$0xff]  ;;  %v11423_v50 = vld [vmem:[#allocation32_spill] sm:$0xff] }
 0x329   : > { %v5056_v24 = vsub.f32 %v10562_v2, %v11231_v18  ;;  %v4591_v55 = vmin.f32 %v4559_v60, 6.0  ;;  %v11424_v60 = vld [vmem:[#allocation13_spill] sm:$0xff]  ;;  %v11445_v18 = vld [vmem:[#allocation8_spill] sm:$0xff] }
 0x32a   : > { %11414 = vst [vmem:[#allocation50_spill] sm:$0xff] %v10568_v0  ;;  %v10574_v19 = vsub.f32 %v4694_v12, %v10568_v0  ;;  %v4528_v29 = vadd.f32 %v10059_v16, %v4489_v36  ;;  %v11427_v36 = vld [vmem:[#allocation17_spill] sm:$0xff] }
 0x32b   : > { %v5057_v11 = vand.u32 4294901760, %v5056_v24  ;;  %v4697_v9 = vsel %vm2482_vm2, %v4591_v55, 0  ;;  %v11428_v55 = vld [vmem:[#allocation19_spill] sm:$0xff] }
 0x32c   : > { %v11230_v1 = vand.u32 4294901760, %v10574_v19  ;;  %v10579_v30 = vand.u32 4294901760, %v4697_v9  ;;  %v4560_v15 = vmax.f32 %v4528_v29, 0.0  ;;  %v11430_v29 = vld [vmem:[#allocation29_spill] sm:$0xff] }
 0x32d   : > { %7651 = vmatprep.mubr.f32.mxu1 %v5057_v11  ;;  %v11429_v11 = vld [vmem:[#allocation25_spill] sm:$0xff] }
 0x32e   : > { %11415 = vst [vmem:[#allocation51_spill] sm:$0xff] %v10579_v30  ;;  %v5066_v17 = vsub.f32 %v10574_v19, %v11230_v1  ;;  %v10585_v43 = vsub.f32 %v4697_v9, %v10579_v30  ;;  %v4592_v63 = vmin.f32 %v4560_v15, 6.0  ;;  %v11431_v9 = vld [vmem:[#allocation31_spill] sm:$0xff]  ;;  %v11432_v15 = vld [vmem:[#allocation34_spill] sm:$0xff] }
 0x32f   : > { %v11444_v1 = vld [vmem:[#allocation3_spill] sm:$0xff] }
 0x330   : > { %v5067_v53 = vand.u32 4294901760, %v5066_v17  ;;  %v11229_v25 = vand.u32 4294901760, %v10585_v43  ;;  %v4700_v16 = vsel %vm2482_vm2, %v4592_v63, 0 }
 0x331   : > { %v10589_v34 = vand.u32 4294901760, %v4700_v16 }
 0x332   : > { %7652 = vmatmul.mubr.f32.gmra.mrb[18].mxu1 %v5067_v53  ;;  %v5076_v32 = vsub.f32 %v10585_v43, %v11229_v25  ;;  %v11435_v53 = vld [vmem:[#allocation36_spill] sm:$0xff]  ;;  %v11443_v25 = vld [vmem:[#allocation7_spill] sm:$0xff] }
 0x333   : > { %11416 = vst [vmem:[#allocation52_spill] sm:$0xff] %v10589_v34  ;;  %v10595_v54 = vsub.f32 %v4700_v16, %v10589_v34  ;;  %v11436_v16 = vld [vmem:[#allocation38_spill] sm:$0xff] }
 0x334   : > { %v5077_v20 = vand.u32 4294901760, %v5076_v32 }
 0x335   : > { %v11228_v7 = vand.u32 4294901760, %v10595_v54 }
 0x336   : > { %7654 = vmatprep.mubr.f32.mxu1 %v5077_v20 }
 0x337   : > { %v5086_v38 = vsub.f32 %v10595_v54, %v11228_v7  ;;  %v10617_v12 = vpop.f32.mrb[32].mxu0  ;;  %v11442_v7 = vld [vmem:[#allocation6_spill] sm:$0xff] }
 0x338   : > { %11421 = vst [vmem:[#allocation14_spill] sm:$0xff] %v10617_v12  ;;  %v10619_v22 = vpop.f32.mrb[33].mxu0  ;;  %v11455_v12 = vld [vmem:[#allocation21_spill] sm:$0xff] }
 0x339   : > { %v5087_v58 = vand.u32 4294901760, %v5086_v38 }
 0x33b   : > { %7655 = vmatmul.mubr.f32.gmra.mrb[20].mxu1 %v5087_v58 }
 0x33c   : > { %7669 = vmatprep.mubr.f32.mxu1 %v9494_v8 }
 0x33f   : > { %7670 = vmatmul.mubr.f32.vlgmr.msra.gmra.mrb[22].mxu1 %v9500_v62 }
 0x340   : > { %7984 = vmatpush3.bf16.msra.mxu1 %v7981_v4  ;;  %7672 = vmatprep.mubr.f32.mxu1 %v9537_v45  ;;  %v11418_v4 = vld [vmem:[#allocation20_spill] sm:$0xff] }
 0x341   : > { %7986 = vmatprep.subr.bf16.mxu1 %v7985_v10  ;;  %11422 = vst [vmem:[#allocation20_spill] sm:$0xff] %v10619_v22  ;;  %v11454_v22 = vld [vmem:[#allocation16_spill] sm:$0xff] }
 0x343   : > { %7673 = vmatmul.mubr.f32.gmra.mrb[24].mxu1 %v9585_v31 }
 0x344   : > { %7675 = vmatprep.mubr.f32.mxu1 %v9676_v28  ;;  %7988 = vmatpush3.bf16.msra.mxu1 %v7985_v10  ;;  %v11441_v10 = vld [vmem:[#allocation5_spill] sm:$0xff] }
 0x345   : > { %7990 = vmatprep.subr.bf16.mxu1 %v10553_v13 }
 0x347   : > { %7676 = vmatmul.mubr.f32.gmra.mrb[26].mxu1 %v9710_v6 }
 0x348   : > { %7678 = vmatprep.mubr.f32.mxu1 %v9748_v52  ;;  %7992 = vmatpush3.bf16.msra.mxu1 %v10553_v13 }
 0x349   : > { %7994 = vmatprep.subr.bf16.mxu1 %v9288_v35  ;;  %v10623_v24 = vpop.f32.mrb[34].mxu0 }
 0x34a   : > { %11425 = vst [vmem:[#allocation22_spill] sm:$0xff] %v10623_v24  ;;  %v10625_v13 = vpop.f32.mrb[35].mxu0 }
 0x34b   : > { %7679 = vmatmul.mubr.f32.gmra.mrb[28].mxu1 %v11417_v59  ;;  %11426 = vst [vmem:[#allocation26_spill] sm:$0xff] %v10625_v13  ;;  %v11452_v13 = vld [vmem:[#allocation12_spill] sm:$0xff] }
 0x34c   : > { %7681 = vmatprep.mubr.f32.mxu1 %v11418_v4 }
 0x34f   : > { %7682 = vmatmul.mubr.f32.gmra.mrb[30].mxu1 %v11419_v21 }
 0x350   : > { %7684 = vmatprep.mubr.f32.mxu1 %v11420_v23 }
 0x353   : > { %7685 = vmatmul.mubr.f32.gmra.mrb[32].mxu1 %v11423_v50 }
 0x354   : > { %7687 = vmatprep.mubr.f32.mxu1 %v11424_v60 }
 0x357   : > { %7688 = vmatmul.mubr.f32.gmra.mrb[34].mxu1 %v11427_v36 }
 0x358   : > { %7690 = vmatprep.mubr.f32.mxu1 %v11428_v55 }
 0x35b   : > { %7691 = vmatmul.mubr.f32.gmra.mrb[4].mxu1 %v11429_v11 }
 0x35c   : > { %7693 = vmatprep.mubr.f32.mxu1 %v11430_v29  ;;  %v11478_v29 = vand.u32 4294901760, %v10410_v14 }
 0x35f   : > { %7694 = vmatmul.mubr.f32.gmra.mrb[6].mxu1 %v11431_v9  ;;  %v11477_v9 = vand.u32 4294901760, %v10401_v46  ;;  %v11484_v46 = vand.u32 4294901760, %v11455_v12 }
 0x360   : > { %7696 = vmatprep.mubr.f32.mxu1 %v11432_v15  ;;  %v11476_v15 = vand.u32 4294901760, %v11443_v25 }
 0x361   : > { %v10633_v17 = vpop.f32.mrb[36].mxu0  ;;  %v8013_v11 = vpack.c.bf16 %v11478_v29, %v11477_v9  ;;  %v11515_v9 = vld [vmem:[#allocation41_spill] sm:$0xff] }
 0x362   : > { %11433 = vst [vmem:[#allocation32_spill] sm:$0xff] %v10633_v17  ;;  %v10635_v63 = vpop.f32.mrb[37].mxu0 }
 0x363   : > { %11434 = vst [vmem:[#allocation13_spill] sm:$0xff] %v10635_v63  ;;  %7697 = vmatmul.mubr.f32.gmra.mrb[8].mxu1 %v11435_v53  ;;  %v11450_v63 = vld [vmem:[#allocation10_spill] sm:$0xff]  ;;  %v11475_v53 = vand.u32 4294901760, %v11442_v7 }
 0x364   : > { %7699 = vmatprep.mubr.f32.mxu1 %v11436_v16 }
 0x367   : > { %7700 = vmatmul.mubr.f32.gmra.mrb[10].mxu1 %v10340_v3  ;;  %v11474_v3 = vand.u32 4294901760, %v10176_v44  ;;  %v11481_v44 = vand.u32 4294901760, %v11450_v63 }
 0x368   : > { %7702 = vmatprep.mubr.f32.mxu1 %v10374_v27  ;;  %v11473_v27 = vand.u32 4294901760, %v10167_v61  ;;  %v11480_v61 = vand.u32 4294901760, %v11446_v51 }
 0x36a   : > { %v8009_v16 = vpack.c.bf16 %v11474_v3, %v11473_v27  ;;  %v11482_v3 = vand.u32 4294901760, %v11452_v13  ;;  %v11483_v27 = vand.u32 4294901760, %v11454_v22 }
 0x36b   : > { %7703 = vmatmul.mubr.f32.gmra.mrb[12].mxu1 %v10403_v57  ;;  %v11472_v57 = vand.u32 4294901760, %v11441_v10 }
 0x36c   : > { %7705 = vmatprep.mubr.f32.mxu1 %v10438_v33  ;;  %v11469_v33 = vld [vmem:[#allocation39_spill] sm:$0xff] }
 0x36d   : > { %v10643_v32 = vpop.f32.mrb[38].mxu0 }
 0x36e   : > { %11437 = vst [vmem:[#allocation17_spill] sm:$0xff] %v10643_v32  ;;  %v10645_v20 = vpop.f32.mrb[39].mxu0 }
 0x36f   : > { %11438 = vst [vmem:[#allocation19_spill] sm:$0xff] %v10645_v20  ;;  %7706 = vmatmul.mubr.f32.gmra.mrb[14].mxu1 %v10452_v37  ;;  %v11449_v20 = vand.u32 4294901760, %v9940_v39  ;;  %v11458_v39 = vld [vmem:[#allocation11_spill] sm:$0xff]  ;;  %v11468_v37 = vld [vmem:[#allocation37_spill] sm:$0xff] }
 0x370   : > { %7708 = vmatprep.mubr.f32.mxu1 %v10487_v41  ;;  %v11467_v41 = vld [vmem:[#allocation35_spill] sm:$0xff]  ;;  %v11495_v29 = vand.u32 4294901760, %v11468_v37 }
 0x373   : > { %7709 = vmatmul.mubr.f32.gmra.mrb[16].mxu1 %v10528_v48  ;;  %v11466_v48 = vld [vmem:[#allocation33_spill] sm:$0xff] }
 0x374   : > { %7711 = vmatprep.mubr.f32.mxu1 %v10558_v26  ;;  %v11465_v26 = vld [vmem:[#allocation30_spill] sm:$0xff] }
 0x377   : > { %7712 = vmatmul.mubr.f32.gmra.mrb[18].mxu1 %v10568_v0  ;;  %v11464_v0 = vld [vmem:[#allocation28_spill] sm:$0xff] }
 0x378   : > { %7714 = vmatprep.mubr.f32.mxu1 %v10579_v30  ;;  %v11462_v30 = vld [vmem:[#allocation18_spill] sm:$0xff] }
 0x37a   : > { %v10653_v38 = vpop.f32.mrb[40].mxu0 }
 0x37b   : > { %11439 = vst [vmem:[#allocation53_spill] sm:$0xff] %v10653_v38  ;;  %v10655_v58 = vpop.f32.mrb[41].mxu0  ;;  %7715 = vmatmul.mubr.f32.gmra.mrb[20].mxu1 %v10589_v34  ;;  %v11447_v38 = vld [vmem:[#allocation4_spill] sm:$0xff]  ;;  %v11456_v34 = vld [vmem:[#allocation23_spill] sm:$0xff] }
 0x37c   : > { %11440 = vst [vmem:[#allocation54_spill] sm:$0xff] %v10655_v58  ;;  %7729 = vmatprep.mubr.f32.mxu1 %v11441_v10  ;;  %v11448_v58 = vand.u32 4294901760, %v9930_v56  ;;  %v11457_v56 = vld [vmem:[#allocation27_spill] sm:$0xff]  ;;  %v11485_v14 = vand.u32 4294901760, %v11456_v34 }
 0x37d   : > { %v11523_v10 = vld [vmem:[#allocation51_spill] sm:$0xff] }
 0x37e   : > { %v8005_v32 = vpack.c.bf16 %v11449_v20, %v11448_v58  ;;  %v11460_v58 = vld [vmem:[#allocation15_spill] sm:$0xff] }
 0x37f   : > { %7730 = vmatmul.mubr.f32.vlgmr.msra.gmra.mrb[22].mxu1 %v11442_v7  ;;  %v11489_v7 = vand.u32 4294901760, %v11462_v30 }
 0x380   : > { %7996 = vmatpush3.bf16.msra.mxu1 %v9288_v35  ;;  %7732 = vmatprep.mubr.f32.mxu1 %v11443_v25  ;;  %v11488_v25 = vand.u32 4294901760, %v11460_v58 }
 0x381   : > { %7998 = vmatprep.subr.bf16.mxu1 %v11444_v1 }
 0x383   : > { %7733 = vmatmul.mubr.f32.gmra.mrb[24].mxu1 %v11445_v18 }
 0x384   : > { %7735 = vmatprep.mubr.f32.mxu1 %v11446_v51  ;;  %8000 = vmatpush3.bf16.msra.mxu1 %v11444_v1  ;;  %v11486_v51 = vand.u32 4294901760, %v11457_v56 }
 0x385   : > { %8002 = vmatprep.subr.bf16.mxu1 %v11447_v38 }
 0x387   : > { %7736 = vmatmul.mubr.f32.gmra.mrb[26].mxu1 %v11450_v63  ;;  %v11518_v63 = vld [vmem:[#allocation44_spill] sm:$0xff] }
 0x388   : > { %v10672_v17 = vpop.f32.mrb[42].mxu0  ;;  %7738 = vmatprep.mubr.f32.mxu1 %v11452_v13  ;;  %8004 = vmatpush3.bf16.msra.mxu1 %v11447_v38  ;;  %v11493_v13 = vand.u32 4294901760, %v11466_v48 }
 0x389   : > { %11451 = vst [vmem:[#allocation5_spill] sm:$0xff] %v10672_v17  ;;  %v10676_v24 = vpop.f32.mrb[43].mxu0  ;;  %8006 = vmatprep.subr.bf16.mxu1 %v8005_v32 }
 0x38a   : > { %11453 = vst [vmem:[#allocation6_spill] sm:$0xff] %v10676_v24  ;;  %v11463_v24 = vld [vmem:[#allocation24_spill] sm:$0xff] }
 0x38b   : > { %7739 = vmatmul.mubr.f32.gmra.mrb[28].mxu1 %v11454_v22  ;;  %v11490_v22 = vand.u32 4294901760, %v11463_v24 }
 0x38c   : > { %7741 = vmatprep.mubr.f32.mxu1 %v11455_v12  ;;  %v11491_v12 = vand.u32 4294901760, %v11464_v0 }
 0x38f   : > { %7742 = vmatmul.mubr.f32.gmra.mrb[30].mxu1 %v11456_v34  ;;  %v11492_v34 = vand.u32 4294901760, %v11465_v26 }
 0x390   : > { %7744 = vmatprep.mubr.f32.mxu1 %v11457_v56  ;;  %v11524_v56 = vld [vmem:[#allocation52_spill] sm:$0xff] }
 0x393   : > { %7745 = vmatmul.mubr.f32.gmra.mrb[32].mxu1 %v11458_v39 }
 0x394   : > { %v10683_v20 = vpop.f32.mrb[44].mxu0  ;;  %7747 = vmatprep.mubr.f32.mxu1 %v11460_v58 }
 0x395   : > { %11459 = vst [vmem:[#allocation7_spill] sm:$0xff] %v10683_v20  ;;  %v10686_v17 = vpop.f32.mrb[45].mxu0  ;;  %v11471_v20 = vld [vmem:[#allocation47_spill] sm:$0xff] }
 0x396   : > { %11461 = vst [vmem:[#allocation3_spill] sm:$0xff] %v10686_v17  ;;  %v11470_v17 = vld [vmem:[#allocation45_spill] sm:$0xff] }
 0x397   : > { %7748 = vmatmul.mubr.f32.gmra.mrb[34].mxu1 %v11462_v30  ;;  %v11496_v30 = vand.u32 4294901760, %v11469_v33 }
 0x398   : > { %7750 = vmatprep.mubr.f32.mxu1 %v11463_v24  ;;  %v11497_v24 = vand.u32 4294901760, %v10352_v47 }
 0x39b   : > { %7751 = vmatmul.mubr.f32.gmra.mrb[4].mxu1 %v11464_v0  ;;  %v11498_v0 = vand.u32 4294901760, %v10385_v40 }
 0x39c   : > { %7753 = vmatprep.mubr.f32.mxu1 %v11465_v26  ;;  %v11499_v26 = vand.u32 4294901760, %v10419_v49 }
 0x39f   : > { %7754 = vmatmul.mubr.f32.gmra.mrb[6].mxu1 %v11466_v48  ;;  %v11500_v48 = vand.u32 4294901760, %v10443_v5 }
 0x3a0   : > { %7756 = vmatprep.mubr.f32.mxu1 %v11467_v41 }
 0x3a3   : > { %7757 = vmatmul.mubr.f32.gmra.mrb[8].mxu1 %v11468_v37  ;;  %v11502_v37 = vand.u32 4294901760, %v11471_v20 }
 0x3a4   : > { %7759 = vmatprep.mubr.f32.mxu1 %v11469_v33  ;;  %v11503_v33 = vand.u32 4294901760, %v10535_v42 }
 0x3a7   : > { %7760 = vmatmul.mubr.f32.gmra.mrb[10].mxu1 %v10352_v47  ;;  %v11504_v47 = vand.u32 4294901760, %v10562_v2 }
 0x3a8   : > { %7762 = vmatprep.mubr.f32.mxu1 %v10385_v40  ;;  %v11505_v40 = vand.u32 4294901760, %v10574_v19 }
 0x3ab   : > { %7763 = vmatmul.mubr.f32.gmra.mrb[12].mxu1 %v10419_v49  ;;  %v11506_v49 = vand.u32 4294901760, %v10585_v43 }
 0x3ac   : > { %7765 = vmatprep.mubr.f32.mxu1 %v10443_v5  ;;  %v11507_v5 = vand.u32 4294901760, %v10595_v54 }
 0x3af   : > { %7766 = vmatmul.mubr.f32.gmra.mrb[14].mxu1 %v11470_v17 }
 0x3b0   : > { %7768 = vmatprep.mubr.f32.mxu1 %v11471_v20 }
 0x3b3   : > { %7769 = vmatmul.mubr.f32.gmra.mrb[16].mxu1 %v10535_v42  ;;  %v11509_v42 = vld [vmem:[#allocation29_spill] sm:$0xff] }
 0x3b4   : > { %7771 = vmatprep.mubr.f32.mxu1 %v10562_v2  ;;  %v11510_v2 = vld [vmem:[#allocation31_spill] sm:$0xff] }
 0x3b7   : > { %7772 = vmatmul.mubr.f32.gmra.mrb[18].mxu1 %v10574_v19  ;;  %v11511_v19 = vld [vmem:[#allocation34_spill] sm:$0xff] }
 0x3b8   : > { %7774 = vmatprep.mubr.f32.mxu1 %v10585_v43  ;;  %v11513_v43 = vld [vmem:[#allocation38_spill] sm:$0xff] }
 0x3bb   : > { %7775 = vmatmul.mubr.f32.gmra.mrb[20].mxu1 %v10595_v54  ;;  %v11514_v54 = vld [vmem:[#allocation40_spill] sm:$0xff] }
 0x3bc   : > { %7789 = vmatprep.mubr.f32.mxu1 %v11472_v57  ;;  %v11479_v57 = vand.u32 4294901760, %v11445_v18  ;;  %v11487_v18 = vand.u32 4294901760, %v11458_v39  ;;  %v8478_v39 = vld [vmem:[%s8620_s18] sm:$0xff] }
 0x3bf   : > { %7790 = vmatmul.mubr.f32.vlgmr.msra.gmra.mrb[22].mxu1 %v11475_v53  ;;  %v11519_v53 = vld [vmem:[#allocation46_spill] sm:$0xff] }
 0x3c0   : > { %8008 = vmatpush3.bf16.msra.mxu1 %v8005_v32  ;;  %7792 = vmatprep.mubr.f32.mxu1 %v11476_v15  ;;  %v11516_v15 = vld [vmem:[#allocation42_spill] sm:$0xff]  ;;  %v11521_v32 = vld [vmem:[#allocation49_spill] sm:$0xff] }
 0x3c1   : > { %8010 = vmatprep.subr.bf16.mxu1 %v8009_v16 }
 0x3c3   : > { %7793 = vmatmul.mubr.f32.gmra.mrb[24].mxu1 %v11479_v57 }
 0x3c4   : > { %7795 = vmatprep.mubr.f32.mxu1 %v11480_v61  ;;  %8012 = vmatpush3.bf16.msra.mxu1 %v8009_v16  ;;  %v11520_v16 = vld [vmem:[#allocation48_spill] sm:$0xff] }
 0x3c5   : > { %8014 = vmatprep.subr.bf16.mxu1 %v8013_v11 }
 0x3c7   : > { %7796 = vmatmul.mubr.f32.gmra.mrb[26].mxu1 %v11481_v44 }
 0x3c8   : > { %7798 = vmatprep.mubr.f32.mxu1 %v11482_v3  ;;  %8016 = vmatpush3.bf16.msra.mxu1 %v8013_v11  ;;  %v11494_v11 = vand.u32 4294901760, %v11467_v41  ;;  %v11501_v41 = vand.u32 4294901760, %v11470_v17  ;;  %v11517_v17 = vld [vmem:[#allocation43_spill] sm:$0xff]  ;;  %v11529_v3 = vld [vmem:[#allocation32_spill] sm:$0xff] }
 0x3c9   : > { %8018 = vmatprep.subr.bf16.mxu1 %v9288_v35 }
 0x3cb   : > { %7799 = vmatmul.mubr.f32.gmra.mrb[28].mxu1 %v11483_v27 }
 0x3cc   : > { %7801 = vmatprep.mubr.f32.mxu1 %v11484_v46  ;;  %v8479_v46 = vld [vmem:[%s8620_s18 + $0x18] sm:$0xff] }
 0x3cf   : > { %7802 = vmatmul.mubr.f32.gmra.mrb[30].mxu1 %v11485_v14 }
 0x3d0   : > { %7804 = vmatprep.mubr.f32.mxu1 %v11486_v51  ;;  %v11530_v51 = vld [vmem:[#allocation13_spill] sm:$0xff] }
 0x3d3   : > { %7805 = vmatmul.mubr.f32.gmra.mrb[32].mxu1 %v11487_v18 }
 0x3d4   : > { %7807 = vmatprep.mubr.f32.mxu1 %v11488_v25  ;;  %v8480_v25 = vld [vmem:[%s8620_s18 + $0x10] sm:$0xff] }
 0x3d7   : > { %7808 = vmatmul.mubr.f32.gmra.mrb[34].mxu1 %v11489_v7 }
 0x3d8   : > { %7810 = vmatprep.mubr.f32.mxu1 %v11490_v22 }
 0x3db   : > { %7811 = vmatmul.mubr.f32.gmra.mrb[4].mxu1 %v11491_v12 }
 0x3dc   : > { %7813 = vmatprep.mubr.f32.mxu1 %v11492_v34 }
 0x3df   : > { %7814 = vmatmul.mubr.f32.gmra.mrb[6].mxu1 %v11493_v13 }
 0x3e0   : > { %7816 = vmatprep.mubr.f32.mxu1 %v11494_v11  ;;  %v11531_v11 = vld [vmem:[#allocation17_spill] sm:$0xff] }
 0x3e3   : > { %7817 = vmatmul.mubr.f32.gmra.mrb[8].mxu1 %v11495_v29 }
 0x3e4   : > { %7819 = vmatprep.mubr.f32.mxu1 %v11496_v30  ;;  %v8481_v30 = vld [vmem:[%s8620_s18 + $0x28] sm:$0xff] }
 0x3e7   : > { %7820 = vmatmul.mubr.f32.gmra.mrb[10].mxu1 %v11497_v24 }
 0x3e8   : > { %7822 = vmatprep.mubr.f32.mxu1 %v11498_v0  ;;  %v11532_v0 = vld [vmem:[#allocation19_spill] sm:$0xff] }
 0x3eb   : > { %7823 = vmatmul.mubr.f32.gmra.mrb[12].mxu1 %v11499_v26 }
 0x3ec   : > { %7825 = vmatprep.mubr.f32.mxu1 %v11500_v48  ;;  %v8482_v48 = vld [vmem:[%s8620_s18 + $0x20] sm:$0xff] }
 0x3ef   : > { %7826 = vmatmul.mubr.f32.gmra.mrb[14].mxu1 %v11501_v41 }
 0x3f0   : > { %7828 = vmatprep.mubr.f32.mxu1 %v11502_v37 }
 0x3f3   : > { %7829 = vmatmul.mubr.f32.gmra.mrb[16].mxu1 %v11503_v33 }
 0x3f4   : > { %7831 = vmatprep.mubr.f32.mxu1 %v11504_v47 }
 0x3f7   : > { %7832 = vmatmul.mubr.f32.gmra.mrb[18].mxu1 %v11505_v40 }
 0x3f8   : > { %7834 = vmatprep.mubr.f32.mxu1 %v11506_v49  ;;  %v11533_v49 = vld [vmem:[#allocation53_spill] sm:$0xff] }
 0x3fb   : > { %7835 = vmatmul.mubr.f32.gmra.mrb[20].mxu1 %v11507_v5 }
 0x3fc   : > { %7849 = vmatprep.mubr.f32.mxu1 %v9494_v8 }
 0x3ff   : > { %7850 = vmatmul.mubr.f32.vlgmr.msra.gmra.mrb[22].mxu1 %v9500_v62 }
 0x400   : > { %8020 = vmatpush3.bf16.msra.mxu1 %v9288_v35  ;;  %7852 = vmatprep.mubr.f32.mxu1 %v9537_v45  ;;  %v11508_v35 = vld [vmem:[#allocation25_spill] sm:$0xff] }
 0x401   : > { %8022 = vmatprep.subr.bf16.mxu1 %v11444_v1 }
 0x403   : > { %7853 = vmatmul.mubr.f32.gmra.mrb[24].mxu1 %v9585_v31 }
 0x404   : > { %7855 = vmatprep.mubr.f32.mxu1 %v9676_v28  ;;  %8024 = vmatpush3.bf16.msra.mxu1 %v11444_v1  ;;  %v11512_v1 = vld [vmem:[#allocation36_spill] sm:$0xff] }
 0x405   : > { %8026 = vmatprep.subr.bf16.mxu1 %v11447_v38 }
 0x407   : > { %7856 = vmatmul.mubr.f32.gmra.mrb[26].mxu1 %v9710_v6 }
 0x408   : > { %7858 = vmatprep.mubr.f32.mxu1 %v9748_v52  ;;  %8028 = vmatpush3.bf16.msra.mxu1 %v11447_v38  ;;  %v11522_v38 = vld [vmem:[#allocation50_spill] sm:$0xff] }
 0x40b   : > { %7859 = vmatmul.mubr.f32.gmra.mrb[28].mxu1 %v11417_v59 }
 0x40c   : > { %7861 = vmatprep.mubr.f32.mxu1 %v11418_v4 }
 0x40f   : > { %7862 = vmatmul.mubr.f32.gmra.mrb[30].mxu1 %v11419_v21 }
 0x410   : > { %7864 = vmatprep.mubr.f32.mxu1 %v11420_v23 }
 0x413   : > { %7865 = vmatmul.mubr.f32.gmra.mrb[32].mxu1 %v11423_v50 }
 0x414   : > { %7867 = vmatprep.mubr.f32.mxu1 %v11424_v60 }
 0x417   : > { %7868 = vmatmul.mubr.f32.gmra.mrb[34].mxu1 %v11427_v36 }
 0x418   : > { %7870 = vmatprep.mubr.f32.mxu1 %v11428_v55 }
 0x41b   : > { %7871 = vmatmul.mubr.f32.gmra.mrb[4].mxu1 %v11508_v35 }
 0x41c   : > { %7873 = vmatprep.mubr.f32.mxu1 %v11509_v42 }
 0x41f   : > { %7874 = vmatmul.mubr.f32.gmra.mrb[6].mxu1 %v11510_v2 }
 0x420   : > { %7876 = vmatprep.mubr.f32.mxu1 %v11511_v19 }
 0x423   : > { %7877 = vmatmul.mubr.f32.gmra.mrb[8].mxu1 %v11512_v1 }
 0x424   : > { %7879 = vmatprep.mubr.f32.mxu1 %v11513_v43 }
 0x427   : > { %7880 = vmatmul.mubr.f32.gmra.mrb[10].mxu1 %v11514_v54 }
 0x428   : > { %7882 = vmatprep.mubr.f32.mxu1 %v11515_v9 }
 0x42b   : > { %7883 = vmatmul.mubr.f32.gmra.mrb[12].mxu1 %v11516_v15 }
 0x42c   : > { %7885 = vmatprep.mubr.f32.mxu1 %v11517_v17 }
 0x42f   : > { %7886 = vmatmul.mubr.f32.gmra.mrb[14].mxu1 %v11518_v63 }
 0x430   : > { %7888 = vmatprep.mubr.f32.mxu1 %v11519_v53 }
 0x433   : > { %7889 = vmatmul.mubr.f32.gmra.mrb[16].mxu1 %v11520_v16 }
 0x434   : > { %7891 = vmatprep.mubr.f32.mxu1 %v11521_v32 }
 0x437   : > { %7892 = vmatmul.mubr.f32.gmra.mrb[18].mxu1 %v11522_v38 }
 0x438   : > { %7894 = vmatprep.mubr.f32.mxu1 %v11523_v10 }
 0x43b   : > { %7895 = vmatmul.mubr.f32.gmra.mrb[20].mxu1 %v11524_v56 }
 0x43c   : > { %7909 = vmatprep.mubr.f32.mxu1 %v9494_v8  ;;  %v10852_v8 = vld [vmem:[%s11019_s8] ss:$0 sm:$0xff] }
 0x43d   : > { %v4830_v27 = vadd.f32 %v11529_v3, %v10852_v8  ;;  %v4820_v18 = vadd.f32 %v10852_v8, %v11530_v51  ;;  %v4850_v29 = vadd.f32 %v11531_v11, %v10852_v8  ;;  %v4840_v26 = vadd.f32 %v10852_v8, %v11532_v0 }
 0x43e   : > { %v4870_v5 = vadd.f32 %v11533_v49, %v10852_v8 }
 0x43f   : > { %7910 = vmatmul.mubr.f32.vlgmr.msra.gmra.mrb[22].mxu1 %v9500_v62  ;;  %v11525_v62 = vld [vmem:[#allocation14_spill] sm:$0xff] }
 0x440   : > { %7912 = vmatprep.mubr.f32.mxu1 %v9537_v45  ;;  %v4790_v45 = vadd.f32 %v11525_v62, %v10852_v8 }
 0x443   : > { %7913 = vmatmul.mubr.f32.gmra.mrb[24].mxu1 %v9585_v31  ;;  %v11526_v31 = vld [vmem:[#allocation20_spill] sm:$0xff] }
 0x444   : > { %7915 = vmatprep.mubr.f32.mxu1 %v9676_v28  ;;  %v4780_v28 = vadd.f32 %v10852_v8, %v11526_v31 }
 0x447   : > { %7916 = vmatmul.mubr.f32.gmra.mrb[26].mxu1 %v9710_v6 }
 0x448   : > { %7918 = vmatprep.mubr.f32.mxu1 %v9748_v52 }
 0x44b   : > { %7919 = vmatmul.mubr.f32.gmra.mrb[28].mxu1 %v11417_v59 }
 0x44c   : > { %7921 = vmatprep.mubr.f32.mxu1 %v11418_v4 }
 0x44f   : > { %7922 = vmatmul.mubr.f32.gmra.mrb[30].mxu1 %v11419_v21  ;;  %v11527_v21 = vld [vmem:[#allocation22_spill] sm:$0xff] }
 0x450   : > { %7924 = vmatprep.mubr.f32.mxu1 %v11420_v23  ;;  %v4810_v23 = vadd.f32 %v11527_v21, %v10852_v8 }
 0x453   : > { %7925 = vmatmul.mubr.f32.gmra.mrb[32].mxu1 %v11423_v50  ;;  %v8477_v50 = vld [vmem:[%s8620_s18 + $0x8] sm:$0xff] }
 0x454   : > { %7927 = vmatprep.mubr.f32.mxu1 %v11424_v60 }
 0x457   : > { %7928 = vmatmul.mubr.f32.gmra.mrb[34].mxu1 %v11427_v36  ;;  %v11528_v36 = vld [vmem:[#allocation26_spill] sm:$0xff] }
 0x458   : > { %7930 = vmatprep.mubr.f32.mxu1 %v11428_v55  ;;  %v4800_v55 = vadd.f32 %v10852_v8, %v11528_v36 }
 0x45b   : > { %7931 = vmatmul.mubr.f32.gmra.mrb[4].mxu1 %v11508_v35  ;;  %v8483_v35 = vld [vmem:[%s8620_s18 + $0x38] sm:$0xff] }
 0x45c   : > { %7933 = vmatprep.mubr.f32.mxu1 %v11509_v42 }
 0x45f   : > { %7934 = vmatmul.mubr.f32.gmra.mrb[6].mxu1 %v11510_v2  ;;  %v11534_v2 = vld [vmem:[#allocation54_spill] sm:$0xff] }
 0x460   : > { %7936 = vmatprep.mubr.f32.mxu1 %v11511_v19  ;;  %v4860_v19 = vadd.f32 %v10852_v8, %v11534_v2 }
 0x463   : > { %7937 = vmatmul.mubr.f32.gmra.mrb[8].mxu1 %v11512_v1  ;;  %v8484_v1 = vld [vmem:[%s8620_s18 + $0x30] sm:$0xff] }
 0x464   : > { %7939 = vmatprep.mubr.f32.mxu1 %v11513_v43 }
 0x467   : > { %7940 = vmatmul.mubr.f32.gmra.mrb[10].mxu1 %v11514_v54 }
 0x468   : > { %7942 = vmatprep.mubr.f32.mxu1 %v11515_v9 }
 0x46b   : > { %7943 = vmatmul.mubr.f32.gmra.mrb[12].mxu1 %v11516_v15 }
 0x46c   : > { %7945 = vmatprep.mubr.f32.mxu1 %v11517_v17 }
 0x46f   : > { %7946 = vmatmul.mubr.f32.gmra.mrb[14].mxu1 %v11518_v63  ;;  %v11535_v63 = vld [vmem:[#allocation5_spill] sm:$0xff] }
 0x470   : > { %7948 = vmatprep.mubr.f32.mxu1 %v11519_v53  ;;  %v4890_v53 = vadd.f32 %v11535_v63, %v10852_v8 }
 0x473   : > { %7949 = vmatmul.mubr.f32.gmra.mrb[16].mxu1 %v11520_v16  ;;  %v8485_v16 = vld [vmem:[%s8620_s18 + $0x48] sm:$0xff] }
 0x474   : > { %7951 = vmatprep.mubr.f32.mxu1 %v11521_v32 }
 0x477   : > { %7952 = vmatmul.mubr.f32.gmra.mrb[18].mxu1 %v11522_v38  ;;  %v11536_v38 = vld [vmem:[#allocation6_spill] sm:$0xff] }
 0x478   : > { %7954 = vmatprep.mubr.f32.mxu1 %v11523_v10  ;;  %v4880_v10 = vadd.f32 %v10852_v8, %v11536_v38 }
 0x47b   : > { %7955 = vmatmul.mubr.f32.gmra.mrb[20].mxu1 %v11524_v56  ;;  %v8486_v56 = vld [vmem:[%s8620_s18 + $0x40] sm:$0xff] }
 0x512   : > { %v7911_v6 = vpop.f32.mrb[22].mxu1 }
 0x513   : > { %v8072_v52 = vadd.f32 %v7911_v6, %v4790_v45  ;;  %v6356_v59 = vpop.f32.mrb[23].mxu1 }
 0x514   : > { %v8074_v4 = vadd.f32 %v6356_v59, %v4780_v28 }
 0x515   : > { %v6547_v60 = vadd.f32 %v8477_v50, %v8072_v52  ;;  %v11537_v52 = vld [vmem:[#allocation7_spill] sm:$0xff] }
 0x516   : > { %v6546_v20 = vadd.f32 %v8478_v39, %v8074_v4  ;;  %v7914_v58 = vpop.f32.mrb[24].mxu1  ;;  %v4910_v59 = vadd.f32 %v11537_v52, %v10852_v8  ;;  %v8487_v4 = vld [vmem:[%s8620_s18 + $0x58] sm:$0xff] }
 0x517   : > { %6579 = vst.msk [vmem:[%s10862_s20 + $0x8] sm:$0xff] %vm541_vm0, %v6547_v60  ;;  %v8076_v57 = vadd.f32 %v7914_v58, %v4810_v23  ;;  %v6368_v61 = vpop.f32.mrb[25].mxu1  ;;  %v11538_v23 = vld [vmem:[#allocation3_spill] sm:$0xff] }
 0x518   : > { %6578 = vst.msk [vmem:[%s10862_s20] sm:$0xff] %vm541_vm0, %v6546_v20  ;;  %v8078_v44 = vadd.f32 %v6368_v61, %v4800_v55  ;;  %v4900_v50 = vadd.f32 %v10852_v8, %v11538_v23  ;;  %v8488_v60 = vld [vmem:[%s8620_s18 + $0x50] sm:$0xff] }
 0x519   : > { %v6549_v14 = vadd.f32 %v8479_v46, %v8076_v57  ;;  %v8489_v57 = vld [vmem:[%s8620_s18 + $0x68] sm:$0xff] }
 0x51a   : > { %v6548_v7 = vadd.f32 %v8480_v25, %v8078_v44  ;;  %v7917_v22 = vpop.f32.mrb[26].mxu1  ;;  %v8490_v44 = vld [vmem:[%s8620_s18 + $0x60] sm:$0xff] }
 0x51b   : > { %6581 = vst.msk [vmem:[%s10862_s20 + $0x18] sm:$0xff] %vm541_vm0, %v6549_v14  ;;  %v8080_v12 = vadd.f32 %v7917_v22, %v4830_v27  ;;  %v6380_v34 = vpop.f32.mrb[27].mxu1 }
 0x51c   : > { %6580 = vst.msk [vmem:[%s10862_s20 + $0x10] sm:$0xff] %vm541_vm0, %v6548_v7  ;;  %v8082_v13 = vadd.f32 %v6380_v34, %v4820_v18  ;;  %v8491_v18 = vld [vmem:[%s8620_s18 + $0x78] sm:$0xff]  ;;  %v8492_v7 = vld [vmem:[%s8620_s18 + $0x70] sm:$0xff] }
 0x51d   : > { %v6551_v24 = vadd.f32 %v8481_v30, %v8080_v12 }
 0x51e   : > { %v6550_v41 = vadd.f32 %v8482_v48, %v8082_v13  ;;  %v7920_v37 = vpop.f32.mrb[28].mxu1 }
 0x51f   : > { %6583 = vst.msk [vmem:[%s10862_s20 + $0x28] sm:$0xff] %vm541_vm0, %v6551_v24  ;;  %v8084_v33 = vadd.f32 %v7920_v37, %v4850_v29  ;;  %v6392_v47 = vpop.f32.mrb[29].mxu1  ;;  %v8493_v29 = vld [vmem:[%s8620_s18 + $0x88] sm:$0xff]  ;;  %v8494_v24 = vld [vmem:[%s8620_s18 + $0x80] sm:$0xff] }
 0x520   : > { %6582 = vst.msk [vmem:[%s10862_s20 + $0x20] sm:$0xff] %vm541_vm0, %v6550_v41  ;;  %v8086_v40 = vadd.f32 %v6392_v47, %v4840_v26 }
 0x521   : > { %v6553_v42 = vadd.f32 %v8483_v35, %v8084_v33  ;;  %v8495_v33 = vld [vmem:[%s8620_s18 + $0x98] sm:$0xff] }
 0x522   : > { %v6552_v43 = vadd.f32 %v8484_v1, %v8086_v40  ;;  %v7923_v54 = vpop.f32.mrb[30].mxu1  ;;  %v8496_v40 = vld [vmem:[%s8620_s18 + $0x90] sm:$0xff] }
 0x523   : > { %6585 = vst.msk [vmem:[%s10862_s20 + $0x38] sm:$0xff] %vm541_vm0, %v6553_v42  ;;  %v8088_v9 = vadd.f32 %v7923_v54, %v4870_v5  ;;  %v6404_v15 = vpop.f32.mrb[31].mxu1 }
 0x524   : > { %6584 = vst.msk [vmem:[%s10862_s20 + $0x30] sm:$0xff] %vm541_vm0, %v6552_v43  ;;  %v8090_v17 = vadd.f32 %v6404_v15, %v4860_v19  ;;  %v8497_v19 = vld [vmem:[%s8620_s18 + $0xa8] sm:$0xff]  ;;  %v8498_v43 = vld [vmem:[%s8620_s18 + $0xa0] sm:$0xff] }
 0x525   : > { %v6555_v32 = vadd.f32 %v8485_v16, %v8088_v9 }
 0x526   : > { %v6554_v62 = vadd.f32 %v8486_v56, %v8090_v17  ;;  %v7926_v45 = vpop.f32.mrb[32].mxu1 }
 0x527   : > { %6587 = vst.msk [vmem:[%s10862_s20 + $0x48] sm:$0xff] %vm541_vm0, %v6555_v32  ;;  %v8092_v31 = vadd.f32 %v7926_v45, %v4890_v53  ;;  %v6416_v28 = vpop.f32.mrb[33].mxu1  ;;  %v8499_v53 = vld [vmem:[%s8620_s18 + $0xb8] sm:$0xff]  ;;  %v8500_v32 = vld [vmem:[%s8620_s18 + $0xb0] sm:$0xff] }
 0x528   : > { %6586 = vst.msk [vmem:[%s10862_s20 + $0x40] sm:$0xff] %vm541_vm0, %v6554_v62  ;;  %v8094_v6 = vadd.f32 %v6416_v28, %v4880_v10 }
 0x529   : > { %v6557_v21 = vadd.f32 %v8487_v4, %v8092_v31  ;;  %v8501_v31 = vld [vmem:[%s8620_s18 + $0xc8] sm:$0xff] }
 0x52a   : > { %v6556_v36 = vadd.f32 %v8488_v60, %v8094_v6  ;;  %v7929_v55 = vpop.f32.mrb[34].mxu1  ;;  %v8502_v6 = vld [vmem:[%s8620_s18 + $0xc0] sm:$0xff] }
 0x52b   : > { %6589 = vst.msk [vmem:[%s10862_s20 + $0x58] sm:$0xff] %vm541_vm0, %v6557_v21  ;;  %v8096_v39 = vadd.f32 %v7929_v55, %v4910_v59  ;;  %v6428_v20 = vpop.f32.mrb[35].mxu1 }
 0x52c   : > { %6588 = vst.msk [vmem:[%s10862_s20 + $0x50] sm:$0xff] %vm541_vm0, %v6556_v36  ;;  %v8098_v58 = vadd.f32 %v6428_v20, %v4900_v50  ;;  %v8503_v50 = vld [vmem:[%s8620_s18 + $0xd8] sm:$0xff]  ;;  %v8504_v36 = vld [vmem:[%s8620_s18 + $0xd0] sm:$0xff] }
 0x52d   : > { %v6559_v61 = vadd.f32 %v8489_v57, %v8096_v39 }
 0x52e   : > { %v6558_v3 = vadd.f32 %v8490_v44, %v8098_v58  ;;  %v7932_v27 = vpop.f32.mrb[4].mxu1 }
 0x52f   : > { %6591 = vst.msk [vmem:[%s10862_s20 + $0x68] sm:$0xff] %vm541_vm0, %v6559_v61  ;;  %v8099_v46 = vadd.f32 %v7932_v27, %v10852_v8  ;;  %v6440_v14 = vpop.f32.mrb[5].mxu1  ;;  %v8505_v61 = vld [vmem:[%s8620_s18 + $0xe8] sm:$0xff] }
 0x530   : > { %6590 = vst.msk [vmem:[%s10862_s20 + $0x60] sm:$0xff] %vm541_vm0, %v6558_v3  ;;  %v8100_v51 = vadd.f32 %v10852_v8, %v6440_v14  ;;  %v8506_v3 = vld [vmem:[%s8620_s18 + $0xe0] sm:$0xff] }
 0x531   : > { %v6561_v25 = vadd.f32 %v8491_v18, %v8099_v46 }
 0x532   : > { %v6560_v22 = vadd.f32 %v8492_v7, %v8100_v51  ;;  %v7935_v12 = vpop.f32.mrb[6].mxu1 }
 0x533   : > { %6593 = vst.msk [vmem:[%s10862_s20 + $0x78] sm:$0xff] %vm541_vm0, %v6561_v25  ;;  %v8101_v34 = vadd.f32 %v7935_v12, %v10852_v8  ;;  %v6452_v13 = vpop.f32.mrb[7].mxu1  ;;  %v8507_v25 = vld [vmem:[%s8620_s18 + $0xf8] sm:$0xff] }
 0x534   : > { %6592 = vst.msk [vmem:[%s10862_s20 + $0x70] sm:$0xff] %vm541_vm0, %v6560_v22  ;;  %v8102_v11 = vadd.f32 %v10852_v8, %v6452_v13  ;;  %v8508_v22 = vld [vmem:[%s8620_s18 + $0xf0] sm:$0xff] }
 0x535   : > { %v6563_v30 = vadd.f32 %v8493_v29, %v8101_v34 }
 0x536   : > { %v6562_v0 = vadd.f32 %v8494_v24, %v8102_v11  ;;  %v7938_v26 = vpop.f32.mrb[8].mxu1 }
 0x537   : > { %6595 = vst.msk [vmem:[%s10862_s20 + $0x88] sm:$0xff] %vm541_vm0, %v6563_v30  ;;  %v8103_v48 = vadd.f32 %v7938_v26, %v10852_v8  ;;  %v6464_v41 = vpop.f32.mrb[9].mxu1 }
 0x538   : > { %6594 = vst.msk [vmem:[%s10862_s20 + $0x80] sm:$0xff] %vm541_vm0, %v6562_v0  ;;  %v8104_v37 = vadd.f32 %v10852_v8, %v6464_v41 }
 0x539   : > { %v6565_v47 = vadd.f32 %v8495_v33, %v8103_v48 }
 0x53a   : > { %v6564_v49 = vadd.f32 %v8496_v40, %v8104_v37  ;;  %v7941_v5 = vpop.f32.mrb[10].mxu1 }
 0x53b   : > { %6597 = vst.msk [vmem:[%s10862_s20 + $0x98] sm:$0xff] %vm541_vm0, %v6565_v47  ;;  %v8105_v35 = vadd.f32 %v7941_v5, %v10852_v8  ;;  %v6476_v42 = vpop.f32.mrb[11].mxu1 }
 0x53c   : > { %6596 = vst.msk [vmem:[%s10862_s20 + $0x90] sm:$0xff] %vm541_vm0, %v6564_v49  ;;  %v8106_v2 = vadd.f32 %v10852_v8, %v6476_v42 }
 0x53d   : > { %v6567_v1 = vadd.f32 %v8497_v19, %v8105_v35 }
 0x53e   : > { %v6566_v54 = vadd.f32 %v8498_v43, %v8106_v2  ;;  %v7944_v9 = vpop.f32.mrb[12].mxu1 }
 0x53f   : > { %6599 = vst.msk [vmem:[%s10862_s20 + $0xa8] sm:$0xff] %vm541_vm0, %v6567_v1  ;;  %v8107_v15 = vadd.f32 %v7944_v9, %v10852_v8  ;;  %v6488_v17 = vpop.f32.mrb[13].mxu1 }
 0x540   : > { %6598 = vst.msk [vmem:[%s10862_s20 + $0xa0] sm:$0xff] %vm541_vm0, %v6566_v54  ;;  %v8108_v63 = vadd.f32 %v10852_v8, %v6488_v17 }
 0x541   : > { %v6569_v16 = vadd.f32 %v8499_v53, %v8107_v15 }
 0x542   : > { %v6568_v38 = vadd.f32 %v8500_v32, %v8108_v63  ;;  %v7947_v10 = vpop.f32.mrb[14].mxu1 }
 0x543   : > { %6601 = vst.msk [vmem:[%s10862_s20 + $0xb8] sm:$0xff] %vm541_vm0, %v6569_v16  ;;  %v8109_v56 = vadd.f32 %v7947_v10, %v10852_v8  ;;  %v6500_v62 = vpop.f32.mrb[15].mxu1 }
 0x544   : > { %6600 = vst.msk [vmem:[%s10862_s20 + $0xb0] sm:$0xff] %vm541_vm0, %v6568_v38  ;;  %v8110_v45 = vadd.f32 %v10852_v8, %v6500_v62 }
 0x545   : > { %v6571_v28 = vadd.f32 %v8501_v31, %v8109_v56 }
 0x546   : > { %v6570_v52 = vadd.f32 %v8502_v6, %v8110_v45  ;;  %v7950_v59 = vpop.f32.mrb[16].mxu1 }
 0x547   : > { %6603 = vst.msk [vmem:[%s10862_s20 + $0xc8] sm:$0xff] %vm541_vm0, %v6571_v28  ;;  %v8111_v4 = vadd.f32 %v7950_v59, %v10852_v8  ;;  %v6512_v21 = vpop.f32.mrb[17].mxu1 }
 0x548   : > { %6602 = vst.msk [vmem:[%s10862_s20 + $0xc0] sm:$0xff] %vm541_vm0, %v6570_v52  ;;  %v8112_v23 = vadd.f32 %v10852_v8, %v6512_v21 }
 0x549   : > { %v6573_v60 = vadd.f32 %v8503_v50, %v8111_v4 }
 0x54a   : > { %v6572_v55 = vadd.f32 %v8504_v36, %v8112_v23  ;;  %v7953_v39 = vpop.f32.mrb[18].mxu1 }
 0x54b   : > { %6605 = vst.msk [vmem:[%s10862_s20 + $0xd8] sm:$0xff] %vm541_vm0, %v6573_v60  ;;  %v8113_v20 = vadd.f32 %v7953_v39, %v10852_v8  ;;  %v6524_v58 = vpop.f32.mrb[19].mxu1 }
 0x54c   : > { %6604 = vst.msk [vmem:[%s10862_s20 + $0xd0] sm:$0xff] %vm541_vm0, %v6572_v55  ;;  %v8114_v57 = vadd.f32 %v10852_v8, %v6524_v58 }
 0x54d   : > { %v6575_v44 = vadd.f32 %v8505_v61, %v8113_v20 }
 0x54e   : > { %v6574_v27 = vadd.f32 %v8506_v3, %v8114_v57  ;;  %v7956_v46 = vpop.f32.mrb[20].mxu1 }
 0x54f   : > { %6607 = vst.msk [vmem:[%s10862_s20 + $0xe8] sm:$0xff] %vm541_vm0, %v6575_v44  ;;  %v8115_v14 = vadd.f32 %v7956_v46, %v10852_v8  ;;  %v6536_v51 = vpop.f32.mrb[21].mxu1 }
 0x550   : > { %6606 = vst.msk [vmem:[%s10862_s20 + $0xe0] sm:$0xff] %vm541_vm0, %v6574_v27  ;;  %v8116_v18 = vadd.f32 %v10852_v8, %v6536_v51 }
 0x551   : > { %v6577_v7 = vadd.f32 %v8507_v25, %v8115_v14 }
 0x552   : > { %v6576_v12 = vadd.f32 %v8508_v22, %v8116_v18 }
 0x553   : > { %6609 = vst.msk [vmem:[%s10862_s20 + $0xf8] sm:$0xff] %vm541_vm0, %v6577_v7 }
 0x554   : > { %6608 = vst.msk [vmem:[%s10862_s20 + $0xf0] sm:$0xff] %vm541_vm0, %v6576_v12 }
 0x555 PF: > { %s19_s11 = sadd.s32 1, %s8531_s11   ;;  %s11539_s30 = smov %s8527_s10 }
 0x556   : > { %p16_p5 = scmp.ge.s32.totalorder %s19_s11, 4   ;;  %s11540_s10 = smov %s11542_s12 }
 0x558   :  { %18 = sbr.rel (!%p16_p5) target bundleno = 2 (0x2), region = 95 }

</bundles_post_ra>
